<compile_context>
chip_gen: v7x
topology: tpu7x:2x2x1
jax: 0.10.0
libtpu: 0.0.40
codegen_flags: <defaults>
</compile_context>

<pallas_src>
import jax
import jax.numpy as jnp
from jax.experimental import pallas as pl
from jax.experimental.pallas import tpu as pltpu

NUM_HEADS = 4
LN_EPS = 1e-5


def _pick_ff_chunk(dim_ff):
    """Generation-tuned FFN streaming chunk (review: v5e ~1024, v6e/v7x full/2048)."""
    try:
        kind = jax.devices()[0].device_kind.lower()
    except Exception:  # pragma: no cover - be robust in odd environments
        kind = ""
    target = 1024 if "v5" in kind else 2048
    target = min(target, dim_ff)
    if dim_ff % target != 0 or target % 128 != 0:
        target = dim_ff            # fall back to a single chunk per layer
    return target


def _layer_norm(x, w, b):
    mean = jnp.mean(x, axis=-1, keepdims=True)
    xc = x - mean
    var = jnp.mean(xc * xc, axis=-1, keepdims=True)
    inv = jax.lax.rsqrt(var + LN_EPS)
    return xc * inv * w + b


def encoder_kernel(x_ref, wqkv_ref, bqkv_ref, wo_ref, bo_ref,
                   ln1w_ref, ln1b_ref, ln2w_ref, ln2b_ref,
                   w1_ref, b1_ref, w2_ref, b2_ref,
                   out_ref, x_vmem, ff_acc):
    """grid = (num_layers, dim_ff // ff_chunk); x is carried in VMEM across steps.

    Ordering within one grid step (trace order): init-x -> attention/LN1 ->
    FFN chunk (accumulate) -> LN2 finalize -> write out. This stays correct
    even when C == 1 and all phases run in the same step.
    """
    layer = pl.program_id(0)
    chunk = pl.program_id(1)
    n_layers = pl.num_programs(0)
    n_chunks = pl.num_programs(1)

    S, D = x_vmem.shape
    H = NUM_HEADS
    hd = D // H

    # ---- very first grid step: load input activations into the VMEM carry ----
    @pl.when(jnp.logical_and(layer == 0, chunk == 0))
    def _init_x():
        x_vmem[...] = x_ref[...].astype(jnp.float32)

    # ---- chunk 0 of each layer: self-attention + residual + LN1 --------------
    @pl.when(chunk == 0)
    def _attention():
        x = x_vmem[...]                                     # (S, D) f32
        xb = x.astype(jnp.bfloat16)

        # fused QKV projection; weights pre-transposed to (D, 3D), bf16
        qkv = jnp.dot(xb, wqkv_ref[...],
                      preferred_element_type=jnp.float32) + bqkv_ref[...]
        scale = 1.0 / float(hd) ** 0.5
        q = qkv[:, 0:D] * scale                             # pre-scale q (as PyTorch does)
        k = qkv[:, D:2 * D]
        v = qkv[:, 2 * D:3 * D]

        # One full-width transpose of K (single XLU relayout), then clean
        # sublane slices per head instead of 4 tiny per-head transposes.
        kT = k.T                                            # (D, S)

        ctx_heads = []
        for h in range(H):                                  # static unroll over heads
            qh = q[:, h * hd:(h + 1) * hd]                  # (S, hd)
            kTh = kT[h * hd:(h + 1) * hd, :]                # (hd, S) sublane slice
            vh = v[:, h * hd:(h + 1) * hd]                  # (S, hd)
            s = jnp.dot(qh, kTh, preferred_element_type=jnp.float32)     # (S, S)
            s = s - jnp.max(s, axis=-1, keepdims=True)
            p = jnp.exp(s)
            p = p * pl.reciprocal(jnp.sum(p, axis=-1, keepdims=True), approx=True)
            ctx_heads.append(jnp.dot(p, vh, preferred_element_type=jnp.float32))

        # Lane-concat the per-head contexts and hit Wo with ONE (S,D)@(D,D) matmul.
        ctx = jnp.concatenate(ctx_heads, axis=-1)           # (S, D)
        attn = jnp.dot(ctx.astype(jnp.bfloat16), wo_ref[...],
                       preferred_element_type=jnp.float32) + bo_ref[...]

        y = _layer_norm(x + attn, ln1w_ref[...], ln1b_ref[...])   # dropout = identity
        x_vmem[...] = y
        ff_acc[...] = jnp.zeros_like(ff_acc)

    # ---- every step: one dim_ff chunk of the feed-forward ---------------------
    xb = x_vmem[...].astype(jnp.bfloat16)
    hdn = jnp.dot(xb, w1_ref[...], preferred_element_type=jnp.float32) + b1_ref[...]
    hdn = jnp.maximum(hdn, 0.0)                             # relu
    ff_acc[...] += jnp.dot(hdn.astype(jnp.bfloat16), w2_ref[...],
                           preferred_element_type=jnp.float32)

    # ---- last chunk of each layer: residual + LN2 -----------------------------
    @pl.when(chunk == n_chunks - 1)
    def _finalize_layer():
        y = _layer_norm(x_vmem[...] + ff_acc[...] + b2_ref[...],
                        ln2w_ref[...], ln2b_ref[...])       # dropout = identity
        x_vmem[...] = y

    # ---- last chunk of last layer: write the result ---------------------------
    @pl.when(jnp.logical_and(chunk == n_chunks - 1, layer == n_layers - 1))
    def _write_out():
        out_ref[...] = x_vmem[...].astype(out_ref.dtype)


def transformer_encoder(x, kp):
    """Run all encoder layers in a single pallas_call."""
    S, D = x.shape
    L, C, _, ff_chunk = kp["w1"].shape                # pre-blocked (L, C, D, chunk)
    F = C * ff_chunk
    assert D % 128 == 0, "d_model must be a multiple of 128 (lane width)"
    assert D % NUM_HEADS == 0 and (D // NUM_HEADS) % 8 == 0, "head_dim must be 8-aligned"
    assert ff_chunk % 128 == 0, "dim_ff tiling must be 128-aligned"

    def resident(*shape):
        # per-layer block: resident across the FFN-chunk axis, re-fetched per layer
        nd = len(shape)
        return pl.BlockSpec((None,) + tuple(shape),
                            lambda l, c, _n=nd: (l,) + (0,) * _n)

    in_specs = [
        pl.BlockSpec((S, D), lambda l, c: (0, 0)),                       # x (fetched once)
        resident(D, 3 * D),                                              # wqkv
        resident(1, 3 * D),                                              # bqkv
        resident(D, D),                                                  # wo
        resident(1, D),                                                  # bo
        resident(1, D), resident(1, D),                                  # ln1 w/b
        resident(1, D), resident(1, D),                                  # ln2 w/b
        pl.BlockSpec((None, None, D, ff_chunk), lambda l, c: (l, c, 0, 0)),  # w1 chunk (contiguous)
        pl.BlockSpec((None, None, 1, ff_chunk), lambda l, c: (l, c, 0, 0)),  # b1 chunk
        pl.BlockSpec((None, ff_chunk, D), lambda l, c: (l, c, 0)),           # w2 chunk (contiguous)
        resident(1, D),                                                  # b2
    ]

    # Advisory cost hint: lets XLA schedule the surrounding gather/concat sensibly.
    flops = L * (2 * S * D * (4 * D + 2 * F) + 4 * S * S * D)
    weight_bytes = L * ((3 * D * D + D * D + 2 * D * F) * 2        # bf16 matrices
                        + (3 * D + D + 4 * D + F + D) * 4)         # f32 biases / LN
    bytes_accessed = weight_bytes + 2 * S * D * 4                  # + x in/out
    transcendentals = L * (NUM_HEADS * S * S + 2 * S)

    return pl.pallas_call(
        encoder_kernel,
        out_shape=jax.ShapeDtypeStruct((S, D), jnp.float32),
        grid=(L, C),
        in_specs=in_specs,
        out_specs=pl.BlockSpec((S, D), lambda l, c: (0, 0)),
        scratch_shapes=[pltpu.VMEM((S, D), jnp.float32),    # x carried across layers
                        pltpu.VMEM((S, D), jnp.float32)],   # FFN accumulator
        # Both grid axes carry state (x across layers, accumulator across chunks)
        # -> sequential. Default scoped VMEM limit is plenty (<5 MiB footprint).
        compiler_params=pltpu.CompilerParams(
            dimension_semantics=("arbitrary", "arbitrary")),
        cost_estimate=pl.CostEstimate(flops=flops,
                                      transcendentals=transcendentals,
                                      bytes_accessed=bytes_accessed),
    )(x, kp["wqkv"], kp["bqkv"], kp["wo"], kp["bo"],
      kp["ln1w"], kp["ln1b"], kp["ln2w"], kp["ln2b"],
      kp["w1"], kp["b1"], kp["w2"], kp["b2"])


def attention_dependency_forward(features, labels, embedding, kernel_params):
    # glue: embedding gather + concat (layout plumbing, not the hot path)
    # TODO(synk): could be folded into the kernel via scalar-prefetched labels.
    emb = jnp.take(embedding, labels, axis=0)                              # (B, E)
    x = jnp.concatenate([features.astype(jnp.float32),
                         emb.astype(jnp.float32)], axis=-1)                # (B, D)
    return transformer_encoder(x, kernel_params)                          # == transformed[:, 0, :]


def init_params(key, feature_dim, label_dim, embed_dim, num_layers, dim_ff):
    """PyTorch-layout parameters: weights are (out_features, in_features)."""
    d_model = feature_dim + embed_dim
    keys = jax.random.split(key, 1 + num_layers)
    params = {
        "embedding": 0.02 * jax.random.normal(keys[0], (label_dim, embed_dim), jnp.float32),
        "layers": [],
    }
    for l in range(num_layers):
        ks = jax.random.split(keys[1 + l], 8)
        params["layers"].append({
            "in_proj_weight":  0.02 * jax.random.normal(ks[0], (3 * d_model, d_model), jnp.float32),
            "in_proj_bias":    0.01 * jax.random.normal(ks[1], (3 * d_model,), jnp.float32),
            "out_proj_weight": 0.02 * jax.random.normal(ks[2], (d_model, d_model), jnp.float32),
            "out_proj_bias":   0.01 * jax.random.normal(ks[3], (d_model,), jnp.float32),
            "ln1_weight": jnp.ones((d_model,), jnp.float32),
            "ln1_bias":   jnp.zeros((d_model,), jnp.float32),
            "ln2_weight": jnp.ones((d_model,), jnp.float32),
            "ln2_bias":   jnp.zeros((d_model,), jnp.float32),
            "linear1_weight": 0.02 * jax.random.normal(ks[4], (dim_ff, d_model), jnp.float32),
            "linear1_bias":   0.01 * jax.random.normal(ks[5], (dim_ff,), jnp.float32),
            "linear2_weight": 0.02 * jax.random.normal(ks[6], (d_model, dim_ff), jnp.float32),
            "linear2_bias":   0.01 * jax.random.normal(ks[7], (d_model,), jnp.float32),
        })
    return params


def prepare_kernel_params(params, ff_chunk=None):
    """One-time wrapper-side plumbing: stack layers on a leading axis, pre-transpose
    weights to (in, out), cast matrices to bf16, and pre-block w1/b1 along dim_ff so
    every FFN chunk DMA is a single contiguous transfer."""
    layers = params["layers"]
    L = len(layers)
    dim_ff, d_model = layers[0]["linear1_weight"].shape
    if ff_chunk is None:
        ff_chunk = _pick_ff_chunk(dim_ff)
    assert dim_ff % ff_chunk == 0 and ff_chunk % 128 == 0
    C = dim_ff // ff_chunk

    def stack(name):
        return jnp.stack([lp[name] for lp in layers])

    def wmat(name):      # (L, out, in) -> (L, in, out), bf16
        return jnp.transpose(stack(name), (0, 2, 1)).astype(jnp.bfloat16)

    def vrow(name):      # (L, N) -> (L, 1, N), f32 (biases / LN params stay f32)
        return stack(name)[:, None, :].astype(jnp.float32)

    w1 = wmat("linear1_weight")                                    # (L, D, F)
    w1 = jnp.transpose(w1.reshape(L, d_model, C, ff_chunk), (0, 2, 1, 3))   # (L, C, D, chunk)
    b1 = vrow("linear1_bias")                                      # (L, 1, F)
    b1 = jnp.transpose(b1.reshape(L, 1, C, ff_chunk), (0, 2, 1, 3))         # (L, C, 1, chunk)

    return {
        "wqkv": wmat("in_proj_weight"),   "bqkv": vrow("in_proj_bias"),
        "wo":   wmat("out_proj_weight"),  "bo":   vrow("out_proj_bias"),
        "ln1w": vrow("ln1_weight"),       "ln1b": vrow("ln1_bias"),
        "ln2w": vrow("ln2_weight"),       "ln2b": vrow("ln2_bias"),
        "w1":   w1,                       "b1":   b1,
        "w2":   wmat("linear2_weight"),   "b2":   vrow("linear2_bias"),
    }


def reference_forward(features, labels, embedding, kp):
    """Pure-JAX f32 reference using the same (bf16-rounded) weights as the kernel."""
    emb = jnp.take(embedding, labels, axis=0)
    x = jnp.concatenate([features.astype(jnp.float32), emb.astype(jnp.float32)], axis=-1)
    L, D, _ = kp["wo"].shape
    _, C, _, ff_chunk = kp["w1"].shape
    F = C * ff_chunk
    hd = D // NUM_HEADS
    for l in range(L):
        wqkv = kp["wqkv"][l].astype(jnp.float32)
        wo = kp["wo"][l].astype(jnp.float32)
        qkv = x @ wqkv + kp["bqkv"][l]
        q = qkv[:, :D] / jnp.sqrt(jnp.float32(hd))
        k = qkv[:, D:2 * D]
        v = qkv[:, 2 * D:]
        attn = jnp.zeros_like(x)
        for h in range(NUM_HEADS):
            sl = slice(h * hd, (h + 1) * hd)
            p = jax.nn.softmax(q[:, sl] @ k[:, sl].T, axis=-1)
            attn = attn + (p @ v[:, sl]) @ wo[sl, :]
        attn = attn + kp["bo"][l]
        x = _layer_norm(x + attn, kp["ln1w"][l], kp["ln1b"][l])
        # un-block w1/b1: (C, D, chunk) -> (D, F), (C, 1, chunk) -> (1, F)
        w1 = jnp.transpose(kp["w1"][l], (1, 0, 2)).reshape(D, F).astype(jnp.float32)
        b1 = jnp.transpose(kp["b1"][l], (1, 0, 2)).reshape(1, F)
        w2 = kp["w2"][l].astype(jnp.float32)
        h1 = jnp.maximum(x @ w1 + b1, 0.0)
        x = _layer_norm(x + h1 @ w2 + kp["b2"][l], kp["ln2w"][l], kp["ln2b"][l])
    return x


if __name__ == "__main__":
    # Small shapes consistent with the module: d_model = feature_dim + embed_dim
    # must be divisible by num_heads=4 (and is 128-lane aligned here).
    B = 8              # batch of examples (acts as the transformer sequence)
    FEATURE_DIM = 32
    EMBED_DIM = 96     # -> d_model = 128
    LABEL_DIM = 10
    NUM_LAYERS = 2
    DIM_FF = 2048      # nn.TransformerEncoderLayer default

    key = jax.random.PRNGKey(0)
    k_feat, k_lab, k_par = jax.random.split(key, 3)

    features = jax.random.normal(k_feat, (B, FEATURE_DIM), jnp.float32)
    labels = jax.random.randint(k_lab, (B,), 0, LABEL_DIM, jnp.int32)

    params = init_params(k_par, FEATURE_DIM, LABEL_DIM, EMBED_DIM, NUM_LAYERS, DIM_FF)
    kparams = prepare_kernel_params(params)   # FF_CHUNK auto-tuned per TPU generation

    out = attention_dependency_forward(features, labels, params["embedding"], kparams)
    out = jax.block_until_ready(out)

    assert out.shape == (B, FEATURE_DIM + EMBED_DIM), out.shape
    assert bool(jnp.all(jnp.isfinite(out)))

    # numerics check vs a pure-JAX reference built on the same bf16-rounded weights
    ref = reference_forward(features, labels, params["embedding"], kparams)
    max_err = float(jnp.max(jnp.abs(out - ref)))
    assert max_err < 0.1, f"max abs error vs reference: {max_err}"

    print("KERNEL_OK")
</pallas_src>

<mosaic_0001>
module attributes {stable_mosaic.version = 11 : i64} {
  func.func @encoder_kernel(%arg0: i32, %arg1: i32, %arg2: memref<8x128xf32, #tpu.memory_space<vmem>>, %arg3: memref<1x128x384xbf16, #tpu.memory_space<vmem>>, %arg4: memref<1x1x384xf32, #tpu.memory_space<vmem>>, %arg5: memref<1x128x128xbf16, #tpu.memory_space<vmem>>, %arg6: memref<1x1x128xf32, #tpu.memory_space<vmem>>, %arg7: memref<1x1x128xf32, #tpu.memory_space<vmem>>, %arg8: memref<1x1x128xf32, #tpu.memory_space<vmem>>, %arg9: memref<1x1x128xf32, #tpu.memory_space<vmem>>, %arg10: memref<1x1x128xf32, #tpu.memory_space<vmem>>, %arg11: memref<1x1x128x2048xbf16, #tpu.memory_space<vmem>>, %arg12: memref<1x1x1x2048xf32, #tpu.memory_space<vmem>>, %arg13: memref<1x2048x128xbf16, #tpu.memory_space<vmem>>, %arg14: memref<1x1x128xf32, #tpu.memory_space<vmem>>, %arg15: memref<8x128xf32, #tpu.memory_space<vmem>>, %arg16: memref<8x128xf32, #tpu.memory_space<vmem>>, %arg17: memref<8x128xf32, #tpu.memory_space<vmem>>) attributes {dimension_semantics = [#tpu.dimension_semantics<arbitrary>, #tpu.dimension_semantics<arbitrary>], iteration_bounds = array<i64: 2, 1>, scalar_prefetch = 0 : i64, scratch_operands = 2 : i64, tpu.core_type = #tpu.core_type<tc>, window_params = [{pipeline_mode = #tpu.pipeline_mode<synchronous>, transform_indices = @transform_0, window_bounds = array<i64: 8, 128>}, {transform_indices = @transform_1, window_bounds = array<i64: 1, 128, 384>}, {transform_indices = @transform_2, window_bounds = array<i64: 1, 1, 384>}, {transform_indices = @transform_3, window_bounds = array<i64: 1, 128, 128>}, {transform_indices = @transform_4, window_bounds = array<i64: 1, 1, 128>}, {transform_indices = @transform_5, window_bounds = array<i64: 1, 1, 128>}, {transform_indices = @transform_6, window_bounds = array<i64: 1, 1, 128>}, {transform_indices = @transform_7, window_bounds = array<i64: 1, 1, 128>}, {transform_indices = @transform_8, window_bounds = array<i64: 1, 1, 128>}, {transform_indices = @transform_9, window_bounds = array<i64: 1, 1, 128, 2048>}, {transform_indices = @transform_10, window_bounds = array<i64: 1, 1, 1, 2048>}, {transform_indices = @transform_11, window_bounds = array<i64: 1, 2048, 128>}, {transform_indices = @transform_12, window_bounds = array<i64: 1, 1, 128>}, {pipeline_mode = #tpu.pipeline_mode<synchronous>, transform_indices = @transform_13, window_bounds = array<i64: 8, 128>}]} {
    %c0_i32 = arith.constant 0 : i32
    %0 = arith.cmpi eq, %arg0, %c0_i32 : i32
    %c0_i32_0 = arith.constant 0 : i32
    %1 = arith.cmpi eq, %arg1, %c0_i32_0 : i32
    %2 = arith.andi %0, %1 : i1
    %3 = arith.extui %2 : i1 to i32
    %c0_i32_1 = arith.constant 0 : i32
    %4 = arith.cmpi ne, %3, %c0_i32_1 : i32
    scf.if %4 {
      %c0_26 = arith.constant 0 : index
      %c0_27 = arith.constant 0 : index
      %34 = vector.load %arg2[%c0_26, %c0_27] : memref<8x128xf32, #tpu.memory_space<vmem>>, vector<8x128xf32>
      %c0_28 = arith.constant 0 : index
      %c0_29 = arith.constant 0 : index
      %35 = vector.load %arg16[%c0_28, %c0_29] : memref<8x128xf32, #tpu.memory_space<vmem>>, vector<8x128xf32>
      tpu.vector_store %arg16[%c0_28, %c0_29], %34 {strides = array<i32>} : memref<8x128xf32, #tpu.memory_space<vmem>>, vector<8x128xf32>,
    } else {
    }
    %c0_i32_2 = arith.constant 0 : i32
    %5 = arith.cmpi eq, %arg1, %c0_i32_2 : i32
    %6 = arith.extui %5 : i1 to i32
    %c0_i32_3 = arith.constant 0 : i32
    %7 = arith.cmpi ne, %6, %c0_i32_3 : i32
    scf.if %7 {
      %c0_26 = arith.constant 0 : index
      %c0_27 = arith.constant 0 : index
      %34 = vector.load %arg16[%c0_26, %c0_27] : memref<8x128xf32, #tpu.memory_space<vmem>>, vector<8x128xf32>
      %35 = arith.truncf %34 : vector<8x128xf32> to vector<8x128xbf16>
      %c0_28 = arith.constant 0 : index
      %c0_29 = arith.constant 0 : index
      %c0_30 = arith.constant 0 : index
      %36 = vector.load %arg3[%c0_28, %c0_29, %c0_30] : memref<1x128x384xbf16, #tpu.memory_space<vmem>>, vector<1x128x384xbf16>
      %37 = vector.shape_cast %36 : vector<1x128x384xbf16> to vector<128x384xbf16>
      %cst_31 = arith.constant dense<0.000000e+00> : vector<8x384xf32>
      %38 = tpu.matmul %35, %37, %cst_31 {dimension_numbers = #tpu.dot_dimension_numbers<[1], [0], [0], [1], [0, 0, 1, 1], [], []>} : vector<8x128xbf16>, vector<128x384xbf16>, vector<8x384xf32> -> vector<8x384xf32>
      %c0_32 = arith.constant 0 : index
      %c0_33 = arith.constant 0 : index
      %c0_34 = arith.constant 0 : index
      %39 = vector.load %arg4[%c0_32, %c0_33, %c0_34] : memref<1x1x384xf32, #tpu.memory_space<vmem>>, vector<1x1x384xf32>
      %40 = vector.shape_cast %39 : vector<1x1x384xf32> to vector<1x384xf32>
      %41 = vector.broadcast %40 : vector<1x384xf32> to vector<8x384xf32>
      %42 = arith.addf %38, %41 : vector<8x384xf32>
      %43 = vector.extract_strided_slice %42 {offsets = [0, 0], sizes = [8, 128], strides = [1, 1]} : vector<8x384xf32> to vector<8x128xf32>
      %cst_35 = arith.constant 0.176776692 : f32
      %44 = vector.broadcast %cst_35 : f32 to vector<8x128xf32>
      %45 = arith.mulf %43, %44 : vector<8x128xf32>
      %46 = vector.extract_strided_slice %42 {offsets = [0, 128], sizes = [8, 128], strides = [1, 1]} : vector<8x384xf32> to vector<8x128xf32>
      %47 = vector.extract_strided_slice %42 {offsets = [0, 256], sizes = [8, 128], strides = [1, 1]} : vector<8x384xf32> to vector<8x128xf32>
      %48 = tpu.transpose %46, [1, 0] : vector<8x128xf32> -> vector<128x8xf32>
      %49 = vector.extract_strided_slice %45 {offsets = [0, 0], sizes = [8, 32], strides = [1, 1]} : vector<8x128xf32> to vector<8x32xf32>
      %50 = vector.extract_strided_slice %48 {offsets = [0, 0], sizes = [32, 8], strides = [1, 1]} : vector<128x8xf32> to vector<32x8xf32>
      %51 = vector.extract_strided_slice %47 {offsets = [0, 0], sizes = [8, 32], strides = [1, 1]} : vector<8x128xf32> to vector<8x32xf32>
      %cst_36 = arith.constant dense<0.000000e+00> : vector<8x8xf32>
      %52 = tpu.matmul %49, %50, %cst_36 {dimension_numbers = #tpu.dot_dimension_numbers<[1], [0], [0], [1], [0, 0, 1, 1], [], []>} : vector<8x32xf32>, vector<32x8xf32>, vector<8x8xf32> -> vector<8x8xf32>
      %cst_37 = arith.constant dense<0xFF800000> : vector<8xf32>
      %53 = vector.multi_reduction <maximumf>, %52, %cst_37 [1] : vector<8x8xf32> to vector<8xf32>
      %54 = vector.shape_cast %53 : vector<8xf32> to vector<8x1xf32>
      %55 = vector.broadcast %54 : vector<8x1xf32> to vector<8x8xf32>
      %56 = arith.subf %52, %55 : vector<8x8xf32>
      %57 = math.exp %56 : vector<8x8xf32>
      %cst_38 = arith.constant dense<0.000000e+00> : vector<8xf32>
      %58 = vector.multi_reduction <add>, %57, %cst_38 [1] : vector<8x8xf32> to vector<8xf32>
      %59 = vector.shape_cast %58 : vector<8xf32> to vector<8x1xf32>
      %60 = tpu.reciprocal %59 {approx = true} : vector<8x1xf32> -> vector<8x1xf32>
      %61 = vector.broadcast %60 : vector<8x1xf32> to vector<8x8xf32>
      %62 = arith.mulf %57, %61 : vector<8x8xf32>
      %cst_39 = arith.constant dense<0.000000e+00> : vector<8x32xf32>
      %63 = tpu.matmul %62, %51, %cst_39 {dimension_numbers = #tpu.dot_dimension_numbers<[1], [0], [0], [1], [0, 0, 1, 1], [], []>} : vector<8x8xf32>, vector<8x32xf32>, vector<8x32xf32> -> vector<8x32xf32>
      %64 = vector.extract_strided_slice %45 {offsets = [0, 32], sizes = [8, 32], strides = [1, 1]} : vector<8x128xf32> to vector<8x32xf32>
      %65 = vector.extract_strided_slice %48 {offsets = [32, 0], sizes = [32, 8], strides = [1, 1]} : vector<128x8xf32> to vector<32x8xf32>
      %66 = vector.extract_strided_slice %47 {offsets = [0, 32], sizes = [8, 32], strides = [1, 1]} : vector<8x128xf32> to vector<8x32xf32>
      %cst_40 = arith.constant dense<0.000000e+00> : vector<8x8xf32>
      %67 = tpu.matmul %64, %65, %cst_40 {dimension_numbers = #tpu.dot_dimension_numbers<[1], [0], [0], [1], [0, 0, 1, 1], [], []>} : vector<8x32xf32>, vector<32x8xf32>, vector<8x8xf32> -> vector<8x8xf32>
      %cst_41 = arith.constant dense<0xFF800000> : vector<8xf32>
      %68 = vector.multi_reduction <maximumf>, %67, %cst_41 [1] : vector<8x8xf32> to vector<8xf32>
      %69 = vector.shape_cast %68 : vector<8xf32> to vector<8x1xf32>
      %70 = vector.broadcast %69 : vector<8x1xf32> to vector<8x8xf32>
      %71 = arith.subf %67, %70 : vector<8x8xf32>
      %72 = math.exp %71 : vector<8x8xf32>
      %cst_42 = arith.constant dense<0.000000e+00> : vector<8xf32>
      %73 = vector.multi_reduction <add>, %72, %cst_42 [1] : vector<8x8xf32> to vector<8xf32>
      %74 = vector.shape_cast %73 : vector<8xf32> to vector<8x1xf32>
      %75 = tpu.reciprocal %74 {approx = true} : vector<8x1xf32> -> vector<8x1xf32>
      %76 = vector.broadcast %75 : vector<8x1xf32> to vector<8x8xf32>
      %77 = arith.mulf %72, %76 : vector<8x8xf32>
      %cst_43 = arith.constant dense<0.000000e+00> : vector<8x32xf32>
      %78 = tpu.matmul %77, %66, %cst_43 {dimension_numbers = #tpu.dot_dimension_numbers<[1], [0], [0], [1], [0, 0, 1, 1], [], []>} : vector<8x8xf32>, vector<8x32xf32>, vector<8x32xf32> -> vector<8x32xf32>
      %79 = vector.extract_strided_slice %45 {offsets = [0, 64], sizes = [8, 32], strides = [1, 1]} : vector<8x128xf32> to vector<8x32xf32>
      %80 = vector.extract_strided_slice %48 {offsets = [64, 0], sizes = [32, 8], strides = [1, 1]} : vector<128x8xf32> to vector<32x8xf32>
      %81 = vector.extract_strided_slice %47 {offsets = [0, 64], sizes = [8, 32], strides = [1, 1]} : vector<8x128xf32> to vector<8x32xf32>
      %cst_44 = arith.constant dense<0.000000e+00> : vector<8x8xf32>
      %82 = tpu.matmul %79, %80, %cst_44 {dimension_numbers = #tpu.dot_dimension_numbers<[1], [0], [0], [1], [0, 0, 1, 1], [], []>} : vector<8x32xf32>, vector<32x8xf32>, vector<8x8xf32> -> vector<8x8xf32>
      %cst_45 = arith.constant dense<0xFF800000> : vector<8xf32>
      %83 = vector.multi_reduction <maximumf>, %82, %cst_45 [1] : vector<8x8xf32> to vector<8xf32>
      %84 = vector.shape_cast %83 : vector<8xf32> to vector<8x1xf32>
      %85 = vector.broadcast %84 : vector<8x1xf32> to vector<8x8xf32>
      %86 = arith.subf %82, %85 : vector<8x8xf32>
      %87 = math.exp %86 : vector<8x8xf32>
      %cst_46 = arith.constant dense<0.000000e+00> : vector<8xf32>
      %88 = vector.multi_reduction <add>, %87, %cst_46 [1] : vector<8x8xf32> to vector<8xf32>
      %89 = vector.shape_cast %88 : vector<8xf32> to vector<8x1xf32>
      %90 = tpu.reciprocal %89 {approx = true} : vector<8x1xf32> -> vector<8x1xf32>
      %91 = vector.broadcast %90 : vector<8x1xf32> to vector<8x8xf32>
      %92 = arith.mulf %87, %91 : vector<8x8xf32>
      %cst_47 = arith.constant dense<0.000000e+00> : vector<8x32xf32>
      %93 = tpu.matmul %92, %81, %cst_47 {dimension_numbers = #tpu.dot_dimension_numbers<[1], [0], [0], [1], [0, 0, 1, 1], [], []>} : vector<8x8xf32>, vector<8x32xf32>, vector<8x32xf32> -> vector<8x32xf32>
      %94 = vector.extract_strided_slice %45 {offsets = [0, 96], sizes = [8, 32], strides = [1, 1]} : vector<8x128xf32> to vector<8x32xf32>
      %95 = vector.extract_strided_slice %48 {offsets = [96, 0], sizes = [32, 8], strides = [1, 1]} : vector<128x8xf32> to vector<32x8xf32>
      %96 = vector.extract_strided_slice %47 {offsets = [0, 96], sizes = [8, 32], strides = [1, 1]} : vector<8x128xf32> to vector<8x32xf32>
      %cst_48 = arith.constant dense<0.000000e+00> : vector<8x8xf32>
      %97 = tpu.matmul %94, %95, %cst_48 {dimension_numbers = #tpu.dot_dimension_numbers<[1], [0], [0], [1], [0, 0, 1, 1], [], []>} : vector<8x32xf32>, vector<32x8xf32>, vector<8x8xf32> -> vector<8x8xf32>
      %cst_49 = arith.constant dense<0xFF800000> : vector<8xf32>
      %98 = vector.multi_reduction <maximumf>, %97, %cst_49 [1] : vector<8x8xf32> to vector<8xf32>
      %99 = vector.shape_cast %98 : vector<8xf32> to vector<8x1xf32>
      %100 = vector.broadcast %99 : vector<8x1xf32> to vector<8x8xf32>
      %101 = arith.subf %97, %100 : vector<8x8xf32>
      %102 = math.exp %101 : vector<8x8xf32>
      %cst_50 = arith.constant dense<0.000000e+00> : vector<8xf32>
      %103 = vector.multi_reduction <add>, %102, %cst_50 [1] : vector<8x8xf32> to vector<8xf32>
      %104 = vector.shape_cast %103 : vector<8xf32> to vector<8x1xf32>
      %105 = tpu.reciprocal %104 {approx = true} : vector<8x1xf32> -> vector<8x1xf32>
      %106 = vector.broadcast %105 : vector<8x1xf32> to vector<8x8xf32>
      %107 = arith.mulf %102, %106 : vector<8x8xf32>
      %cst_51 = arith.constant dense<0.000000e+00> : vector<8x32xf32>
      %108 = tpu.matmul %107, %96, %cst_51 {dimension_numbers = #tpu.dot_dimension_numbers<[1], [0], [0], [1], [0, 0, 1, 1], [], []>} : vector<8x8xf32>, vector<8x32xf32>, vector<8x32xf32> -> vector<8x32xf32>
      %109 = tpu.concatenate %63, %78, %93, %108 in 1 : vector<8x32xf32>, vector<8x32xf32>, vector<8x32xf32>, vector<8x32xf32> -> vector<8x128xf32>
      %110 = arith.truncf %109 : vector<8x128xf32> to vector<8x128xbf16>
      %c0_52 = arith.constant 0 : index
      %c0_53 = arith.constant 0 : index
      %c0_54 = arith.constant 0 : index
      %111 = vector.load %arg5[%c0_52, %c0_53, %c0_54] : memref<1x128x128xbf16, #tpu.memory_space<vmem>>, vector<1x128x128xbf16>
      %112 = vector.shape_cast %111 : vector<1x128x128xbf16> to vector<128x128xbf16>
      %cst_55 = arith.constant dense<0.000000e+00> : vector<8x128xf32>
      %113 = tpu.matmul %110, %112, %cst_55 {dimension_numbers = #tpu.dot_dimension_numbers<[1], [0], [0], [1], [0, 0, 1, 1], [], []>} : vector<8x128xbf16>, vector<128x128xbf16>, vector<8x128xf32> -> vector<8x128xf32>
      %c0_56 = arith.constant 0 : index
      %c0_57 = arith.constant 0 : index
      %c0_58 = arith.constant 0 : index
      %114 = vector.load %arg6[%c0_56, %c0_57, %c0_58] : memref<1x1x128xf32, #tpu.memory_space<vmem>>, vector<1x1x128xf32>
      %115 = vector.shape_cast %114 : vector<1x1x128xf32> to vector<1x128xf32>
      %116 = vector.broadcast %115 : vector<1x128xf32> to vector<8x128xf32>
      %117 = arith.addf %113, %116 : vector<8x128xf32>
      %118 = arith.addf %34, %117 : vector<8x128xf32>
      %c0_59 = arith.constant 0 : index
      %c0_60 = arith.constant 0 : index
      %c0_61 = arith.constant 0 : index
      %119 = vector.load %arg7[%c0_59, %c0_60, %c0_61] : memref<1x1x128xf32, #tpu.memory_space<vmem>>, vector<1x1x128xf32>
      %120 = vector.shape_cast %119 : vector<1x1x128xf32> to vector<1x128xf32>
      %c0_62 = arith.constant 0 : index
      %c0_63 = arith.constant 0 : index
      %c0_64 = arith.constant 0 : index
      %121 = vector.load %arg8[%c0_62, %c0_63, %c0_64] : memref<1x1x128xf32, #tpu.memory_space<vmem>>, vector<1x1x128xf32>
      %122 = vector.shape_cast %121 : vector<1x1x128xf32> to vector<1x128xf32>
      %cst_65 = arith.constant dense<0.000000e+00> : vector<8xf32>
      %123 = vector.multi_reduction <add>, %118, %cst_65 [1] : vector<8x128xf32> to vector<8xf32>
      %124 = vector.shape_cast %123 : vector<8xf32> to vector<8x1xf32>
      %cst_66 = arith.constant 1.280000e+02 : f32
      %125 = vector.broadcast %cst_66 : f32 to vector<8x1xf32>
      %126 = arith.divf %124, %125 : vector<8x1xf32>
      %127 = vector.broadcast %126 : vector<8x1xf32> to vector<8x128xf32>
      %128 = arith.subf %118, %127 : vector<8x128xf32>
      %129 = arith.mulf %128, %128 : vector<8x128xf32>
      %cst_67 = arith.constant dense<0.000000e+00> : vector<8xf32>
      %130 = vector.multi_reduction <add>, %129, %cst_67 [1] : vector<8x128xf32> to vector<8xf32>
      %131 = vector.shape_cast %130 : vector<8xf32> to vector<8x1xf32>
      %cst_68 = arith.constant 1.280000e+02 : f32
      %132 = vector.broadcast %cst_68 : f32 to vector<8x1xf32>
      %133 = arith.divf %131, %132 : vector<8x1xf32>
      %cst_69 = arith.constant 9.99999974E-6 : f32
      %134 = vector.broadcast %cst_69 : f32 to vector<8x1xf32>
      %135 = arith.addf %133, %134 : vector<8x1xf32>
      %136 = math.rsqrt %135 : vector<8x1xf32>
      %137 = vector.broadcast %136 : vector<8x1xf32> to vector<8x128xf32>
      %138 = arith.mulf %128, %137 : vector<8x128xf32>
      %139 = vector.broadcast %120 : vector<1x128xf32> to vector<8x128xf32>
      %140 = arith.mulf %138, %139 : vector<8x128xf32>
      %141 = vector.broadcast %122 : vector<1x128xf32> to vector<8x128xf32>
      %142 = arith.addf %140, %141 : vector<8x128xf32>
      %c0_70 = arith.constant 0 : index
      %c0_71 = arith.constant 0 : index
      %143 = vector.load %arg16[%c0_70, %c0_71] : memref<8x128xf32, #tpu.memory_space<vmem>>, vector<8x128xf32>
      tpu.vector_store %arg16[%c0_70, %c0_71], %142 {strides = array<i32>} : memref<8x128xf32, #tpu.memory_space<vmem>>, vector<8x128xf32>,
      %cst_72 = arith.constant 0.000000e+00 : f32
      %144 = vector.broadcast %cst_72 : f32 to vector<8x128xf32>
      %c0_73 = arith.constant 0 : index
      %c0_74 = arith.constant 0 : index
      %145 = vector.load %arg17[%c0_73, %c0_74] : memref<8x128xf32, #tpu.memory_space<vmem>>, vector<8x128xf32>
      tpu.vector_store %arg17[%c0_73, %c0_74], %144 {strides = array<i32>} : memref<8x128xf32, #tpu.memory_space<vmem>>, vector<8x128xf32>,
    } else {
    }
    %c0 = arith.constant 0 : index
    %c0_4 = arith.constant 0 : index
    %8 = vector.load %arg16[%c0, %c0_4] : memref<8x128xf32, #tpu.memory_space<vmem>>, vector<8x128xf32>
    %9 = arith.truncf %8 : vector<8x128xf32> to vector<8x128xbf16>
    %c0_5 = arith.constant 0 : index
    %c0_6 = arith.constant 0 : index
    %c0_7 = arith.constant 0 : index
    %c0_8 = arith.constant 0 : index
    %10 = vector.load %arg11[%c0_5, %c0_6, %c0_7, %c0_8] : memref<1x1x128x2048xbf16, #tpu.memory_space<vmem>>, vector<1x1x128x2048xbf16>
    %11 = vector.shape_cast %10 : vector<1x1x128x2048xbf16> to vector<128x2048xbf16>
    %cst = arith.constant dense<0.000000e+00> : vector<8x2048xf32>
    %12 = tpu.matmul %9, %11, %cst {dimension_numbers = #tpu.dot_dimension_numbers<[1], [0], [0], [1], [0, 0, 1, 1], [], []>} : vector<8x128xbf16>, vector<128x2048xbf16>, vector<8x2048xf32> -> vector<8x2048xf32>
    %c0_9 = arith.constant 0 : index
    %c0_10 = arith.constant 0 : index
    %c0_11 = arith.constant 0 : index
    %c0_12 = arith.constant 0 : index
    %13 = vector.load %arg12[%c0_9, %c0_10, %c0_11, %c0_12] : memref<1x1x1x2048xf32, #tpu.memory_space<vmem>>, vector<1x1x1x2048xf32>
    %14 = vector.shape_cast %13 : vector<1x1x1x2048xf32> to vector<1x2048xf32>
    %15 = vector.broadcast %14 : vector<1x2048xf32> to vector<8x2048xf32>
    %16 = arith.addf %12, %15 : vector<8x2048xf32>
    %cst_13 = arith.constant 0.000000e+00 : f32
    %17 = vector.broadcast %cst_13 : f32 to vector<8x2048xf32>
    %18 = arith.maximumf %16, %17 : vector<8x2048xf32>
    %c0_14 = arith.constant 0 : index
    %c0_15 = arith.constant 0 : index
    %19 = vector.load %arg17[%c0_14, %c0_15] : memref<8x128xf32, #tpu.memory_space<vmem>>, vector<8x128xf32>
    %20 = arith.truncf %18 : vector<8x2048xf32> to vector<8x2048xbf16>
    %c0_16 = arith.constant 0 : index
    %c0_17 = arith.constant 0 : index
    %c0_18 = arith.constant 0 : index
    %21 = vector.load %arg13[%c0_16, %c0_17, %c0_18] : memref<1x2048x128xbf16, #tpu.memory_space<vmem>>, vector<1x2048x128xbf16>
    %22 = vector.shape_cast %21 : vector<1x2048x128xbf16> to vector<2048x128xbf16>
    %cst_19 = arith.constant dense<0.000000e+00> : vector<8x128xf32>
    %23 = tpu.matmul %20, %22, %cst_19 {dimension_numbers = #tpu.dot_dimension_numbers<[1], [0], [0], [1], [0, 0, 1, 1], [], []>} : vector<8x2048xbf16>, vector<2048x128xbf16>, vector<8x128xf32> -> vector<8x128xf32>
    %24 = arith.addf %19, %23 : vector<8x128xf32>
    %c0_20 = arith.constant 0 : index
    %c0_21 = arith.constant 0 : index
    %25 = vector.load %arg17[%c0_20, %c0_21] : memref<8x128xf32, #tpu.memory_space<vmem>>, vector<8x128xf32>
    tpu.vector_store %arg17[%c0_20, %c0_21], %24 {strides = array<i32>} : memref<8x128xf32, #tpu.memory_space<vmem>>, vector<8x128xf32>,
    %c0_i32_22 = arith.constant 0 : i32
    %26 = arith.cmpi eq, %arg1, %c0_i32_22 : i32
    %27 = arith.extui %26 : i1 to i32
    %c0_i32_23 = arith.constant 0 : i32
    %28 = arith.cmpi ne, %27, %c0_i32_23 : i32
    scf.if %28 {
      %c0_26 = arith.constant 0 : index
      %c0_27 = arith.constant 0 : index
      %34 = vector.load %arg16[%c0_26, %c0_27] : memref<8x128xf32, #tpu.memory_space<vmem>>, vector<8x128xf32>
      %c0_28 = arith.constant 0 : index
      %c0_29 = arith.constant 0 : index
      %35 = vector.load %arg17[%c0_28, %c0_29] : memref<8x128xf32, #tpu.memory_space<vmem>>, vector<8x128xf32>
      %36 = arith.addf %34, %35 : vector<8x128xf32>
      %c0_30 = arith.constant 0 : index
      %c0_31 = arith.constant 0 : index
      %c0_32 = arith.constant 0 : index
      %37 = vector.load %arg14[%c0_30, %c0_31, %c0_32] : memref<1x1x128xf32, #tpu.memory_space<vmem>>, vector<1x1x128xf32>
      %38 = vector.shape_cast %37 : vector<1x1x128xf32> to vector<1x128xf32>
      %39 = vector.broadcast %38 : vector<1x128xf32> to vector<8x128xf32>
      %40 = arith.addf %36, %39 : vector<8x128xf32>
      %c0_33 = arith.constant 0 : index
      %c0_34 = arith.constant 0 : index
      %c0_35 = arith.constant 0 : index
      %41 = vector.load %arg9[%c0_33, %c0_34, %c0_35] : memref<1x1x128xf32, #tpu.memory_space<vmem>>, vector<1x1x128xf32>
      %42 = vector.shape_cast %41 : vector<1x1x128xf32> to vector<1x128xf32>
      %c0_36 = arith.constant 0 : index
      %c0_37 = arith.constant 0 : index
      %c0_38 = arith.constant 0 : index
      %43 = vector.load %arg10[%c0_36, %c0_37, %c0_38] : memref<1x1x128xf32, #tpu.memory_space<vmem>>, vector<1x1x128xf32>
      %44 = vector.shape_cast %43 : vector<1x1x128xf32> to vector<1x128xf32>
      %cst_39 = arith.constant dense<0.000000e+00> : vector<8xf32>
      %45 = vector.multi_reduction <add>, %40, %cst_39 [1] : vector<8x128xf32> to vector<8xf32>
      %46 = vector.shape_cast %45 : vector<8xf32> to vector<8x1xf32>
      %cst_40 = arith.constant 1.280000e+02 : f32
      %47 = vector.broadcast %cst_40 : f32 to vector<8x1xf32>
      %48 = arith.divf %46, %47 : vector<8x1xf32>
      %49 = vector.broadcast %48 : vector<8x1xf32> to vector<8x128xf32>
      %50 = arith.subf %40, %49 : vector<8x128xf32>
      %51 = arith.mulf %50, %50 : vector<8x128xf32>
      %cst_41 = arith.constant dense<0.000000e+00> : vector<8xf32>
      %52 = vector.multi_reduction <add>, %51, %cst_41 [1] : vector<8x128xf32> to vector<8xf32>
      %53 = vector.shape_cast %52 : vector<8xf32> to vector<8x1xf32>
      %cst_42 = arith.constant 1.280000e+02 : f32
      %54 = vector.broadcast %cst_42 : f32 to vector<8x1xf32>
      %55 = arith.divf %53, %54 : vector<8x1xf32>
      %cst_43 = arith.constant 9.99999974E-6 : f32
      %56 = vector.broadcast %cst_43 : f32 to vector<8x1xf32>
      %57 = arith.addf %55, %56 : vector<8x1xf32>
      %58 = math.rsqrt %57 : vector<8x1xf32>
      %59 = vector.broadcast %58 : vector<8x1xf32> to vector<8x128xf32>
      %60 = arith.mulf %50, %59 : vector<8x128xf32>
      %61 = vector.broadcast %42 : vector<1x128xf32> to vector<8x128xf32>
      %62 = arith.mulf %60, %61 : vector<8x128xf32>
      %63 = vector.broadcast %44 : vector<1x128xf32> to vector<8x128xf32>
      %64 = arith.addf %62, %63 : vector<8x128xf32>
      %c0_44 = arith.constant 0 : index
      %c0_45 = arith.constant 0 : index
      %65 = vector.load %arg16[%c0_44, %c0_45] : memref<8x128xf32, #tpu.memory_space<vmem>>, vector<8x128xf32>
      tpu.vector_store %arg16[%c0_44, %c0_45], %64 {strides = array<i32>} : memref<8x128xf32, #tpu.memory_space<vmem>>, vector<8x128xf32>,
    } else {
    }
    %c0_i32_24 = arith.constant 0 : i32
    %29 = arith.cmpi eq, %arg1, %c0_i32_24 : i32
    %c1_i32 = arith.constant 1 : i32
    %30 = arith.cmpi eq, %arg0, %c1_i32 : i32
    %31 = arith.andi %29, %30 : i1
    %32 = arith.extui %31 : i1 to i32
    %c0_i32_25 = arith.constant 0 : i32
    %33 = arith.cmpi ne, %32, %c0_i32_25 : i32
    scf.if %33 {
      %c0_26 = arith.constant 0 : index
      %c0_27 = arith.constant 0 : index
      %34 = vector.load %arg16[%c0_26, %c0_27] : memref<8x128xf32, #tpu.memory_space<vmem>>, vector<8x128xf32>
      %c0_28 = arith.constant 0 : index
      %c0_29 = arith.constant 0 : index
      %35 = vector.load %arg15[%c0_28, %c0_29] : memref<8x128xf32, #tpu.memory_space<vmem>>, vector<8x128xf32>
      tpu.vector_store %arg15[%c0_28, %c0_29], %34 {strides = array<i32>} : memref<8x128xf32, #tpu.memory_space<vmem>>, vector<8x128xf32>,
    } else {
    }
    return
  }
  func.func @transform_0(%arg0: i32, %arg1: i32) -> (i32, i32) {
    %c0_i32 = arith.constant 0 : i32
    %c0_i32_0 = arith.constant 0 : i32
    %c0_i32_1 = arith.constant 0 : i32
    return %c0_i32, %c0_i32_0 : i32, i32
  }
  func.func @transform_1(%arg0: i32, %arg1: i32) -> (i32, i32, i32) {
    %c0_i32 = arith.constant 0 : i32
    %c0_i32_0 = arith.constant 0 : i32
    %c0_i32_1 = arith.constant 0 : i32
    return %arg0, %c0_i32, %c0_i32_0 : i32, i32, i32
  }
  func.func @transform_2(%arg0: i32, %arg1: i32) -> (i32, i32, i32) {
    %c0_i32 = arith.constant 0 : i32
    %c0_i32_0 = arith.constant 0 : i32
    %c0_i32_1 = arith.constant 0 : i32
    return %arg0, %c0_i32, %c0_i32_0 : i32, i32, i32
  }
  func.func @transform_3(%arg0: i32, %arg1: i32) -> (i32, i32, i32) {
    %c0_i32 = arith.constant 0 : i32
    %c0_i32_0 = arith.constant 0 : i32
    %c0_i32_1 = arith.constant 0 : i32
    return %arg0, %c0_i32, %c0_i32_0 : i32, i32, i32
  }
  func.func @transform_4(%arg0: i32, %arg1: i32) -> (i32, i32, i32) {
    %c0_i32 = arith.constant 0 : i32
    %c0_i32_0 = arith.constant 0 : i32
    %c0_i32_1 = arith.constant 0 : i32
    return %arg0, %c0_i32, %c0_i32_0 : i32, i32, i32
  }
  func.func @transform_5(%arg0: i32, %arg1: i32) -> (i32, i32, i32) {
    %c0_i32 = arith.constant 0 : i32
    %c0_i32_0 = arith.constant 0 : i32
    %c0_i32_1 = arith.constant 0 : i32
    return %arg0, %c0_i32, %c0_i32_0 : i32, i32, i32
  }
  func.func @transform_6(%arg0: i32, %arg1: i32) -> (i32, i32, i32) {
    %c0_i32 = arith.constant 0 : i32
    %c0_i32_0 = arith.constant 0 : i32
    %c0_i32_1 = arith.constant 0 : i32
    return %arg0, %c0_i32, %c0_i32_0 : i32, i32, i32
  }
  func.func @transform_7(%arg0: i32, %arg1: i32) -> (i32, i32, i32) {
    %c0_i32 = arith.constant 0 : i32
    %c0_i32_0 = arith.constant 0 : i32
    %c0_i32_1 = arith.constant 0 : i32
    return %arg0, %c0_i32, %c0_i32_0 : i32, i32, i32
  }
  func.func @transform_8(%arg0: i32, %arg1: i32) -> (i32, i32, i32) {
    %c0_i32 = arith.constant 0 : i32
    %c0_i32_0 = arith.constant 0 : i32
    %c0_i32_1 = arith.constant 0 : i32
    return %arg0, %c0_i32, %c0_i32_0 : i32, i32, i32
  }
  func.func @transform_9(%arg0: i32, %arg1: i32) -> (i32, i32, i32, i32) {
    %c0_i32 = arith.constant 0 : i32
    %c0_i32_0 = arith.constant 0 : i32
    %c0_i32_1 = arith.constant 0 : i32
    return %arg0, %arg1, %c0_i32, %c0_i32_0 : i32, i32, i32, i32
  }
  func.func @transform_10(%arg0: i32, %arg1: i32) -> (i32, i32, i32, i32) {
    %c0_i32 = arith.constant 0 : i32
    %c0_i32_0 = arith.constant 0 : i32
    %c0_i32_1 = arith.constant 0 : i32
    return %arg0, %arg1, %c0_i32, %c0_i32_0 : i32, i32, i32, i32
  }
  func.func @transform_11(%arg0: i32, %arg1: i32) -> (i32, i32, i32) {
    %c0_i32 = arith.constant 0 : i32
    %c0_i32_0 = arith.constant 0 : i32
    return %arg0, %arg1, %c0_i32 : i32, i32, i32
  }
  func.func @transform_12(%arg0: i32, %arg1: i32) -> (i32, i32, i32) {
    %c0_i32 = arith.constant 0 : i32
    %c0_i32_0 = arith.constant 0 : i32
    %c0_i32_1 = arith.constant 0 : i32
    return %arg0, %c0_i32, %c0_i32_0 : i32, i32, i32
  }
  func.func @transform_13(%arg0: i32, %arg1: i32) -> (i32, i32) {
    %c0_i32 = arith.constant 0 : i32
    %c0_i32_0 = arith.constant 0 : i32
    %c0_i32_1 = arith.constant 0 : i32
    return %c0_i32, %c0_i32_0 : i32, i32
  }
}

</mosaic_0001>

<bundles_post_ra>
// kernel: tpu_custom_call.1
= control target key start
LH: loop header
LB: loop body
LE: loop exit
PB: predicated region body
PF: predicated region fallthrough
CT: control target
= control target key end

     0   :  { %s7156_s0 = inlined_call_operand.hbm [shape: f32[8,128], index: 0, kind: input, shape index: {}]   ;;  %s7157_s1 = inlined_call_operand.hbm [shape: bf16[2,128,384], index: 1, kind: input, shape index: {}]   ;;  %s7158_s2 = inlined_call_operand.hbm [shape: f32[2,1,384], index: 2, kind: input, shape index: {}]   ;;  %s7159_s3 = inlined_call_operand.hbm [shape: bf16[2,128,128], index: 3, kind: input, shape index: {}]   ;;  %s7160_s4 = inlined_call_operand.vmem [shape: f32[2,1,128], index: 4, kind: input, shape index: {}]   ;;  %s7161_s5 = inlined_call_operand.vmem [shape: f32[2,1,128], index: 5, kind: input, shape index: {}]   ;;  %s7162_s6 = inlined_call_operand.hbm [shape: f32[2,1,128], index: 6, kind: input, shape index: {}]   ;;  %s7163_s7 = inlined_call_operand.hbm [shape: f32[2,1,128], index: 7, kind: input, shape index: {}]   ;;  %s7164_s8 = inlined_call_operand.hbm [shape: f32[2,1,128], index: 8, kind: input, shape index: {}]   ;;  %s7165_s9 = inlined_call_operand.hbm [shape: bf16[2,1,128,2048], index: 9, kind: input, shape index: {}]   ;;  %s7166_s10 = inlined_call_operand.vmem [shape: f32[2,1,1,2048], index: 10, kind: input, shape index: {}]   ;;  %s7167_s11 = inlined_call_operand.hbm [shape: bf16[2,2048,128], index: 11, kind: input, shape index: {}]   ;;  %s7168_s12 = inlined_call_operand.vmem [shape: f32[2,1,128], index: 12, kind: input, shape index: {}]   ;;  %s7169_s13 = inlined_call_operand.hbm [shape: f32[8,128], index: 13, kind: output, shape index: {}]  }
   0x1   :  { %7191 = sst [smem:[#allocation34_spill]] %s7157_s1 }
   0x2   :  { %7192 = sst [smem:[#allocation35_spill]] %s7159_s3 }
   0x3   :  { %7193 = sst [smem:[#allocation36_spill]] %s7160_s4 }
   0x4   :  { %7194 = sst [smem:[#allocation37_spill]] %s7161_s5 }
   0x5   :  { %7195 = sst [smem:[#allocation38_spill]] %s7163_s7 }
   0x6   :  { %7196 = sst [smem:[#allocation39_spill]] %s7165_s9 }
   0x7   :  { %7197 = sst [smem:[#allocation40_spill]] %s7166_s10 }
   0x8   :  { %7198 = sst [smem:[#allocation41_spill]] %s7168_s12 }
   0x9   :  { %7199 = sst [smem:[#allocation42_spill]] %s7169_s13 }
   0xa   :  { %18 = vsyncpa [#allocation5], 0 }
   0xb   :  { %19 = vsyncpa [#allocation8], 0 }
   0xc   :  { %21 = vsyncpa [#allocation8 + $0x1], 0 }
   0xd   :  { %22 = vsyncpa [#allocation11], 0 }
   0xe   :  { %24 = vsyncpa [#allocation11 + $0x1], 0 }
   0xf   :  { %25 = vsyncpa [#allocation14], 0 }
  0x10   :  { %27 = vsyncpa [#allocation14 + $0x1], 0 }
  0x11   :  { %28 = vsyncpa [#allocation17], 0 }
  0x12   :  { %30 = vsyncpa [#allocation17 + $0x1], 0 }
  0x13   :  { %31 = vsyncpa [#allocation6], 0  ;;  %s6174_s25 = smov 0   ;;  %s6176_s26 = smov 0  }
  0x14   :  { %s6178_s27 = smov 0   ;;  %s6180_s28 = smov 0  }
  0x15   :  { %s6182_s29 = smov 0   ;;  %s6184_s30 = smov 0  }
  0x16 LB: > { %7200 = sst [smem:[#allocation26_spill]] %s6065_s26  ;;  %s49_s14 = sadd.s32 1, %s6077_s29  ;;  %s6081_s30 = sphi %s6184_s30, %s37_s30   ;;  %s6077_s29 = sphi %s6182_s29, %s7253_s29   ;;  %s6073_s28 = sphi %s6180_s28, %s7252_s28   ;;  %s6069_s27 = sphi %s6178_s27, %s7251_s27   ;;  %s6065_s26 = sphi %s6176_s26, %s7250_s26   ;;  %s6061_s25 = sphi %s6174_s25, %s7249_s25  }
  0x17   : > { %7201 = sst [smem:[#allocation27_spill]] %s6069_s27  ;;  %s77_s15 = sadd.s32 1, %s6069_s27 }
  0x18   : > { %7202 = sst [smem:[#allocation28_spill]] %s6073_s28  ;;  %p51_p0 = scmp.ge.s32.totalorder %s49_s14, 2 }
  0x19   : > { %7203 = sst [smem:[#allocation29_spill]] %s6077_s29  ;;  %p84_p1 = scmp.ne.s32.totalorder %s6069_s27, %s6065_s26 }
  0x1a   : > { %7204 = sst [smem:[#allocation30_spill]] %s6081_s30  ;;  %p85_p2 = scmp.eq.s32.totalorder %s6081_s30, 0 }
  0x1b   : > { %s7255_s14 = smov (%p51_p0, %s49_s14), 0  ;;  %p5464_p4 = scmp.lt.s32.totalorder %s6081_s30, 2 }
  0x1c   : > { %7205 = sst [smem:[#allocation31_spill]] %s7255_s14  ;;  %p86_p3 = por %p85_p2, %p84_p1 }
  0x1d   : > { %s74_s16 = ssub.s32 %s6077_s29, %s7255_s14  ;;  %s6215_s17 = sand.u32 1, %s6081_s30  }
  0x1e   : > { %p75_p5 = scmp.eq.s32.totalorder %s74_s16, 0  ;;  %s6218_s18 = sand.u32 1, %s6069_s27  }
  0x1f   : > { %s5405_s19 = smul.u32 3072, %s6077_s29  ;;  %s7207_s1 = sld [smem:[#allocation34_spill]] }
  0x20   : > { %s6222_s20 = scalar_select %p75_p5, %s6069_s27, %s77_s15  }
  0x21   : > { %s5404_s21 = smul.u32 192, %s6218_s18  ;;  %p6230_p6 = pnand %p5464_p4, %p86_p3 }
  0x22   : > { %7206 = sst [smem:[#allocation32_spill]] %s6222_s20 }
  0x23   : > { %s7208_s14 = scalar_select %p6230_p6, 1, 0 }
  0x24   : > { %s442_s16 = scalar_lea.vmem [#allocation7], %s5404_s21  ;;  %p6241_p8 = pneg %p6230_p6 }
  0x25   : > { %s6228_s24 = scalar_lea.hbm %s7207_s1, %s5405_s19  ;;  %s449_s13 = sshll.u32 %s442_s16, 4  ;;  %s6234_s13 = int_to_ptr.vmem [resolvable:$true] %s449_s13 }
  0x26   : > { %s5717_s20 = scalar_lea.hbm %s6228_s24, 3072  ;;  %s5722_s27 = scalar_lea.hbm %s7207_s1, 6144 }
  0x27   : > { %p5718_p7 = scmp.ne.s32.totalorder %s6228_s24, %s5717_s20  ;;  %p5723_p11 = scmp.lt.u32.totalorder %s6228_s24, %s7207_s1 }
  0x28   : > { %s7209_s19 = scalar_select %p6241_p8, 1, 0 }
  0x29   : > { %p5720_p9 = pnand %p6241_p8, %p5718_p7  ;;  %p5724_p12 = scmp.lt.u32.totalorder %s5722_s27, %s5717_s20 }
  0x2a   : > { %p5726_p0 = scmp.lt.u32.totalorder %s5717_s20, %s6228_s24 }
  0x2b   : > { %p5721_p10 = pneg %p5720_p9  ;;  %p5725_p13 = por %p5724_p12, %p5723_p11 }
  0x2d   : > { %p5727_p1 = por %p5726_p0, %p5725_p13 }
  0x2f   : > { %p5728_p2 = pnand %p5727_p1, %p5721_p10 }
  0x31   : > { %5731 = shalt.err (!%p5728_p2)
}
  0x32   : > { %s5732_s15 = scalar_lea.vmem %s6234_s13, 3072  ;;  %s6083_s22 = smov [#allocation7]  }
  0x33   : > { %p5733_p3 = scmp.ne.s32.totalorder %s6234_s13, %s5732_s15  ;;  %s5737_s23 = sshll.u32 %s6083_s22, 4  ;;  %s5738_s23 = int_to_ptr.vmem [resolvable:$false] %s5737_s23 }
  0x34   : > { %s5739_s21 = scalar_lea.vmem %s5738_s23, 6144  ;;  %p5740_p7 = scmp.lt.s32.totalorder %s6234_s13, %s5738_s23 }
  0x35   : > { %p5735_p4 = pnand %p5733_p3, %p6241_p8  ;;  %p5741_p9 = scmp.lt.s32.totalorder %s5739_s21, %s5732_s15 }
  0x37   : > { %p5736_p5 = pneg %p5735_p4  ;;  %p5742_p11 = por %p5741_p9, %p5740_p7 }
  0x39   : > { %p5743_p12 = pnand %p5742_p11, %p5736_p5 }
  0x3b   : > { %5746 = shalt.err (!%p5743_p12)
}
  0x3c   : > { %s6084_s27 = smov 192   ;;  %s6085_s20 = smov 12  }
  0x3d   : > { %s7210_s16 = scalar_lea.sflag [#allocation8], %s6215_s17  ;;  %s4779_s22 = sshll.u32 %s6218_s18, 6 }
  0x3e   : > { %5441 = dma.hbm_to_vmem [thread:$0]  (!%p6230_p6), %s6228_s24, 3072, %s6234_s13, %s7210_s16, %s6084_s27, %s6084_s27, %s6085_s20  }
  0x3f   : > { %s5109_s1 = sshll.u32 %s6077_s29, 10  ;;  %s7211_s3 = sld [smem:[#allocation35_spill]] }
  0x40   : > { %s482_s10 = scalar_lea.vmem [#allocation10], %s4779_s22  ;;  %s7174_s5 = scalar_lea.sflag [#allocation11], %s6215_s17 }
  0x41   : > { %s489_s12 = sshll.u32 %s482_s10, 4  ;;  %s6273_s12 = int_to_ptr.vmem [resolvable:$true] %s489_s12 }
  0x45   : > { %s6271_s21 = scalar_lea.hbm %s7211_s3, %s5109_s1  ;;  %s5752_s27 = scalar_lea.hbm %s7211_s3, 2048 }
  0x46   : > { %s5747_s4 = scalar_lea.hbm %s6271_s21, 1024  ;;  %p5753_p1 = scmp.lt.u32.totalorder %s6271_s21, %s7211_s3 }
  0x47   : > { %p5748_p10 = scmp.ne.s32.totalorder %s6271_s21, %s5747_s4  ;;  %p5754_p2 = scmp.lt.u32.totalorder %s5752_s27, %s5747_s4 }
  0x48   : > { %p5756_p4 = scmp.lt.u32.totalorder %s5747_s4, %s6271_s21 }
  0x49   : > { %p5750_p13 = pnand %p5748_p10, %p6241_p8  ;;  %p5755_p3 = por %p5754_p2, %p5753_p1 }
  0x4b   : > { %p5751_p0 = pneg %p5750_p13  ;;  %p5757_p5 = por %p5756_p4, %p5755_p3 }
  0x4d   : > { %p5758_p7 = pnand %p5757_p5, %p5751_p0 }
  0x4f   : > { %5761 = shalt.err (!%p5758_p7)
}
  0x50   : > { %s5762_s10 = scalar_lea.vmem %s6273_s12, 1024  ;;  %s6086_s16 = smov [#allocation10]  }
  0x51   : > { %p5763_p9 = scmp.ne.s32.totalorder %s6273_s12, %s5762_s10  ;;  %s5767_s22 = sshll.u32 %s6086_s16, 4  ;;  %s5768_s22 = int_to_ptr.vmem [resolvable:$false] %s5767_s22 }
  0x52   : > { %s5769_s23 = scalar_lea.vmem %s5768_s22, 2048  ;;  %p5770_p10 = scmp.lt.s32.totalorder %s6273_s12, %s5768_s22 }
  0x53   : > { %p5765_p11 = pnand %p5763_p9, %p6241_p8  ;;  %p5771_p13 = scmp.lt.s32.totalorder %s5769_s23, %s5762_s10 }
  0x55   : > { %p5766_p12 = pneg %p5765_p11  ;;  %p5772_p1 = por %p5771_p13, %p5770_p10 }
  0x57   : > { %p5773_p2 = pnand %p5772_p1, %p5766_p12 }
  0x59   : > { %5776 = shalt.err (!%p5773_p2)
}
  0x5a   : > { %s7177_s4 = smov 64   ;;  %s7173_s15 = smov 4  }
  0x5b   : > { %5447 = dma.hbm_to_vmem [thread:$0]  (!%p6230_p6), %s6271_s21, 1024, %s6273_s12, %s7174_s5, %s7177_s4, %s7177_s4, %s7173_s15  }
  0x5c   : > { %s6303_s13 = sshll.u32 %s6077_s29, 4  ;;  %s7212_s7 = sld [smem:[#allocation38_spill]] }
  0x5d   : > { %s531_s20 = scalar_lea.vmem [#allocation13], %s6218_s18  ;;  %s4785_s16 = sshll.u32 %s6218_s18, 10 }
  0x5e   : > { %s538_s10 = sshll.u32 %s531_s20, 4  ;;  %s7175_s22 = scalar_lea.sflag [#allocation14], %s6215_s17  ;;  %s6312_s10 = int_to_ptr.vmem [resolvable:$true] %s538_s10 }
  0x62   : > { %s6309_s1 = scalar_lea.hbm %s7212_s7, %s6303_s13  ;;  %s5782_s24 = scalar_lea.hbm %s7212_s7, 32 }
  0x63   : > { %s5777_s23 = scalar_lea.hbm %s6309_s1, 16  ;;  %p5783_p5 = scmp.lt.u32.totalorder %s6309_s1, %s7212_s7 }
  0x64   : > { %p5778_p0 = scmp.ne.s32.totalorder %s6309_s1, %s5777_s23  ;;  %p5784_p7 = scmp.lt.u32.totalorder %s5782_s24, %s5777_s23 }
  0x65   : > { %p5786_p11 = scmp.lt.u32.totalorder %s5777_s23, %s6309_s1 }
  0x66   : > { %p5780_p3 = pnand %p5778_p0, %p6241_p8  ;;  %p5785_p9 = por %p5784_p7, %p5783_p5 }
  0x68   : > { %p5781_p4 = pneg %p5780_p3  ;;  %p5787_p12 = por %p5786_p11, %p5785_p9 }
  0x6a   : > { %p5788_p10 = pnand %p5787_p12, %p5781_p4 }
  0x6c   : > { %5791 = shalt.err (!%p5788_p10)
}
  0x6d   : > { %s5792_s20 = scalar_lea.vmem %s6312_s10, 16  ;;  %s6089_s12 = smov [#allocation13]  }
  0x6e   : > { %p5793_p13 = scmp.ne.s32.totalorder %s6312_s10, %s5792_s20  ;;  %s5797_s21 = sshll.u32 %s6089_s12, 4  ;;  %s5798_s21 = int_to_ptr.vmem [resolvable:$false] %s5797_s21 }
  0x6f   : > { %s5799_s15 = scalar_lea.vmem %s5798_s21, 32  ;;  %p5800_p0 = scmp.lt.s32.totalorder %s6312_s10, %s5798_s21 }
  0x70   : > { %p5795_p1 = pnand %p5793_p13, %p6241_p8  ;;  %p5801_p3 = scmp.lt.s32.totalorder %s5799_s15, %s5792_s20 }
  0x72   : > { %p5796_p2 = pneg %p5795_p1  ;;  %p5802_p5 = por %p5801_p3, %p5800_p0 }
  0x74   : > { %p5803_p7 = pnand %p5802_p5, %p5796_p2 }
  0x76   : > { %5806 = shalt.err (!%p5803_p7)
}
  0x77   : > { %5453 = dma.hbm_to_vmem [thread:$0]  (!%p6230_p6), %s6309_s1, 16, %s6312_s10, %s7175_s22  }
  0x78   : > { %s5110_s23 = sshll.u32 %s6077_s29, 14  ;;  %s7213_s9 = sld [smem:[#allocation39_spill]] }
  0x79   : > { %s566_s12 = scalar_lea.vmem [#allocation16], %s4785_s16  ;;  %s7176_s15 = scalar_lea.sflag [#allocation17], %s6215_s17 }
  0x7a   : > { %s575_s21 = sshll.u32 %s566_s12, 4  ;;  %s6349_s21 = int_to_ptr.vmem [resolvable:$true] %s575_s21 }
  0x7e   : > { %s6345_s20 = scalar_lea.hbm %s7213_s9, %s5110_s23  ;;  %s5812_s24 = scalar_lea.hbm %s7213_s9, 32768 }
  0x7f   : > { %s5807_s5 = scalar_lea.hbm %s6345_s20, 16384  ;;  %p5813_p12 = scmp.lt.u32.totalorder %s6345_s20, %s7213_s9 }
  0x80   : > { %p5808_p4 = scmp.ne.s32.totalorder %s6345_s20, %s5807_s5  ;;  %p5814_p10 = scmp.lt.u32.totalorder %s5812_s24, %s5807_s5 }
  0x81   : > { %p5816_p1 = scmp.lt.u32.totalorder %s5807_s5, %s6345_s20 }
  0x82   : > { %p5810_p9 = pnand %p5808_p4, %p6241_p8  ;;  %p5815_p13 = por %p5814_p10, %p5813_p12 }
  0x84   : > { %p5811_p11 = pneg %p5810_p9  ;;  %p5817_p2 = por %p5816_p1, %p5815_p13 }
  0x86   : > { %p5818_p0 = pnand %p5817_p2, %p5811_p11 }
  0x88   : > { %5821 = shalt.err (!%p5818_p0)
}
  0x89   : > { %s5822_s12 = scalar_lea.vmem %s6349_s21, 16384  ;;  %s6090_s1 = smov [#allocation16]  }
  0x8a   : > { %p5823_p3 = scmp.ne.s32.totalorder %s6349_s21, %s5822_s12  ;;  %s5827_s10 = sshll.u32 %s6090_s1, 4  ;;  %s5828_s10 = int_to_ptr.vmem [resolvable:$false] %s5827_s10 }
  0x8b   : > { %s5829_s22 = scalar_lea.vmem %s5828_s10, 32768  ;;  %p5830_p4 = scmp.lt.s32.totalorder %s6349_s21, %s5828_s10 }
  0x8c   : > { %p5825_p5 = pnand %p5823_p3, %p6241_p8  ;;  %p5831_p9 = scmp.lt.s32.totalorder %s5829_s22, %s5822_s12 }
  0x8e   : > { %p5826_p7 = pneg %p5825_p5  ;;  %p5832_p12 = por %p5831_p9, %p5830_p4 }
  0x90   : > { %p5833_p10 = pnand %p5832_p12, %p5826_p7 }
  0x92   : > { %5836 = shalt.err (!%p5833_p10)
}
  0x93   : > { %s6091_s5 = smov 1024   ;;  %s6381_s12 = scalar_lea.hbm %s7167_s11, %s5110_s23 }
  0x94   : > { %5459 = dma.hbm_to_vmem [thread:$0]  (!%p6230_p6), %s6345_s20, 16384, %s6349_s21, %s7176_s15, %s6091_s5, %s6091_s5, %s7177_s4  }
  0x95   : > { %s6385_s1 = scalar_lea.vmem [#allocation18], %s4785_s16  ;;  %s6389_s22 = sadd.s32 4294967295, %s6081_s30  }
  0x96   : > { %p90_p11 = scmp.ne.s32.totalorder %s6065_s26, %s6061_s25  ;;  %p7184_p13 = scmp.eq.s32.totalorder %s6389_s22, 0 }
  0x97   : > { %p4774_p1 = scmp.ge.s32.totalorder %s6081_s30, 1  ;;  %p414_p2 = scmp.lt.s32.totalorder %s6081_s30, 3 }
  0x98   : > { %p6398_p0 = por %p7184_p13, %p90_p11  ;;  %s6092_s23 = smov [#allocation4]  }
  0x99   : > { %p6402_p3 = pnand %p4774_p1, %p414_p2  ;;  %s427_s21 = sshll.u32 %s6092_s23, 4  ;;  %s428_s21 = int_to_ptr.vmem [resolvable:$true] %s427_s21 }
  0x9a   : > { %s7214_s20 = scalar_select %p6398_p0, 1, 0 }
  0x9b   : > { %s7216_s16 = scalar_select %p6402_p3, 1, 0 }
  0x9c   : > { %7215 = sst [smem:[#allocation33_spill]] %s7214_s20  ;;  %s5406_s5 = smul.u32 3, %s6218_s18 }
  0x9d   : > { %p5434_p5 = pneg %p6402_p3  ;;  %s5407_s25 = smul.u32 48, %s6077_s29 }
  0x9e   : > { %s463_s10 = scalar_lea.vmem [#allocation9], %s5406_s5  ;;  %s6425_s9 = scalar_lea.hbm %s7162_s6, %s6303_s13 }
  0x9f   : > { %p6412_p7 = pnand %p5434_p5, %p7184_p13  ;;  %s6419_s4 = scalar_lea.hbm %s7158_s2, %s5407_s25 }
  0xa0   : > { %s471_s3 = sshll.u32 %s463_s10, 4  ;;  %s5837_s28 = scalar_lea.hbm %s7156_s0, 128  ;;  %s6427_s3 = int_to_ptr.vmem [resolvable:$true] %s471_s3 }
  0xa1   : > { %p5838_p4 = scmp.ne.s32.totalorder %s7156_s0, %s5837_s28  ;;  %p5839_p9 = pneg %p6412_p7 }
  0xa2   : > { %p5844_p11 = scmp.lt.u32.totalorder %s5837_s28, %s7156_s0 }
  0xa3   : > { %p5840_p12 = pnand %p5839_p9, %p5838_p4 }
  0xa5   : > { %p5841_p10 = pneg %p5840_p12 }
  0xa7   : > { %p5846_p1 = pnand %p5844_p11, %p5841_p10 }
  0xa9   : > { %5849 = shalt.err (!%p5846_p1)
}
  0xaa   : > { %s5850_s7 = scalar_lea.vmem %s428_s21, 128  ;;  %p5858_p0 = scmp.lt.s32.totalorder %s428_s21, %s428_s21 }
  0xab   : > { %p5851_p2 = scmp.ne.s32.totalorder %s428_s21, %s5850_s7  ;;  %p5859_p3 = scmp.lt.s32.totalorder %s5850_s7, %s5850_s7 }
  0xad   : > { %p5853_p5 = pnand %p5851_p2, %p5839_p9  ;;  %p5860_p6 = por %p5859_p3, %p5858_p0 }
  0xaf   : > { %p5854_p13 = pneg %p5853_p5 }
  0xb1   : > { %p5861_p8 = pnand %p5860_p6, %p5854_p13 }
  0xb3   : > { %5864 = shalt.err (!%p5861_p8)
}
  0xb4   : > { %5437 = dma.hbm_to_vmem [thread:$0]  (!%p6412_p7), %s7156_s0, 128, %s428_s21, [#allocation5]  }
  0xb5   : > { %s5865_s28 = scalar_lea.hbm %s6419_s4, 48  ;;  %p7218_p9 = scmp.ne.s32.totalorder %s7209_s19, 0 }
  0xb6   : > { %p5866_p4 = scmp.ne.s32.totalorder %s6419_s4, %s5865_s28  ;;  %s5870_s5 = scalar_lea.hbm %s7158_s2, 96 }
  0xb7   : > { %p5871_p6 = scmp.lt.u32.totalorder %s6419_s4, %s7158_s2  ;;  %p5872_p8 = scmp.lt.u32.totalorder %s5870_s5, %s5865_s28 }
  0xb8   : > { %p5868_p12 = pnand %p5866_p4, %p7218_p9  ;;  %p5874_p0 = scmp.lt.u32.totalorder %s5865_s28, %s6419_s4 }
  0xb9   : > { %p5873_p13 = por %p5872_p8, %p5871_p6 }
  0xba   : > { %p5869_p10 = pneg %p5868_p12 }
  0xbb   : > { %p5875_p3 = por %p5874_p0, %p5873_p13 }
  0xbd   : > { %p5876_p11 = pnand %p5875_p3, %p5869_p10 }
  0xbf   : > { %5879 = shalt.err (!%p5876_p11)
}
  0xc0   : > { %s5880_s21 = scalar_lea.vmem %s6427_s3, 48  ;;  %s6093_s27 = smov [#allocation9]  }
  0xc1   : > { %p5881_p7 = scmp.ne.s32.totalorder %s6427_s3, %s5880_s21  ;;  %s5885_s23 = sshll.u32 %s6093_s27, 4  ;;  %s5886_s23 = int_to_ptr.vmem [resolvable:$false] %s5885_s23 }
  0xc2   : > { %s5887_s15 = scalar_lea.vmem %s5886_s23, 96  ;;  %p5888_p5 = scmp.lt.s32.totalorder %s6427_s3, %s5886_s23 }
  0xc3   : > { %p5883_p1 = pnand %p5881_p7, %p7218_p9  ;;  %p5889_p4 = scmp.lt.s32.totalorder %s5887_s15, %s5880_s21 }
  0xc5   : > { %p5884_p2 = pneg %p5883_p1  ;;  %p5890_p12 = por %p5889_p4, %p5888_p5 }
  0xc7   : > { %p5891_p6 = pnand %p5890_p12, %p5884_p2 }
  0xc9   : > { %5894 = shalt.err (!%p5891_p6)
}
  0xca   : > { %p7219_p10 = scmp.ne.s32.totalorder %s7208_s14, 0  ;;  %s7220_s10 = scalar_lea.sflag [#allocation8], %s6215_s17 }
  0xcb   : > { %s514_s7 = scalar_lea.vmem [#allocation12], %s6218_s18  ;;  %s6473_s30 = scalar_lea.hbm %s7164_s8, %s6303_s13 }
  0xcc   : > { %5444 = dma.hbm_to_vmem [thread:$0]  (!%p7219_p10), %s6419_s4, 48, %s6427_s3, %s7220_s10  }
  0xcd   : > { %s521_s26 = sshll.u32 %s514_s7, 4  ;;  %s5895_s20 = scalar_lea.hbm %s6425_s9, 16  ;;  %s522_s26 = int_to_ptr.vmem [resolvable:$true] %s521_s26 }
  0xce   : > { %p5896_p8 = scmp.ne.s32.totalorder %s6425_s9, %s5895_s20  ;;  %s5900_s24 = scalar_lea.hbm %s7162_s6, 32 }
  0xcf   : > { %p5901_p3 = scmp.lt.u32.totalorder %s6425_s9, %s7162_s6  ;;  %p5902_p11 = scmp.lt.u32.totalorder %s5900_s24, %s5895_s20 }
  0xd0   : > { %p5898_p13 = pnand %p5896_p8, %p7218_p9  ;;  %p5904_p1 = scmp.lt.u32.totalorder %s5895_s20, %s6425_s9 }
  0xd1   : > { %p5903_p7 = por %p5902_p11, %p5901_p3 }
  0xd2   : > { %p5899_p0 = pneg %p5898_p13 }
  0xd3   : > { %p5905_p2 = por %p5904_p1, %p5903_p7 }
  0xd5   : > { %p5906_p5 = pnand %p5905_p2, %p5899_p0 }
  0xd7   : > { %5909 = shalt.err (!%p5906_p5)
}
  0xd8   : > { %s5910_s3 = scalar_lea.vmem %s522_s26, 16  ;;  %s6094_s4 = smov [#allocation12]  }
  0xd9   : > { %p5911_p4 = scmp.ne.s32.totalorder %s522_s26, %s5910_s3  ;;  %s5915_s13 = sshll.u32 %s6094_s4, 4  ;;  %s5916_s13 = int_to_ptr.vmem [resolvable:$false] %s5915_s13 }
  0xda   : > { %s5917_s23 = scalar_lea.vmem %s5916_s13, 32  ;;  %p5918_p8 = scmp.lt.s32.totalorder %s522_s26, %s5916_s13 }
  0xdb   : > { %p5913_p12 = pnand %p5911_p4, %p7218_p9  ;;  %p5919_p13 = scmp.lt.s32.totalorder %s5917_s23, %s5910_s3 }
  0xdd   : > { %p5914_p6 = pneg %p5913_p12  ;;  %p5920_p10 = por %p5919_p13, %p5918_p8 }
  0xdf   : > { %p5921_p3 = pnand %p5920_p10, %p5914_p6 }
  0xe1   : > { %5924 = shalt.err (!%p5921_p3)
}
  0xe2   : > { %p7221_p11 = scmp.ne.s32.totalorder %s7208_s14, 0  ;;  %s7222_s15 = scalar_lea.sflag [#allocation11], %s6215_s17 }
  0xe3   : > { %s7223_s10 = sshll.u32 %s6385_s1, 4  ;;  %s548_s7 = scalar_lea.vmem [#allocation15], %s6218_s18  ;;  %s6496_s10 = int_to_ptr.vmem [resolvable:$true] %s7223_s10 }
  0xe4   : > { %5450 = dma.hbm_to_vmem [thread:$0]  (!%p7221_p11), %s6425_s9, 16, %s522_s26, %s7222_s15  }
  0xe5   : > { %s555_s29 = sshll.u32 %s548_s7, 4  ;;  %s5925_s28 = scalar_lea.hbm %s6473_s30, 16  ;;  %s556_s29 = int_to_ptr.vmem [resolvable:$true] %s555_s29 }
  0xe6   : > { %p5926_p10 = scmp.ne.s32.totalorder %s6473_s30, %s5925_s28  ;;  %s5930_s25 = scalar_lea.hbm %s7164_s8, 32 }
  0xe7   : > { %p5931_p1 = scmp.lt.u32.totalorder %s6473_s30, %s7164_s8  ;;  %p5932_p2 = scmp.lt.u32.totalorder %s5930_s25, %s5925_s28 }
  0xe8   : > { %p5928_p0 = pnand %p5926_p10, %p7218_p9  ;;  %p5934_p4 = scmp.lt.u32.totalorder %s5925_s28, %s6473_s30 }
  0xe9   : > { %p5933_p5 = por %p5932_p2, %p5931_p1 }
  0xea   : > { %p5929_p7 = pneg %p5928_p0 }
  0xeb   : > { %p5935_p12 = por %p5934_p4, %p5933_p5 }
  0xed   : > { %p5936_p6 = pnand %p5935_p12, %p5929_p7 }
  0xef   : > { %5939 = shalt.err (!%p5936_p6)
}
  0xf0   : > { %s5940_s9 = scalar_lea.vmem %s556_s29, 16  ;;  %s6095_s18 = smov [#allocation15]  }
  0xf1   : > { %p5941_p8 = scmp.ne.s32.totalorder %s556_s29, %s5940_s9  ;;  %s5945_s1 = sshll.u32 %s6095_s18, 4  ;;  %s5946_s1 = int_to_ptr.vmem [resolvable:$false] %s5945_s1 }
  0xf2   : > { %s5947_s26 = scalar_lea.vmem %s5946_s1, 32  ;;  %p5948_p10 = scmp.lt.s32.totalorder %s556_s29, %s5946_s1 }
  0xf3   : > { %p5943_p13 = pnand %p5941_p8, %p7218_p9  ;;  %p5949_p0 = scmp.lt.s32.totalorder %s5947_s26, %s5940_s9 }
  0xf5   : > { %p5944_p3 = pneg %p5943_p13  ;;  %p5950_p11 = por %p5949_p0, %p5948_p10 }
  0xf7   : > { %p5951_p1 = pnand %p5950_p11, %p5944_p3 }
  0xf9   : > { %5954 = shalt.err (!%p5951_p1)
}
  0xfa   : > { %p7224_p2 = scmp.ne.s32.totalorder %s7208_s14, 0  ;;  %s7225_s27 = scalar_lea.sflag [#allocation14], %s6215_s17 }
  0xfb   : > { %s5955_s3 = scalar_lea.hbm %s6381_s12, 16384  ;;  %s5960_s23 = scalar_lea.hbm %s7167_s11, 32768 }
  0xfc   : > { %5456 = dma.hbm_to_vmem [thread:$0]  (!%p7224_p2), %s6473_s30, 16, %s556_s29, %s7225_s27  }
  0xfd   : > { %p5956_p7 = scmp.ne.s32.totalorder %s6381_s12, %s5955_s3  ;;  %p5961_p11 = scmp.lt.u32.totalorder %s6381_s12, %s7167_s11 }
  0xfe   : > { %p5962_p12 = scmp.lt.u32.totalorder %s5960_s23, %s5955_s3  ;;  %p5964_p8 = scmp.lt.u32.totalorder %s5955_s3, %s6381_s12 }
  0xff   : > { %p5958_p5 = pnand %p5956_p7, %p7218_p9 }
 0x100   : > { %p5963_p6 = por %p5962_p12, %p5961_p11 }
 0x101   : > { %p5959_p4 = pneg %p5958_p5 }
 0x102   : > { %p5965_p13 = por %p5964_p8, %p5963_p6 }
 0x104   : > { %p5966_p3 = pnand %p5965_p13, %p5959_p4 }
 0x106   : > { %5969 = shalt.err (!%p5966_p3)
}
 0x107   : > { %s5970_s30 = scalar_lea.vmem %s6496_s10, 16384  ;;  %s6096_s29 = smov [#allocation18]  }
 0x108   : > { %p5971_p10 = scmp.ne.s32.totalorder %s6496_s10, %s5970_s30  ;;  %s5975_s28 = sshll.u32 %s6096_s29, 4  ;;  %s5976_s28 = int_to_ptr.vmem [resolvable:$false] %s5975_s28 }
 0x109   : > { %s5977_s20 = scalar_lea.vmem %s5976_s28, 32768  ;;  %p5978_p7 = scmp.lt.s32.totalorder %s6496_s10, %s5976_s28 }
 0x10a   : > { %p5973_p0 = pnand %p5971_p10, %p7218_p9  ;;  %p5979_p5 = scmp.lt.s32.totalorder %s5977_s20, %s5970_s30 }
 0x10c   : > { %p5974_p1 = pneg %p5973_p0  ;;  %p5980_p11 = por %p5979_p5, %p5978_p7 }
 0x10e   : > { %p5981_p12 = pnand %p5980_p11, %p5974_p1 }
 0x110   : > { %5984 = shalt.err (!%p5981_p12)
}
 0x111   : > { %s7226_s5 = smov 4   ;;  %s7227_s25 = smov 64  }
 0x112   : > { %s7228_s24 = scalar_lea.sflag [#allocation17], %s6215_s17  ;;  %p7229_p9 = scmp.ne.s32.totalorder %s7216_s16, 0 }
 0x113   : > { %5462 = dma.hbm_to_vmem [thread:$0]  (!%p7224_p2), %s6381_s12, 16384, %s6496_s10, %s7228_s24, %s7227_s25, %s7227_s25, %s7226_s5  }
 0x114   : > { %627 = sbr.rel (%p7229_p9) target bundleno = 4436 (0x1154), region = 72  ;;  %p7230_p4 = scmp.eq.s32.totalorder (!%p7229_p9), %s6389_s22, 0 }
 0x11b   : > { %6036 = dma.done.wait (%p7230_p4), [#allocation5], 128   ;;  %p7231_p6 = pmov %p7230_p4 }
 0x11c   : > { %s7232_s19 = sld [smem:[#allocation26_spill]]  ;;  %s7233_s14 = sld [smem:[#allocation33_spill]] }
 0x11d   : > { %6038 = vsyncadd (%p7231_p6), [#allocation5], 4294967168  ;;  %s633_s21 = sand.u32 1, %s6389_s22  }
 0x11e   : > { %s634_s18 = scalar_lea.sflag [#allocation8], %s633_s21 }
 0x122   : > { %s6552_s9 = sand.u32 1, %s7232_s19   ;;  %p7234_p2 = scmp.ne.s32.totalorder %s7233_s14, 0 }
 0x123   : > { %s5408_s17 = smul.u32 192, %s6552_s9 }
 0x125   : > { %s6555_s1 = scalar_lea.vmem [#allocation7], %s5408_s17 }
 0x126   : > { %6040 = dma.done.wait (%p7234_p2), %s634_s18, 3120  }
 0x127   : > { %6042 = vsyncadd (%p7234_p2), %s634_s18, 4294964176  ;;  %s5409_s12 = smul.u32 3, %s6552_s9  ;;  %s4793_s16 = sshll.u32 %s6552_s9, 6 }
 0x128   : > { %s652_s26 = scalar_lea.sflag [#allocation11], %s633_s21  ;;  %s6565_s27 = scalar_lea.vmem [#allocation10], %s4793_s16 }
 0x129   : > { %s6563_s10 = scalar_lea.vmem [#allocation9], %s5409_s12 }
 0x12a   : > { %6044 = dma.done.wait (%p7234_p2), %s652_s26, 1040  }
 0x12b   : > { %6046 = vsyncadd (%p7234_p2), %s652_s26, 4294966256  ;;  %s669_s4 = scalar_lea.sflag [#allocation14], %s633_s21 }
 0x12c   : > { %6048 = dma.done.wait (%p7234_p2), %s669_s4, 32  }
 0x12d   : > { %6050 = vsyncadd (%p7234_p2), %s669_s4, 4294967264  ;;  %s4794_s23 = sshll.u32 %s6552_s9, 10  ;;  %s685_s7 = scalar_lea.sflag [#allocation17], %s633_s21 }
 0x12e   : > { %s6579_s30 = scalar_lea.vmem [#allocation16], %s4794_s23 }
 0x12f   : > { %6052 = dma.done.wait (%p7234_p2), %s685_s7, 32768  }
 0x130   : > { %6054 = vsyncadd (%p7234_p2), %s685_s7, 4294934528  ;;  %s7235_s29 = sld [smem:[#allocation28_spill]]  ;;  %s7236_s5 = sld [smem:[#allocation36_spill]] }
 0x131   : > { %s7237_s21 = sld [smem:[#allocation37_spill]]  ;;  %s7238_s16 = sld [smem:[#allocation41_spill]] }
 0x132   : > { %s7239_s15 = sld [smem:[#allocation40_spill]]  ;;  %s6608_s3 = scalar_lea.vmem [#allocation18], %s4794_s23 }
 0x136   : > { %p784_p8 = scmp.lt.s32.totalorder %s7235_s29, 1  ;;  %p803_p13 = scmp.eq.s32.totalorder %s7235_s29, 0 }
 0x137   : > { %v809_v0 = vld [vmem:[#allocation4] sm:$0xff] (%p803_p13) }
 0x138   : > { %s7257_s29 = smov (!%p784_p8, %s7235_s29), 1  ;;  %808 = sbr.rel (!%p803_p13) target bundleno = 319 (0x13f), region = 112 }
 0x139   : > { %s786_s25 = scalar_lea.vmem %s7236_s5, %s7257_s29  ;;  %s789_s14 = scalar_lea.vmem %s7237_s21, %s7257_s29  ;;  %810 = vst [vmem:[#allocation2] sm:$0xff] (%p803_p13), %v809_v0 }
 0x13a   : > { %s4796_s17 = sshll.u32 %s7257_s29, 4  ;;  %s801_s26 = scalar_lea.vmem %s7238_s16, %s7257_s29 }
 0x13b   : > { %s6606_s13 = scalar_lea.vmem %s7239_s15, %s4796_s17 }
 0x13f PF: > { %v5529_v1 = vld [vmem:[%s6555_s1 + $0x4] ss:$12 sps:$4 sm:$0xff]   ;;  %v5531_v2 = vld [vmem:[%s6555_s1] ss:$12 sps:$4 sm:$0xff]   ;;  %v6097_v3 = vmov 0   ;;  %v6098_v4 = vmov 0.0   ;;  %v850_v29 = vlaneseq }
 0x140   : > { %1025 = vmatprep.mubr.bf16.mxu0 %v6097_v3  ;;  %5324 = vmatprep.subr.bf16.mxu1 %v6098_v4  ;;  %v5532_v5 = vld [vmem:[%s6555_s1 + $0x1c] ss:$12 sps:$4 sm:$0xff]   ;;  %vm6099_vm0 = vmmov 0   ;;  %v5534_v6 = vld [vmem:[%s6555_s1 + $0x18] ss:$12 sps:$4 sm:$0xff]   ;;  %v6638_v24 = vld [vmem:[#allocation2] sm:$0xff] }
 0x141   : > { %993 = vmatprep.subr.bf16.mxu0 %v5529_v1  ;;  %5340 = vmatprep.mubr.msk.bf16.mxu1 %vm6099_vm0, %v6098_v4  ;;  %v5535_v7 = vld [vmem:[%s6555_s1 + $0x34] ss:$12 sps:$4 sm:$0xff]   ;;  %v5537_v8 = vld [vmem:[%s6555_s1 + $0x30] ss:$12 sps:$4 sm:$0xff]   ;;  %v5538_v9 = vld [vmem:[%s6555_s1 + $0x4c] ss:$12 sps:$4 sm:$0xff]   ;;  %v815_v26 = vpack.c.bf16 %v6638_v24, %v6638_v24 }
 0x142   : > { %994 = vmatpush1.bf16.msra.mxu0 %v5531_v2  ;;  %v5540_v10 = vld [vmem:[%s6555_s1 + $0x48] ss:$12 sps:$4 sm:$0xff]   ;;  %v5541_v12 = vld [vmem:[%s6555_s1 + $0x64] ss:$12 sps:$4 sm:$0xff]   ;;  %v5554_v13 = vld [vmem:[%s6555_s1 + $0x20] ss:$12 sps:$4 sm:$0xff]  }
 0x143   : > { %995 = vmatprep.subr.bf16.mxu0 %v5532_v5  ;;  %v5553_v11 = vld [vmem:[%s6555_s1 + $0x8] ss:$12 sps:$4 sm:$0xff]   ;;  %v5543_v14 = vld [vmem:[%s6555_s1 + $0x60] ss:$12 sps:$4 sm:$0xff]   ;;  %v5546_v16 = vld [vmem:[%s6555_s1 + $0x78] ss:$12 sps:$4 sm:$0xff]  }
 0x144   : > { %5325 = vmatpush3.bf16.msra.mxu1 %v5553_v11  ;;  %v5544_v15 = vld [vmem:[%s6555_s1 + $0x7c] ss:$12 sps:$4 sm:$0xff]   ;;  %v5555_v17 = vld [vmem:[%s6555_s1 + $0x38] ss:$12 sps:$4 sm:$0xff]   ;;  %v5547_v18 = vld [vmem:[%s6555_s1 + $0x94] ss:$12 sps:$4 sm:$0xff]  }
 0x145   : > { %5326 = vmatprep.subr.bf16.mxu1 %v6098_v4  ;;  %v5556_v19 = vld [vmem:[%s6555_s1 + $0x50] ss:$12 sps:$4 sm:$0xff]   ;;  %v5550_v21 = vld [vmem:[%s6555_s1 + $0xac] ss:$12 sps:$4 sm:$0xff]   ;;  %v5557_v22 = vld [vmem:[%s6555_s1 + $0x68] ss:$12 sps:$4 sm:$0xff]  }
 0x146   : > { %996 = vmatpush1.bf16.msra.mxu0 %v5534_v6  ;;  %v5549_v20 = vld [vmem:[%s6555_s1 + $0x90] ss:$12 sps:$4 sm:$0xff]   ;;  %v5552_v23 = vld [vmem:[%s6555_s1 + $0xa8] ss:$12 sps:$4 sm:$0xff]   ;;  %v5558_v25 = vld [vmem:[%s6555_s1 + $0x80] ss:$12 sps:$4 sm:$0xff]  }
 0x147   : > { %997 = vmatprep.subr.bf16.mxu0 %v5535_v7  ;;  %v5559_v27 = vld [vmem:[%s6555_s1 + $0x98] ss:$12 sps:$4 sm:$0xff]   ;;  %v5560_v28 = vld [vmem:[%s6555_s1 + $0xb0] ss:$12 sps:$4 sm:$0xff]   ;;  %v6655_v30 = vshrl.u32 %v850_v29, 7  ;;  %vm1075_vm1 = vcmask 261120  }
 0x148   : > { %5327 = vmatpush3.bf16.msra.mxu1 %v5554_v13  ;;  %v848_v32 = vld [vmem:[%s6563_s10] sm:$0x7]  ;;  %s6100_s1 = smov 96   ;;  %vm1152_vm2 = vcmask 64512   ;;  %s6101_s10 = smov 64   ;;  %vm1746_vm3 = vcmask 523264  }
 0x149   : > { %5328 = vmatprep.subr.bf16.mxu1 %v6098_v4  ;;  %v6658_v31 = vsub.s32 0, %v6655_v30  ;;  %v6662_v33 = vsub.s32 1, %v6655_v30  ;;  %v6669_v42 = vsub.s32 2, %v6655_v30  ;;  %s6102_s23 = smov 32   ;;  %vm1748_vm4 = vcmask 785408   ;;  %s7242_s24 = scalar_lea.vmem [#allocation12], %s6552_s9 }
 0x14a   : > { %998 = vmatpush1.bf16.msra.mxu0 %v5537_v8  ;;  %s7245_s21 = scalar_lea.vmem [#allocation13], %s6552_s9  ;;  %s7246_s29 = scalar_lea.vmem [#allocation15], %s6552_s9 }
 0x14b   : > { %999 = vmatprep.subr.bf16.mxu0 %v5538_v9  ;;  %v853_v34 = vrot.slane %v848_v32, %v6658_v31  ;;  %v857_v35 = vrot.slane %v848_v32, %v6662_v33  ;;  %v861_v44 = vrot.slane %v848_v32, %v6669_v42 }
 0x14c   : > { %5329 = vmatpush3.bf16.msra.mxu1 %v5555_v17 }
 0x14d   : > { %5330 = vmatprep.subr.bf16.mxu1 %v6098_v4 }
 0x14e   : > { %1000 = vmatpush1.bf16.msra.mxu0 %v5540_v10 }
 0x14f   : > { %1001 = vmatprep.subr.bf16.mxu0 %v5541_v12 }
 0x150   : > { %5331 = vmatpush3.bf16.msra.mxu1 %v5556_v19 }
 0x151   : > { %5332 = vmatprep.subr.bf16.mxu1 %v6098_v4 }
 0x152   : > { %1002 = vmatpush1.bf16.msra.mxu0 %v5543_v14 }
 0x153   : > { %1003 = vmatprep.subr.bf16.mxu0 %v5544_v15 }
 0x154   : > { %5333 = vmatpush3.bf16.msra.mxu1 %v5557_v22 }
 0x155   : > { %5334 = vmatprep.subr.bf16.mxu1 %v6098_v4 }
 0x156   : > { %1004 = vmatpush1.bf16.msra.mxu0 %v5546_v16 }
 0x157   : > { %1005 = vmatprep.subr.bf16.mxu0 %v5547_v18 }
 0x158   : > { %5335 = vmatpush3.bf16.msra.mxu1 %v5558_v25 }
 0x159   : > { %5336 = vmatprep.subr.bf16.mxu1 %v6098_v4 }
 0x15a   : > { %1006 = vmatpush1.bf16.msra.mxu0 %v5549_v20 }
 0x15b   : > { %1007 = vmatprep.subr.bf16.mxu0 %v5550_v21 }
 0x15c   : > { %5337 = vmatpush3.bf16.msra.mxu1 %v5559_v27 }
 0x15d   : > { %5338 = vmatprep.subr.bf16.mxu1 %v6098_v4 }
 0x15e   : > { %1008 = vmatpush1.bf16.msra.mxu0 %v5552_v23 }
 0x15f   : > { %5384 = vmatprep.subr.bf16.mxu0 %v6098_v4 }
 0x160   : > { %5339 = vmatpush3.bf16.msra.mxu1 %v5560_v28 }
 0x161   : > { %1026 = vmatmul.mubr.bf16.vlgmr.msra.gmra.mrb[0].mxu0 %v815_v26  ;;  %5344 = vmatprep.subr.mxu1 %v6098_v4 }
 0x162   : > { %5400 = vmatprep.mubr.msk.bf16.mxu0 %vm6099_vm0, %v6098_v4 }
 0x163   : > { %5341 = vmatmul.mubr.bf16.vlgmr.msra.gmra.mrb[0].mxu1 %v815_v26 }
 0x164   : > { %5346 = vmatprep.mubr.msk.f32.mxu1 %vm6099_vm0, %v6098_v4 }
 0x234   : > { %v1027_v36 = vpop.f32.mrb[0].mxu0 }
 0x235   : > { %v1028_v37 = vadd.f32 %v1027_v36, %v853_v34  ;;  %v1029_v38 = vpop.f32.mrb[1].mxu0 }
 0x236   : > { %v6666_v39 = vadd.f32 %v1029_v38, %v857_v35  ;;  %v1031_v40 = vpop.f32.mrb[2].mxu0  ;;  %v1068_v45 = vpop.f32.mrb[0].mxu1 }
 0x237   : > { %v1032_v41 = vpop.f32.mrb[3].mxu0  ;;  %v6675_v43 = vmul.f32 0.17677669, %v1028_v37  ;;  %v6685_v46 = vadd.f32 %v1068_v45, %v861_v44  ;;  %v5342_v47 = vpop.f32.mrb[1].mxu1 }
 0x238   : > { %1239 = vrot.lane.b32.xlu1 %v6666_v39, %s6100_s1  ;;  %5345 = vmatpush3.xpose.msk.msra.mxu1 %vm1075_vm1, %v6666_v39  ;;  %v1071_v48 = vpop.f32.mrb[2].mxu1 }
 0x239   : > { %5349 = vmatprep.subr.mxu1 %v6098_v4  ;;  %v5343_v49 = vpop.f32.mrb[3].mxu1 }
 0x23b   : > { %5347 = vmatmul.mubr.msk.f32.vlgmr.msra.gmra.mrb[4].mxu1 %vm1075_vm1, %v6675_v43 }
 0x23c   : > { %1237 = vrot.lane.b32.xlu1 %v6675_v43, %s6100_s1  ;;  %5351 = vmatprep.mubr.msk.f32.mxu1 %vm6099_vm0, %v6098_v4 }
 0x23d   : > { %5350 = vmatpush3.msra.mxu1 %v6685_v46 }
 0x23e   : > { %5354 = vmatprep.subr.mxu1 %v6098_v4 }
 0x2aa   : > { %v1240_v60 = vpop.permute.xlu1 %1239 }
 0x2ae   : > { %v1238_v62 = vpop.permute.xlu1 %1237 }
 0x30e   : > { %v1148_v50 = vpop.f32.mrb[4].mxu1 }
 0x30f   : > { %v5348_v51 = vpop.f32.mrb[5].mxu1  ;;  %v1153_v52 = vsel %vm1152_vm2, %v1148_v50, -inf }
 0x310   : > { %1154 = vmax.xlane.f32.xlu0 %v1153_v52  ;;  %v5561_v52 = vld [vmem:[%s6565_s27] sm:$0xff]  }
 0x311   : > { %5385 = vmatpush3.bf16.msra.mxu0 %v5561_v52 }
 0x312   : > { %5386 = vmatprep.subr.bf16.mxu0 %v6098_v4 }
 0x39d   : > { %v1155_v53 = vpop.xlane.xlu0 %1154 }
 0x39e   : > { %v1156_v54 = vsub.f32 %v1148_v50, %v1155_v53  ;;  %v5562_v53 = vld [vmem:[%s6565_s27 + $0x8] sm:$0xff]  }
 0x39f   : > { %5387 = vmatpush3.bf16.msra.mxu0 %v5562_v53  ;;  %v1959_v53 = vld [vmem:[%s6579_s30 + $0x200] sm:$0xff] }
 0x3a0   : > { %v1157_v55 = vmul.f32 1.442695, %v1156_v54  ;;  %v5563_v54 = vld [vmem:[%s6565_s27 + $0x10] sm:$0xff]   ;;  %5388 = vmatprep.subr.bf16.mxu0 %v6098_v4 }
 0x3a2   : > { %5697 = vpow2.f32 %v1157_v55  ;;  %v5564_v55 = vld [vmem:[%s6565_s27 + $0x18] sm:$0xff]  }
 0x3a3   : > { %5389 = vmatpush3.bf16.msra.mxu0 %v5563_v54  ;;  %v1967_v54 = vld [vmem:[%s6579_s30 + $0x240] sm:$0xff] }
 0x3a4   : > { %5390 = vmatprep.subr.bf16.mxu0 %v6098_v4 }
 0x3a7   : > { %5391 = vmatpush3.bf16.msra.mxu0 %v5564_v55  ;;  %v1960_v55 = vld [vmem:[%s6579_s30 + $0x208] sm:$0xff] }
 0x3a8   : > { %5392 = vmatprep.subr.bf16.mxu0 %v6098_v4 }
 0x3ac   : > { %v5698_v56 = vpop.eup %5697 }
 0x3ad   : > { %v1159_v57 = vsel %vm1152_vm2, %v5698_v56, 0.0 }
 0x3ae   : > { %1160 = vadd.xlane.f32.xlu0 %v1159_v57  ;;  %v5566_v57 = vld [vmem:[%s6565_s27 + $0x28] sm:$0xff]  }
 0x43b   : > { %v1161_v58 = vpop.xlane.xlu0 %1160 }
 0x43c   : > { %5699 = vrcp.f32 %v1161_v58  ;;  %v5567_v58 = vld [vmem:[%s6565_s27 + $0x30] sm:$0xff]  }
 0x446   : > { %v5700_v59 = vpop.eup %5699 }
 0x447   : > { %v1163_v61 = vmul.f32 %v5700_v59, %v5698_v56  ;;  %v5565_v56 = vld [vmem:[%s6565_s27 + $0x20] sm:$0xff]   ;;  %v5568_v59 = vld [vmem:[%s6565_s27 + $0x38] sm:$0xff]  }
 0x448   : > { %5393 = vmatpush3.bf16.msra.mxu0 %v5565_v56  ;;  %v4910_v56 = vcombine.high %v1959_v53, %v1967_v54 }
 0x449   : > { %5352 = vmatmul.mubr.msk.f32.vlgmr.msra.gmra.mrb[6].mxu1 %vm1152_vm2, %v1163_v61  ;;  %5394 = vmatprep.subr.bf16.mxu0 %v6098_v4 }
 0x44a   : > { %5355 = vmatpush3.xpose.msk.msra.mxu1 %vm1075_vm1, %v1240_v60  ;;  %5356 = vmatprep.mubr.msk.f32.mxu1 %vm6099_vm0, %v6098_v4 }
 0x44b   : > { %5359 = vmatprep.subr.mxu1 %v6098_v4 }
 0x44c   : > { %5395 = vmatpush3.bf16.msra.mxu0 %v5566_v57  ;;  %v1968_v57 = vld [vmem:[%s6579_s30 + $0x248] sm:$0xff] }
 0x44d   : > { %5357 = vmatmul.mubr.msk.f32.vlgmr.msra.gmra.mrb[8].mxu1 %vm1075_vm1, %v1238_v62  ;;  %5396 = vmatprep.subr.bf16.mxu0 %v6098_v4 }
 0x44e   : > { %5361 = vmatprep.mubr.msk.f32.mxu1 %vm6099_vm0, %v6098_v4 }
 0x450   : > { %5397 = vmatpush3.bf16.msra.mxu0 %v5567_v58  ;;  %v4909_v58 = vcombine.low %v1959_v53, %v1967_v54  ;;  %v1938_v53 = vld [vmem:[%s6579_s30 + $0x158] sm:$0xff] }
 0x451   : > { %5398 = vmatprep.subr.bf16.mxu0 %v6098_v4 }
 0x454   : > { %5399 = vmatpush3.bf16.msra.mxu0 %v5568_v59  ;;  %v4911_v59 = vcombine.low %v1960_v55, %v1968_v57 }
 0x51c   : > { %v6699_v63 = vpop.f32.mrb[6].mxu1 }
 0x51d   : > { %v5353_v0 = vpop.f32.mrb[7].mxu1 }
 0x520   : > { %v1311_v1 = vpop.f32.mrb[8].mxu1 }
 0x521   : > { %v5358_v2 = vpop.f32.mrb[9].mxu1  ;;  %v1315_v5 = vsel %vm1152_vm2, %v1311_v1, -inf }
 0x522   : > { %1316 = vmax.xlane.f32.xlu0 %v1315_v5 }
 0x538   : > { %1327 = vrot.lane.b32.xlu0 %v6685_v46, %s6100_s1 }
 0x53c   : > { %1405 = vrot.lane.b32.xlu0 %v6666_v39, %s6101_s10 }
 0x540   : > { %1403 = vrot.lane.b32.xlu0 %v6675_v43, %s6101_s10 }
 0x5af   : > { %v1317_v6 = vpop.xlane.xlu0 %1316 }
 0x5b0   : > { %v1318_v7 = vsub.f32 %v1311_v1, %v1317_v6 }
 0x5b2   : > { %v1319_v8 = vmul.f32 1.442695, %v1318_v7  ;;  %v4834_v7 = vld [vmem:[%s786_s25] ss:$0 sm:$0xff] }
 0x5b3   : > { %v1328_v9 = vpop.permute.xlu0 %1327 }
 0x5b4   : > { %5701 = vpow2.f32 %v1319_v8  ;;  %5360 = vmatpush3.msra.mxu1 %v1328_v9 }
 0x5b5   : > { %5364 = vmatprep.subr.mxu1 %v6098_v4 }
 0x5b7   : > { %v1406_v14 = vpop.permute.xlu0 %1405 }
 0x5bb   : > { %v1404_v16 = vpop.permute.xlu0 %1403 }
 0x5be   : > { %v5702_v10 = vpop.eup %5701 }
 0x5bf   : > { %v1321_v11 = vsel %vm1152_vm2, %v5702_v10, 0.0 }
 0x5c0   : > { %1322 = vadd.xlane.f32.xlu1 %v1321_v11 }
 0x5d1   : > { %1492 = vrot.lane.b32.xlu1 %v6685_v46, %s6101_s10 }
 0x5d5   : > { %1570 = vrot.lane.b32.xlu1 %v6666_v39, %s6102_s23 }
 0x64d   : > { %v1323_v12 = vpop.xlane.xlu1 %1322 }
 0x64e   : > { %5703 = vrcp.f32 %v1323_v12 }
 0x651   : > { %v1493_v17 = vpop.permute.xlu1 %1492 }
 0x655   : > { %v1571_v29 = vpop.permute.xlu1 %1570 }
 0x658   : > { %v5704_v13 = vpop.eup %5703 }
 0x659   : > { %v1325_v15 = vmul.f32 %v5704_v13, %v5702_v10  ;;  %v1895_v13 = vld [vmem:[%s6579_s30] sm:$0xff] }
 0x65b   : > { %5362 = vmatmul.mubr.msk.f32.vlgmr.msra.gmra.mrb[10].mxu1 %vm1152_vm2, %v1325_v15  ;;  %v1896_v15 = vld [vmem:[%s6579_s30 + $0x8] sm:$0xff] }
 0x65c   : > { %5365 = vmatpush3.xpose.msk.msra.mxu1 %vm1075_vm1, %v1406_v14  ;;  %5366 = vmatprep.mubr.msk.f32.mxu1 %vm6099_vm0, %v6098_v4  ;;  %v1903_v14 = vld [vmem:[%s6579_s30 + $0x40] sm:$0xff] }
 0x65d   : > { %5369 = vmatprep.subr.mxu1 %v6098_v4 }
 0x65f   : > { %5367 = vmatmul.mubr.msk.f32.vlgmr.msra.gmra.mrb[12].mxu1 %vm1075_vm1, %v1404_v16  ;;  %v4845_v16 = vcombine.low %v1895_v13, %v1903_v14 }
 0x660   : > { %5370 = vmatpush3.msra.mxu1 %v1493_v17  ;;  %5371 = vmatprep.mubr.msk.f32.mxu1 %vm6099_vm0, %v6098_v4  ;;  %v4846_v17 = vcombine.high %v1895_v13, %v1903_v14  ;;  %v2007_v14 = vld [vmem:[%s6579_s30 + $0x380] sm:$0xff] }
 0x661   : > { %5374 = vmatprep.subr.mxu1 %v6098_v4 }
 0x72e   : > { %v1399_v18 = vpop.f32.mrb[10].mxu1 }
 0x72f   : > { %v5363_v19 = vpop.f32.mrb[11].mxu1 }
 0x732   : > { %v1477_v20 = vpop.f32.mrb[12].mxu1 }
 0x733   : > { %v5368_v21 = vpop.f32.mrb[13].mxu1  ;;  %v1481_v22 = vsel %vm1152_vm2, %v1477_v20, -inf }
 0x734   : > { %1482 = vmax.xlane.f32.xlu0 %v1481_v22 }
 0x7c1   : > { %v1483_v23 = vpop.xlane.xlu0 %1482 }
 0x7c2   : > { %v1484_v25 = vsub.f32 %v1477_v20, %v1483_v23 }
 0x7c4   : > { %v1485_v26 = vmul.f32 1.442695, %v1484_v25  ;;  %v1911_v25 = vld [vmem:[%s6579_s30 + $0x80] sm:$0xff] }
 0x7c6   : > { %5705 = vpow2.f32 %v1485_v26  ;;  %v1919_v26 = vld [vmem:[%s6579_s30 + $0xc0] sm:$0xff] }
 0x7d0   : > { %v5706_v27 = vpop.eup %5705 }
 0x7d1   : > { %v1487_v28 = vsel %vm1152_vm2, %v5706_v27, 0.0 }
 0x7d2   : > { %1488 = vadd.xlane.f32.xlu1 %v1487_v28  ;;  %v4862_v28 = vcombine.high %v1911_v25, %v1919_v26 }
 0x7e3   : > { %1568 = vrot.lane.b32.xlu1 %v6675_v43, %s6102_s23 }
 0x85f   : > { %v1489_v32 = vpop.xlane.xlu1 %1488 }
 0x860   : > { %5707 = vrcp.f32 %v1489_v32  ;;  %v4861_v32 = vcombine.low %v1911_v25, %v1919_v26  ;;  %v1898_v25 = vld [vmem:[%s6579_s30 + $0x18] sm:$0xff] }
 0x863   : > { %v1569_v36 = vpop.permute.xlu1 %1568 }
 0x86a   : > { %v5708_v34 = vpop.eup %5707 }
 0x86b   : > { %v1491_v35 = vmul.f32 %v5708_v34, %v5706_v27  ;;  %v1912_v27 = vld [vmem:[%s6579_s30 + $0x88] sm:$0xff] }
 0x86d   : > { %5372 = vmatmul.mubr.msk.f32.vlgmr.msra.gmra.mrb[14].mxu1 %vm1152_vm2, %v1491_v35 }
 0x86e   : > { %5375 = vmatpush3.xpose.msk.msra.mxu1 %vm1075_vm1, %v1571_v29  ;;  %5376 = vmatprep.mubr.msk.f32.mxu1 %vm6099_vm0, %v6098_v4  ;;  %v1920_v29 = vld [vmem:[%s6579_s30 + $0xc8] sm:$0xff] }
 0x86f   : > { %5379 = vmatprep.subr.mxu1 %v6098_v4  ;;  %v4863_v34 = vcombine.low %v1912_v27, %v1920_v29  ;;  %v4864_v35 = vcombine.high %v1912_v27, %v1920_v29 }
 0x871   : > { %5377 = vmatmul.mubr.msk.f32.vlgmr.msra.gmra.mrb[16].mxu1 %vm1075_vm1, %v1569_v36  ;;  %v1927_v36 = vld [vmem:[%s6579_s30 + $0x100] sm:$0xff] }
 0x872   : > { %5381 = vmatprep.mubr.msk.f32.mxu1 %vm6099_vm0, %v6098_v4 }
 0x940   : > { %v1564_v37 = vpop.f32.mrb[14].mxu1 }
 0x941   : > { %v5373_v38 = vpop.f32.mrb[15].mxu1 }
 0x942   : > { %v1928_v38 = vld [vmem:[%s6579_s30 + $0x108] sm:$0xff] }
 0x944   : > { %v1642_v39 = vpop.f32.mrb[16].mxu1 }
 0x945   : > { %v5378_v40 = vpop.f32.mrb[17].mxu1  ;;  %v1646_v41 = vsel %vm1152_vm2, %v1642_v39, -inf }
 0x946   : > { %1647 = vmax.xlane.f32.xlu0 %v1646_v41  ;;  %v1936_v40 = vld [vmem:[%s6579_s30 + $0x148] sm:$0xff] }
 0x95c   : > { %1657 = vrot.lane.b32.xlu0 %v6685_v46, %s6102_s23 }
 0x960   : > { %1734 = vrot.lane.b32.xlu0 %v1399_v18, %s6102_s23  ;;  %v1904_v18 = vld [vmem:[%s6579_s30 + $0x48] sm:$0xff] }
 0x961   : > { %v4847_v19 = vcombine.low %v1896_v15, %v1904_v18  ;;  %v4848_v20 = vcombine.high %v1896_v15, %v1904_v18  ;;  %v2015_v15 = vld [vmem:[%s6579_s30 + $0x3c0] sm:$0xff]  ;;  %v2016_v18 = vld [vmem:[%s6579_s30 + $0x3c8] sm:$0xff] }
 0x963   : > { %2788 = vmatprep.subr.bf16.mxu0 %v4848_v20 }
 0x964   : > { %1738 = vrot.lane.b32.xlu0 %v1564_v37, %s6101_s10  ;;  %v1935_v37 = vld [vmem:[%s6579_s30 + $0x140] sm:$0xff] }
 0x965   : > { %v4877_v41 = vcombine.low %v1927_v36, %v1935_v37 }
 0x9d3   : > { %v1648_v43 = vpop.xlane.xlu0 %1647 }
 0x9d4   : > { %v1649_v44 = vsub.f32 %v1642_v39, %v1648_v43  ;;  %v4878_v39 = vcombine.high %v1927_v36, %v1935_v37  ;;  %v4879_v43 = vcombine.low %v1928_v38, %v1936_v40 }
 0x9d6   : > { %v1650_v45 = vmul.f32 1.442695, %v1649_v44  ;;  %v4880_v44 = vcombine.high %v1928_v38, %v1936_v40  ;;  %v4843_v38 = vld [vmem:[%s789_s14] ss:$0 sm:$0xff] }
 0x9d7   : > { %v1658_v47 = vpop.permute.xlu0 %1657  ;;  %v4844_v40 = vld [vmem:[%s7242_s24] ss:$0 sm:$0xff] }
 0x9d8   : > { %5709 = vpow2.f32 %v1650_v45  ;;  %5380 = vmatpush3.msra.mxu1 %v1658_v47  ;;  %v1943_v45 = vld [vmem:[%s6579_s30 + $0x180] sm:$0xff] }
 0x9d9   : > { %2747 = vmatprep.subr.bf16.mxu1 %v4846_v17  ;;  %v1951_v47 = vld [vmem:[%s6579_s30 + $0x1c0] sm:$0xff]  ;;  %v4958_v17 = vcombine.high %v2007_v14, %v2015_v15 }
 0x9db   : > { %v1735_v62 = vpop.permute.xlu0 %1734 }
 0x9dc   : > { %v1745_v1 = vsel %vm1075_vm1, %v6699_v63, %v1735_v62  ;;  %v1983_v62 = vld [vmem:[%s6579_s30 + $0x2c0] sm:$0xff] }
 0x9df   : > { %v1739_v0 = vpop.permute.xlu0 %1738 }
 0x9e0   : > { %v1747_v2 = vsel %vm1746_vm3, %v1745_v1, %v1739_v0  ;;  %v1976_v0 = vld [vmem:[%s6579_s30 + $0x288] sm:$0xff] }
 0x9e2   : > { %v5710_v48 = vpop.eup %5709 }
 0x9e3   : > { %v1652_v49 = vsel %vm1152_vm2, %v5710_v48, 0.0 }
 0x9e4   : > { %1653 = vadd.xlane.f32.xlu1 %v1652_v49  ;;  %v4894_v49 = vcombine.high %v1943_v45, %v1951_v47 }
 0xa71   : > { %v1654_v50 = vpop.xlane.xlu1 %1653 }
 0xa72   : > { %5711 = vrcp.f32 %v1654_v50  ;;  %v1952_v50 = vld [vmem:[%s6579_s30 + $0x1c8] sm:$0xff] }
 0xa7c   : > { %v5712_v46 = vpop.eup %5711 }
 0xa7d   : > { %v1656_v51 = vmul.f32 %v5712_v46, %v5710_v48  ;;  %v1944_v48 = vld [vmem:[%s6579_s30 + $0x188] sm:$0xff]  ;;  %v4893_v46 = vcombine.low %v1943_v45, %v1951_v47  ;;  %v1914_v45 = vld [vmem:[%s6579_s30 + $0x98] sm:$0xff] }
 0xa7e   : > { %v4896_v52 = vcombine.high %v1944_v48, %v1952_v50  ;;  %v1922_v47 = vld [vmem:[%s6579_s30 + $0xd8] sm:$0xff] }
 0xa7f   : > { %5382 = vmatmul.mubr.msk.f32.vlgmr.msra.gmra.mrb[18].mxu1 %vm1152_vm2, %v1656_v51  ;;  %v4895_v51 = vcombine.low %v1944_v48, %v1952_v50 }
 0xa80   : > { %2779 = vmatprep.mubr.bf16.mxu1 %v6097_v3  ;;  %2748 = vmatpush1.bf16.msra.mxu1 %v4845_v16  ;;  %v2008_v16 = vld [vmem:[%s6579_s30 + $0x388] sm:$0xff] }
 0xa81   : > { %2749 = vmatprep.subr.bf16.mxu1 %v4862_v28  ;;  %v4959_v20 = vcombine.low %v2008_v16, %v2016_v18  ;;  %v1906_v28 = vld [vmem:[%s6579_s30 + $0x58] sm:$0xff] }
 0xa82   : > { %v4851_v29 = vcombine.low %v1898_v25, %v1906_v28 }
 0xa84   : > { %2750 = vmatpush1.bf16.msra.mxu1 %v4861_v32  ;;  %v4852_v32 = vcombine.high %v1898_v25, %v1906_v28  ;;  %v2009_v28 = vld [vmem:[%s6579_s30 + $0x390] sm:$0xff] }
 0xa85   : > { %2751 = vmatprep.subr.bf16.mxu1 %v4878_v39 }
 0xa88   : > { %2752 = vmatpush1.bf16.msra.mxu1 %v4877_v41 }
 0xa89   : > { %2753 = vmatprep.subr.bf16.mxu1 %v4894_v49 }
 0xa8c   : > { %2754 = vmatpush1.bf16.msra.mxu1 %v4893_v46  ;;  %v4868_v46 = vcombine.high %v1914_v45, %v1922_v47 }
 0xa8d   : > { %2755 = vmatprep.subr.bf16.mxu1 %v4910_v56 }
 0xa90   : > { %2756 = vmatpush1.bf16.msra.mxu1 %v4909_v58  ;;  %v1945_v58 = vld [vmem:[%s6579_s30 + $0x190] sm:$0xff] }
 0xb52   : > { %v1729_v60 = vpop.f32.mrb[18].mxu1 }
 0xb53   : > { %1742 = vrot.lane.b32.xlu0 %v1729_v60, %s6100_s1  ;;  %v5383_v61 = vpop.f32.mrb[19].mxu1  ;;  %v4912_v60 = vcombine.high %v1960_v55, %v1968_v57  ;;  %v4867_v55 = vcombine.low %v1914_v45, %v1922_v47 }
 0xb54   : > { %v1975_v61 = vld [vmem:[%s6579_s30 + $0x280] sm:$0xff] }
 0xb55   : > { %v4926_v1 = vcombine.high %v1975_v61, %v1983_v62 }
 0xb57   : > { %2757 = vmatprep.subr.bf16.mxu1 %v4926_v1 }
 0xbc5   : > { %v1743_v5 = vpop.permute.xlu0 %1742 }
 0xbc6   : > { %v1749_v4 = vsel %vm1748_vm4, %v1747_v2, %v1743_v5  ;;  %v1984_v2 = vld [vmem:[%s6579_s30 + $0x2c8] sm:$0xff]  ;;  %v4925_v5 = vcombine.low %v1975_v61, %v1983_v62  ;;  %v1954_v61 = vld [vmem:[%s6579_s30 + $0x1d8] sm:$0xff] }
 0xbc7   : > { %v1750_v6 = vpack.c.bf16 %v1749_v4, %v1749_v4  ;;  %v4927_v4 = vcombine.low %v1976_v0, %v1984_v2 }
 0xbc8   : > { %2758 = vmatpush1.bf16.msra.mxu1 %v4925_v5  ;;  %v1961_v5 = vld [vmem:[%s6579_s30 + $0x210] sm:$0xff] }
 0xbc9   : > { %5401 = vmatmul.mubr.bf16.vlgmr.msra.gmra.mrb[4].mxu0 %v1750_v6  ;;  %v4928_v6 = vcombine.high %v1976_v0, %v1984_v2 }
 0xbca   : > { %2820 = vmatprep.mubr.bf16.mxu0 %v6097_v3  ;;  %2789 = vmatpush1.bf16.msra.mxu0 %v4847_v19  ;;  %v4957_v19 = vcombine.low %v2007_v14, %v2015_v15  ;;  %v1986_v14 = vld [vmem:[%s6579_s30 + $0x2d8] sm:$0xff] }
 0xbcb   : > { %2790 = vmatprep.subr.bf16.mxu0 %v4864_v35 }
 0xbce   : > { %2791 = vmatpush1.bf16.msra.mxu0 %v4863_v34 }
 0xbcf   : > { %2792 = vmatprep.subr.bf16.mxu0 %v4880_v44  ;;  %v1921_v44 = vld [vmem:[%s6579_s30 + $0xd0] sm:$0xff] }
 0xbd2   : > { %2793 = vmatpush1.bf16.msra.mxu0 %v4879_v43  ;;  %v1913_v43 = vld [vmem:[%s6579_s30 + $0x90] sm:$0xff] }
 0xbd3   : > { %2794 = vmatprep.subr.bf16.mxu0 %v4896_v52  ;;  %v4866_v50 = vcombine.high %v1913_v43, %v1921_v44  ;;  %v1937_v52 = vld [vmem:[%s6579_s30 + $0x150] sm:$0xff]  ;;  %v4865_v54 = vcombine.low %v1913_v43, %v1921_v44  ;;  %v1908_v43 = vld [vmem:[%s6579_s30 + $0x68] sm:$0xff] }
 0xbd6   : > { %2795 = vmatpush1.bf16.msra.mxu0 %v4895_v51  ;;  %v1929_v51 = vld [vmem:[%s6579_s30 + $0x110] sm:$0xff] }
 0xbd7   : > { %2796 = vmatprep.subr.bf16.mxu0 %v4912_v60  ;;  %v4882_v56 = vcombine.high %v1929_v51, %v1937_v52  ;;  %v1946_v60 = vld [vmem:[%s6579_s30 + $0x198] sm:$0xff]  ;;  %v4881_v62 = vcombine.low %v1929_v51, %v1937_v52  ;;  %v1916_v51 = vld [vmem:[%s6579_s30 + $0xa8] sm:$0xff] }
 0xbd8   : > { %v4900_v2 = vcombine.high %v1946_v60, %v1954_v61  ;;  %v1924_v52 = vld [vmem:[%s6579_s30 + $0xe8] sm:$0xff] }
 0xbda   : > { %2797 = vmatpush1.bf16.msra.mxu0 %v4911_v59  ;;  %v1953_v59 = vld [vmem:[%s6579_s30 + $0x1d0] sm:$0xff] }
 0xbdb   : > { %2798 = vmatprep.subr.bf16.mxu0 %v4928_v6  ;;  %v4898_v1 = vcombine.high %v1945_v58, %v1953_v59  ;;  %v1962_v6 = vld [vmem:[%s6579_s30 + $0x218] sm:$0xff] }
 0xbde   : > { %2799 = vmatpush1.bf16.msra.mxu0 %v4927_v4  ;;  %v1969_v4 = vld [vmem:[%s6579_s30 + $0x250] sm:$0xff] }
 0xbdf   : > { %v4913_v15 = vcombine.low %v1961_v5, %v1969_v4 }
 0xc9c   : > { %v1856_v8 = vpop.f32.mrb[4].mxu0 }
 0xc9d   : > { %v1857_v9 = vadd.f32 %v4834_v7, %v1856_v8  ;;  %v5402_v10 = vpop.f32.mrb[5].mxu0  ;;  %v1991_v7 = vld [vmem:[%s6579_s30 + $0x300] sm:$0xff] }
 0xc9e   : > { %v1859_v11 = vpop.f32.mrb[6].mxu0  ;;  %v1999_v8 = vld [vmem:[%s6579_s30 + $0x340] sm:$0xff] }
 0xc9f   : > { %v5403_v63 = vpop.f32.mrb[7].mxu0  ;;  %v1862_v12 = vadd.f32 %v1857_v9, %v6638_v24  ;;  %v1992_v9 = vld [vmem:[%s6579_s30 + $0x308] sm:$0xff]  ;;  %v4942_v10 = vcombine.high %v1991_v7, %v1999_v8 }
 0xca0   : > { %v2000_v11 = vld [vmem:[%s6579_s30 + $0x348] sm:$0xff]  ;;  %v4941_v63 = vcombine.low %v1991_v7, %v1999_v8  ;;  %v1970_v7 = vld [vmem:[%s6579_s30 + $0x258] sm:$0xff]  ;;  %v4897_v8 = vcombine.low %v1945_v58, %v1953_v59 }
 0xca1   : > { %1865 = vadd.xlane.f32.xlu1 %v1862_v12  ;;  %v4944_v13 = vcombine.high %v1992_v9, %v2000_v11  ;;  %2759 = vmatprep.subr.bf16.mxu1 %v4942_v10  ;;  %v4914_v10 = vcombine.high %v1961_v5, %v1969_v4  ;;  %v1932_v58 = vld [vmem:[%s6579_s30 + $0x128] sm:$0xff] }
 0xca2   : > { %2760 = vmatpush1.bf16.msra.mxu1 %v4941_v63  ;;  %v1977_v63 = vld [vmem:[%s6579_s30 + $0x290] sm:$0xff]  ;;  %v1940_v59 = vld [vmem:[%s6579_s30 + $0x168] sm:$0xff] }
 0xca3   : > { %2800 = vmatprep.subr.bf16.mxu0 %v4944_v13  ;;  %2761 = vmatprep.subr.bf16.mxu1 %v4958_v17  ;;  %v1978_v13 = vld [vmem:[%s6579_s30 + $0x298] sm:$0xff]  ;;  %v1948_v5 = vld [vmem:[%s6579_s30 + $0x1a8] sm:$0xff] }
 0xca4   : > { %v4931_v25 = vcombine.low %v1978_v13, %v1986_v14  ;;  %v1956_v4 = vld [vmem:[%s6579_s30 + $0x1e8] sm:$0xff] }
 0xca6   : > { %2762 = vmatpush1.bf16.msra.mxu1 %v4957_v19  ;;  %v1993_v19 = vld [vmem:[%s6579_s30 + $0x310] sm:$0xff] }
 0xd2e   : > { %v1866_v21 = vpop.xlane.xlu1 %1865 }
 0xd2f   : > { %v1868_v24 = vmul.f32 0.0078125, %v1866_v21  ;;  %v4960_v21 = vcombine.high %v2008_v16, %v2016_v18  ;;  %v4915_v16 = vcombine.low %v1962_v6, %v1970_v7  ;;  %v4932_v18 = vcombine.high %v1978_v13, %v1986_v14 }
 0xd30   : > { %v4903_v14 = vcombine.low %v1948_v5, %v1956_v4 }
 0xd31   : > { %v6772_v22 = vsub.f32 %v1862_v12, %v1868_v24  ;;  %v4943_v12 = vcombine.low %v1992_v9, %v2000_v11  ;;  %v1897_v24 = vld [vmem:[%s6579_s30 + $0x10] sm:$0xff]  ;;  %v4899_v9 = vcombine.low %v1946_v60, %v1954_v61  ;;  %v4916_v11 = vcombine.high %v1962_v6, %v1970_v7 }
 0xd32   : > { %v4871_v61 = vcombine.low %v1916_v51, %v1924_v52  ;;  %v4887_v7 = vcombine.low %v1932_v58, %v1940_v59 }
 0xd33   : > { %v1870_v23 = vmul.f32 %v6772_v22, %v6772_v22  ;;  %2801 = vmatpush1.bf16.msra.mxu0 %v4943_v12  ;;  %v1985_v12 = vld [vmem:[%s6579_s30 + $0x2d0] sm:$0xff] }
 0xd34   : > { %2802 = vmatprep.subr.bf16.mxu0 %v4960_v21  ;;  %v4930_v17 = vcombine.high %v1977_v63, %v1985_v12  ;;  %v1994_v21 = vld [vmem:[%s6579_s30 + $0x318] sm:$0xff] }
 0xd35   : > { %1871 = vadd.xlane.f32.xlu0 %v1870_v23  ;;  %v1905_v23 = vld [vmem:[%s6579_s30 + $0x50] sm:$0xff] }
 0xd36   : > { %v4849_v26 = vcombine.low %v1897_v24, %v1905_v23  ;;  %v4850_v27 = vcombine.high %v1897_v24, %v1905_v23  ;;  %v2002_v24 = vld [vmem:[%s6579_s30 + $0x358] sm:$0xff]  ;;  %v4929_v23 = vcombine.low %v1977_v63, %v1985_v12  ;;  %v1964_v63 = vld [vmem:[%s6579_s30 + $0x228] sm:$0xff] }
 0xd37   : > { %2803 = vmatpush1.bf16.msra.mxu0 %v4959_v20  ;;  %v2001_v20 = vld [vmem:[%s6579_s30 + $0x350] sm:$0xff]  ;;  %v1972_v12 = vld [vmem:[%s6579_s30 + $0x268] sm:$0xff] }
 0xd38   : > { %2829 = vmatprep.subr.bf16.mxu1 %v4850_v27  ;;  %2870 = vmatprep.subr.bf16.mxu0 %v4852_v32  ;;  %v4948_v27 = vcombine.high %v1994_v21, %v2002_v24  ;;  %v2010_v32 = vld [vmem:[%s6579_s30 + $0x398] sm:$0xff] }
 0xdc2   : > { %v1872_v34 = vpop.xlane.xlu0 %1871 }
 0xdc3   : > { %v1873_v35 = vmul.f32 0.0078125, %v1872_v34  ;;  %v2018_v34 = vld [vmem:[%s6579_s30 + $0x3d8] sm:$0xff] }
 0xdc4   : > { %v4963_v45 = vcombine.low %v2010_v32, %v2018_v34 }
 0xdc5   : > { %v1874_v36 = vadd.f32 1e-05, %v1873_v35  ;;  %v4945_v35 = vcombine.low %v1993_v19, %v2001_v20 }
 0xdc7   : > { %5713 = vrsqrt.f32 %v1874_v36  ;;  %v4947_v36 = vcombine.low %v1994_v21, %v2002_v24  ;;  %v4919_v24 = vcombine.low %v1964_v63, %v1972_v12 }
 0xdd1   : > { %v5714_v37 = vpop.eup %5713 }
 0xdd2   : > { %v1876_v39 = vmul.f32 %v5714_v37, %v6772_v22  ;;  %v1930_v22 = vld [vmem:[%s6579_s30 + $0x118] sm:$0xff] }
 0xdd3   : > { %v4884_v57 = vcombine.high %v1930_v22, %v1938_v53  ;;  %v4883_v0 = vcombine.low %v1930_v22, %v1938_v53 }
 0xdd4   : > { %v1883_v41 = vmul.f32 %v4843_v38, %v1876_v39  ;;  %v4964_v38 = vcombine.high %v2010_v32, %v2018_v34  ;;  %v1899_v39 = vld [vmem:[%s6579_s30 + $0x20] sm:$0xff] }
 0xdd6   : > { %v1890_v48 = vadd.f32 %v4844_v40, %v1883_v41  ;;  %v1907_v40 = vld [vmem:[%s6579_s30 + $0x60] sm:$0xff]  ;;  %v1900_v41 = vld [vmem:[%s6579_s30 + $0x28] sm:$0xff] }
 0xdd7   : > { %v4854_v47 = vcombine.high %v1899_v39, %v1907_v40  ;;  %v4853_v22 = vcombine.low %v1899_v39, %v1907_v40  ;;  %v4855_v53 = vcombine.low %v1900_v41, %v1908_v43  ;;  %v2012_v39 = vld [vmem:[%s6579_s30 + $0x3a8] sm:$0xff] }
 0xdd8   : > { %1891 = vst [vmem:[#allocation2] sm:$0xff] %v1890_v48  ;;  %v6820_v49 = vpack.c.bf16 %v1890_v48, %v1890_v48  ;;  %v4856_v48 = vcombine.high %v1900_v41, %v1908_v43  ;;  %v2020_v40 = vld [vmem:[%s6579_s30 + $0x3e8] sm:$0xff] }
 0xdda   : > { %2780 = vmatmul.mubr.bf16.vlgmr.msra.gmra.mrb[20].mxu1 %v6820_v49  ;;  %2821 = vmatmul.mubr.bf16.vlgmr.msra.gmra.mrb[8].mxu0 %v6820_v49 }
 0xddb   : > { %2830 = vmatpush1.bf16.msra.mxu1 %v4849_v26  ;;  %2871 = vmatpush1.bf16.msra.mxu0 %v4851_v29  ;;  %v4946_v26 = vcombine.high %v1993_v19, %v2001_v20  ;;  %v2017_v29 = vld [vmem:[%s6579_s30 + $0x3d0] sm:$0xff]  ;;  %v1980_v19 = vld [vmem:[%s6579_s30 + $0x2a8] sm:$0xff] }
 0xddc   : > { %2831 = vmatprep.subr.bf16.mxu1 %v4866_v50  ;;  %2872 = vmatprep.subr.bf16.mxu0 %v4868_v46  ;;  %v4962_v37 = vcombine.high %v2009_v28, %v2017_v29  ;;  %v4961_v44 = vcombine.low %v2009_v28, %v2017_v29  ;;  %v1915_v50 = vld [vmem:[%s6579_s30 + $0xa0] sm:$0xff]  ;;  %v1988_v20 = vld [vmem:[%s6579_s30 + $0x2e8] sm:$0xff] }
 0xddd   : > { %2861 = vmatprep.mubr.bf16.mxu1 %v6097_v3  ;;  %2902 = vmatprep.mubr.bf16.mxu0 %v6097_v3  ;;  %v1923_v46 = vld [vmem:[%s6579_s30 + $0xe0] sm:$0xff]  ;;  %v1996_v28 = vld [vmem:[%s6579_s30 + $0x328] sm:$0xff]  ;;  %v4935_v34 = vcombine.low %v1980_v19, %v1988_v20 }
 0xdde   : > { %v4869_v60 = vcombine.low %v1915_v50, %v1923_v46  ;;  %v2004_v29 = vld [vmem:[%s6579_s30 + $0x368] sm:$0xff] }
 0xddf   : > { %2832 = vmatpush1.bf16.msra.mxu1 %v4865_v54  ;;  %2873 = vmatpush1.bf16.msra.mxu0 %v4867_v55  ;;  %v4870_v54 = vcombine.high %v1915_v50, %v1923_v46  ;;  %v4872_v55 = vcombine.high %v1916_v51, %v1924_v52  ;;  %v4951_v43 = vcombine.low %v1996_v28, %v2004_v29  ;;  %v1902_v50 = vld [vmem:[%s6579_s30 + $0x38] sm:$0xff] }
 0xde0   : > { %2833 = vmatprep.subr.bf16.mxu1 %v4882_v56  ;;  %2874 = vmatprep.subr.bf16.mxu0 %v4884_v57  ;;  %v1931_v56 = vld [vmem:[%s6579_s30 + $0x120] sm:$0xff]  ;;  %v1910_v46 = vld [vmem:[%s6579_s30 + $0x78] sm:$0xff]  ;;  %v4967_v52 = vcombine.low %v2012_v39, %v2020_v40 }
 0xde1   : > { %v1939_v57 = vld [vmem:[%s6579_s30 + $0x160] sm:$0xff] }
 0xde2   : > { %v4885_v6 = vcombine.low %v1931_v56, %v1939_v57 }
 0xde3   : > { %2834 = vmatpush1.bf16.msra.mxu1 %v4881_v62  ;;  %2875 = vmatpush1.bf16.msra.mxu0 %v4883_v0  ;;  %v4886_v62 = vcombine.high %v1931_v56, %v1939_v57  ;;  %v4888_v0 = vcombine.high %v1932_v58, %v1940_v59  ;;  %v1918_v56 = vld [vmem:[%s6579_s30 + $0xb8] sm:$0xff]  ;;  %v4859_v59 = vcombine.low %v1902_v50, %v1910_v46 }
 0xde4   : > { %2835 = vmatprep.subr.bf16.mxu1 %v4898_v1  ;;  %2876 = vmatprep.subr.bf16.mxu0 %v4900_v2  ;;  %v1947_v1 = vld [vmem:[%s6579_s30 + $0x1a0] sm:$0xff]  ;;  %v1926_v57 = vld [vmem:[%s6579_s30 + $0xf8] sm:$0xff] }
 0xde5   : > { %v1955_v2 = vld [vmem:[%s6579_s30 + $0x1e0] sm:$0xff] }
 0xde6   : > { %v4901_v13 = vcombine.low %v1947_v1, %v1955_v2 }
 0xde7   : > { %2836 = vmatpush1.bf16.msra.mxu1 %v4897_v8  ;;  %2877 = vmatpush1.bf16.msra.mxu0 %v4899_v9  ;;  %v4902_v8 = vcombine.high %v1947_v1, %v1955_v2  ;;  %v4904_v9 = vcombine.high %v1948_v5, %v1956_v4  ;;  %v1934_v1 = vld [vmem:[%s6579_s30 + $0x138] sm:$0xff]  ;;  %v4875_v4 = vcombine.low %v1918_v56, %v1926_v57 }
 0xde8   : > { %2837 = vmatprep.subr.bf16.mxu1 %v4914_v10  ;;  %2878 = vmatprep.subr.bf16.mxu0 %v4916_v11  ;;  %v1963_v10 = vld [vmem:[%s6579_s30 + $0x220] sm:$0xff]  ;;  %v1942_v2 = vld [vmem:[%s6579_s30 + $0x178] sm:$0xff] }
 0xde9   : > { %v1971_v11 = vld [vmem:[%s6579_s30 + $0x260] sm:$0xff] }
 0xdea   : > { %v4917_v21 = vcombine.low %v1963_v10, %v1971_v11 }
 0xdeb   : > { %2838 = vmatpush1.bf16.msra.mxu1 %v4913_v15  ;;  %2879 = vmatpush1.bf16.msra.mxu0 %v4915_v16  ;;  %v4918_v15 = vcombine.high %v1963_v10, %v1971_v11  ;;  %v4920_v16 = vcombine.high %v1964_v63, %v1972_v12  ;;  %v1950_v10 = vld [vmem:[%s6579_s30 + $0x1b8] sm:$0xff]  ;;  %v4891_v12 = vcombine.low %v1934_v1, %v1942_v2 }
 0xdec   : > { %2839 = vmatprep.subr.bf16.mxu1 %v4930_v17  ;;  %2880 = vmatprep.subr.bf16.mxu0 %v4932_v18  ;;  %v1979_v17 = vld [vmem:[%s6579_s30 + $0x2a0] sm:$0xff]  ;;  %v1958_v11 = vld [vmem:[%s6579_s30 + $0x1f8] sm:$0xff] }
 0xded   : > { %v1987_v18 = vld [vmem:[%s6579_s30 + $0x2e0] sm:$0xff] }
 0xdee   : > { %v4933_v32 = vcombine.low %v1979_v17, %v1987_v18 }
 0xdef   : > { %2840 = vmatpush1.bf16.msra.mxu1 %v4929_v23  ;;  %2881 = vmatpush1.bf16.msra.mxu0 %v4931_v25  ;;  %v4934_v23 = vcombine.high %v1979_v17, %v1987_v18  ;;  %v4936_v25 = vcombine.high %v1980_v19, %v1988_v20  ;;  %v1966_v17 = vld [vmem:[%s6579_s30 + $0x238] sm:$0xff] }
 0xdf0   : > { %2841 = vmatprep.subr.bf16.mxu1 %v4946_v26  ;;  %2882 = vmatprep.subr.bf16.mxu0 %v4948_v27  ;;  %v1995_v26 = vld [vmem:[%s6579_s30 + $0x320] sm:$0xff]  ;;  %v1974_v18 = vld [vmem:[%s6579_s30 + $0x278] sm:$0xff] }
 0xdf1   : > { %v2003_v27 = vld [vmem:[%s6579_s30 + $0x360] sm:$0xff] }
 0xdf2   : > { %v4949_v41 = vcombine.low %v1995_v26, %v2003_v27 }
 0xdf3   : > { %2842 = vmatpush1.bf16.msra.mxu1 %v4945_v35  ;;  %2883 = vmatpush1.bf16.msra.mxu0 %v4947_v36  ;;  %v4950_v35 = vcombine.high %v1995_v26, %v2003_v27  ;;  %v4952_v36 = vcombine.high %v1996_v28, %v2004_v29  ;;  %v1990_v26 = vld [vmem:[%s6579_s30 + $0x2f8] sm:$0xff]  ;;  %v4923_v28 = vcombine.low %v1966_v17, %v1974_v18 }
 0xdf4   : > { %2843 = vmatprep.subr.bf16.mxu1 %v4962_v37  ;;  %2884 = vmatprep.subr.bf16.mxu0 %v4964_v38  ;;  %v2011_v37 = vld [vmem:[%s6579_s30 + $0x3a0] sm:$0xff] }
 0xdf5   : > { %v2019_v38 = vld [vmem:[%s6579_s30 + $0x3e0] sm:$0xff] }
 0xdf6   : > { %v4965_v51 = vcombine.low %v2011_v37, %v2019_v38 }
 0xdf7   : > { %2844 = vmatpush1.bf16.msra.mxu1 %v4961_v44  ;;  %2885 = vmatpush1.bf16.msra.mxu0 %v4963_v45  ;;  %v4966_v44 = vcombine.high %v2011_v37, %v2019_v38  ;;  %v4968_v45 = vcombine.high %v2012_v39, %v2020_v40  ;;  %v2006_v37 = vld [vmem:[%s6579_s30 + $0x378] sm:$0xff] }
 0xdf8   : > { %2911 = vmatprep.subr.bf16.mxu1 %v4854_v47  ;;  %2952 = vmatprep.subr.bf16.mxu0 %v4856_v48  ;;  %v1901_v47 = vld [vmem:[%s6579_s30 + $0x30] sm:$0xff] }
 0xdf9   : > { %v1909_v48 = vld [vmem:[%s6579_s30 + $0x70] sm:$0xff] }
 0xdfa   : > { %2862 = vmatmul.mubr.bf16.vlgmr.msra.gmra.mrb[24].mxu1 %v6820_v49  ;;  %2903 = vmatmul.mubr.bf16.vlgmr.msra.gmra.mrb[12].mxu0 %v6820_v49  ;;  %v4857_v58 = vcombine.low %v1901_v47, %v1909_v48 }
 0xdfb   : > { %2912 = vmatpush1.bf16.msra.mxu1 %v4853_v22  ;;  %2953 = vmatpush1.bf16.msra.mxu0 %v4855_v53  ;;  %v4858_v22 = vcombine.high %v1901_v47, %v1909_v48  ;;  %v4860_v53 = vcombine.high %v1902_v50, %v1910_v46  ;;  %v2022_v47 = vld [vmem:[%s6579_s30 + $0x3f8] sm:$0xff] }
 0xdfc   : > { %2913 = vmatprep.subr.bf16.mxu1 %v4870_v54  ;;  %2954 = vmatprep.subr.bf16.mxu0 %v4872_v55  ;;  %v1917_v54 = vld [vmem:[%s6579_s30 + $0xb0] sm:$0xff] }
 0xdfd   : > { %2943 = vmatprep.mubr.bf16.mxu1 %v6097_v3  ;;  %2984 = vmatprep.mubr.bf16.mxu0 %v6097_v3  ;;  %v1925_v55 = vld [vmem:[%s6579_s30 + $0xf0] sm:$0xff] }
 0xdfe   : > { %v4873_v5 = vcombine.low %v1917_v54, %v1925_v55 }
 0xdff   : > { %2914 = vmatpush1.bf16.msra.mxu1 %v4869_v60  ;;  %2955 = vmatpush1.bf16.msra.mxu0 %v4871_v61  ;;  %v4874_v60 = vcombine.high %v1917_v54, %v1925_v55  ;;  %v4876_v61 = vcombine.high %v1918_v56, %v1926_v57  ;;  %v5570_v54 = vld [vmem:[%s6608_s3 + $0xc0] sm:$0xff]   ;;  %v5573_v57 = vld [vmem:[%s6608_s3 + $0x48] sm:$0xff]  }
 0xe00   : > { %2915 = vmatprep.subr.bf16.mxu1 %v4886_v62  ;;  %2956 = vmatprep.subr.bf16.mxu0 %v4888_v0  ;;  %v1933_v62 = vld [vmem:[%s6579_s30 + $0x130] sm:$0xff]  ;;  %v5571_v55 = vld [vmem:[%s6608_s3] sm:$0xff]  }
 0xe01   : > { %v1941_v0 = vld [vmem:[%s6579_s30 + $0x170] sm:$0xff]  ;;  %v5572_v56 = vld [vmem:[%s6608_s3 + $0x80] sm:$0xff]  }
 0xe02   : > { %v4889_v63 = vcombine.low %v1933_v62, %v1941_v0 }
 0xe03   : > { %2916 = vmatpush1.bf16.msra.mxu1 %v4885_v6  ;;  %2957 = vmatpush1.bf16.msra.mxu0 %v4887_v7  ;;  %v4890_v6 = vcombine.high %v1933_v62, %v1941_v0  ;;  %v4892_v7 = vcombine.high %v1934_v1, %v1942_v2  ;;  %v5578_v62 = vld [vmem:[%s6608_s3 + $0xd0] sm:$0xff]   ;;  %v5582_v2 = vld [vmem:[%s6608_s3 + $0xd8] sm:$0xff]  }
 0xe04   : > { %2917 = vmatprep.subr.bf16.mxu1 %v4902_v8  ;;  %2958 = vmatprep.subr.bf16.mxu0 %v4904_v9  ;;  %v1949_v8 = vld [vmem:[%s6579_s30 + $0x1b0] sm:$0xff] }
 0xe05   : > { %v1957_v9 = vld [vmem:[%s6579_s30 + $0x1f0] sm:$0xff] }
 0xe06   : > { %v4905_v19 = vcombine.low %v1949_v8, %v1957_v9  ;;  %v5579_v0 = vld [vmem:[%s6608_s3 + $0x10] sm:$0xff]  }
 0xe07   : > { %2918 = vmatpush1.bf16.msra.mxu1 %v4901_v13  ;;  %2959 = vmatpush1.bf16.msra.mxu0 %v4903_v14  ;;  %v4906_v13 = vcombine.high %v1949_v8, %v1957_v9  ;;  %v4908_v14 = vcombine.high %v1950_v10, %v1958_v11  ;;  %v5580_v1 = vld [vmem:[%s6608_s3 + $0x90] sm:$0xff]   ;;  %v5587_v8 = vld [vmem:[%s6608_s3 + $0x20] sm:$0xff]  }
 0xe08   : > { %2919 = vmatprep.subr.bf16.mxu1 %v4918_v15  ;;  %2960 = vmatprep.subr.bf16.mxu0 %v4920_v16  ;;  %v1965_v15 = vld [vmem:[%s6579_s30 + $0x230] sm:$0xff]  ;;  %v5588_v9 = vld [vmem:[%s6608_s3 + $0xa0] sm:$0xff]  }
 0xe09   : > { %v1973_v16 = vld [vmem:[%s6579_s30 + $0x270] sm:$0xff] }
 0xe0a   : > { %v4922_v20 = vcombine.high %v1965_v15, %v1973_v16  ;;  %v4921_v27 = vcombine.low %v1965_v15, %v1973_v16  ;;  %v5595_v15 = vld [vmem:[%s6608_s3 + $0x30] sm:$0xff]  }
 0xe0b   : > { %2920 = vmatpush1.bf16.msra.mxu1 %v4917_v21  ;;  %2961 = vmatpush1.bf16.msra.mxu0 %v4919_v24  ;;  %v4924_v21 = vcombine.high %v1966_v17, %v1974_v18  ;;  %v1981_v24 = vld [vmem:[%s6579_s30 + $0x2b0] sm:$0xff]  ;;  %v5597_v17 = vld [vmem:[%s6608_s3 + $0x78] sm:$0xff]  }
 0xe0c   : > { %2921 = vmatprep.subr.bf16.mxu1 %v4934_v23  ;;  %2962 = vmatprep.subr.bf16.mxu0 %v4936_v25  ;;  %v1989_v23 = vld [vmem:[%s6579_s30 + $0x2f0] sm:$0xff]  ;;  %v1982_v25 = vld [vmem:[%s6579_s30 + $0x2b8] sm:$0xff] }
 0xe0d   : > { %v4938_v29 = vcombine.high %v1981_v24, %v1989_v23  ;;  %v4937_v38 = vcombine.low %v1981_v24, %v1989_v23  ;;  %v4939_v39 = vcombine.low %v1982_v25, %v1990_v26  ;;  %v5596_v16 = vld [vmem:[%s6608_s3 + $0xb0] sm:$0xff]   ;;  %v5598_v18 = vld [vmem:[%s6608_s3 + $0xf8] sm:$0xff]   ;;  %v6959_v24 = vld [vmem:[%s6606_s13] sm:$0xff]  ;;  %v2041_v23 = vsub.s32 3, %v6655_v30 }
 0xe0f   : > { %2922 = vmatpush1.bf16.msra.mxu1 %v4933_v32  ;;  %2963 = vmatpush1.bf16.msra.mxu0 %v4935_v34  ;;  %v4940_v32 = vcombine.high %v1982_v25, %v1990_v26  ;;  %v1997_v34 = vld [vmem:[%s6579_s30 + $0x330] sm:$0xff]  ;;  %v2030_v25 = vrot.slane %v6959_v24, %v6658_v31  ;;  %v2038_v26 = vrot.slane %v6959_v24, %v6669_v42 }
 0xe10   : > { %2923 = vmatprep.subr.bf16.mxu1 %v4950_v35  ;;  %2964 = vmatprep.subr.bf16.mxu0 %v4952_v36  ;;  %v2005_v35 = vld [vmem:[%s6579_s30 + $0x370] sm:$0xff]  ;;  %v1998_v36 = vld [vmem:[%s6579_s30 + $0x338] sm:$0xff] }
 0xe11   : > { %v4954_v40 = vcombine.high %v1997_v34, %v2005_v35  ;;  %v4953_v48 = vcombine.low %v1997_v34, %v2005_v35  ;;  %v4955_v50 = vcombine.low %v1998_v36, %v2006_v37 }
 0xe13   : > { %2924 = vmatpush1.bf16.msra.mxu1 %v4949_v41  ;;  %2965 = vmatpush1.bf16.msra.mxu0 %v4951_v43  ;;  %v4956_v41 = vcombine.high %v1998_v36, %v2006_v37  ;;  %v2013_v43 = vld [vmem:[%s6579_s30 + $0x3b0] sm:$0xff] }
 0xe14   : > { %2925 = vmatprep.subr.bf16.mxu1 %v4966_v44  ;;  %2966 = vmatprep.subr.bf16.mxu0 %v4968_v45  ;;  %v2021_v44 = vld [vmem:[%s6579_s30 + $0x3f0] sm:$0xff]  ;;  %v2014_v45 = vld [vmem:[%s6579_s30 + $0x3b8] sm:$0xff] }
 0xe15   : > { %v4970_v46 = vcombine.high %v2013_v43, %v2021_v44 }
 0xe17   : > { %2926 = vmatpush1.bf16.msra.mxu1 %v4965_v51  ;;  %2967 = vmatpush1.bf16.msra.mxu0 %v4967_v52  ;;  %v4972_v51 = vcombine.high %v2014_v45, %v2022_v47  ;;  %v4969_v52 = vcombine.low %v2013_v43, %v2021_v44 }
 0xe18   : > { %2993 = vmatprep.subr.bf16.mxu1 %v4858_v22  ;;  %3034 = vmatprep.subr.bf16.mxu0 %v4860_v53  ;;  %v4971_v22 = vcombine.low %v2014_v45, %v2022_v47  ;;  %v5569_v53 = vld [vmem:[%s6608_s3 + $0x40] sm:$0xff]  }
 0xe1a   : > { %2944 = vmatmul.mubr.bf16.vlgmr.msra.gmra.mrb[28].mxu1 %v6820_v49  ;;  %2985 = vmatmul.mubr.bf16.vlgmr.msra.gmra.mrb[16].mxu0 %v6820_v49 }
 0xe1b   : > { %2994 = vmatpush1.bf16.msra.mxu1 %v4857_v58  ;;  %3035 = vmatpush1.bf16.msra.mxu0 %v4859_v59  ;;  %v5574_v58 = vld [vmem:[%s6608_s3 + $0xc8] sm:$0xff]  }
 0xe1c   : > { %2995 = vmatprep.subr.bf16.mxu1 %v4874_v60  ;;  %3036 = vmatprep.subr.bf16.mxu0 %v4876_v61  ;;  %v5575_v59 = vld [vmem:[%s6608_s3 + $0x8] sm:$0xff]   ;;  %v5577_v61 = vld [vmem:[%s6608_s3 + $0x50] sm:$0xff]  }
 0xe1d   : > { %3025 = vmatprep.mubr.bf16.mxu1 %v6097_v3  ;;  %3066 = vmatprep.mubr.bf16.mxu0 %v6097_v3  ;;  %v4907_v3 = vcombine.low %v1950_v10, %v1958_v11  ;;  %v5576_v60 = vld [vmem:[%s6608_s3 + $0x88] sm:$0xff]  }
 0xe1e   : > { %v5589_v10 = vld [vmem:[%s6608_s3 + $0x68] sm:$0xff]  }
 0xe1f   : > { %2996 = vmatpush1.bf16.msra.mxu1 %v4873_v5  ;;  %3037 = vmatpush1.bf16.msra.mxu0 %v4875_v4  ;;  %v5583_v5 = vld [vmem:[%s6608_s3 + $0x18] sm:$0xff]   ;;  %v5590_v11 = vld [vmem:[%s6608_s3 + $0xe8] sm:$0xff]  }
 0xe20   : > { %2997 = vmatprep.subr.bf16.mxu1 %v4890_v6  ;;  %3038 = vmatprep.subr.bf16.mxu0 %v4892_v7  ;;  %v5584_v4 = vld [vmem:[%s6608_s3 + $0x98] sm:$0xff]   ;;  %v5585_v6 = vld [vmem:[%s6608_s3 + $0x60] sm:$0xff]  }
 0xe21   : > { %v5586_v7 = vld [vmem:[%s6608_s3 + $0xe0] sm:$0xff]  }
 0xe23   : > { %2998 = vmatpush1.bf16.msra.mxu1 %v4889_v63  ;;  %3039 = vmatpush1.bf16.msra.mxu0 %v4891_v12  ;;  %v5591_v63 = vld [vmem:[%s6608_s3 + $0x28] sm:$0xff]  }
 0xe24   : > { %2999 = vmatprep.subr.bf16.mxu1 %v4906_v13  ;;  %3040 = vmatprep.subr.bf16.mxu0 %v4908_v14  ;;  %v5592_v12 = vld [vmem:[%s6608_s3 + $0xa8] sm:$0xff]   ;;  %v5593_v13 = vld [vmem:[%s6608_s3 + $0x70] sm:$0xff]  }
 0xe25   : > { %v5594_v14 = vld [vmem:[%s6608_s3 + $0xf0] sm:$0xff]  }
 0xe27   : > { %3000 = vmatpush1.bf16.msra.mxu1 %v4905_v19  ;;  %3041 = vmatpush1.bf16.msra.mxu0 %v4907_v3  ;;  %v5599_v19 = vld [vmem:[%s6608_s3 + $0x38] sm:$0xff]  }
 0xe28   : > { %3001 = vmatprep.subr.bf16.mxu1 %v4922_v20  ;;  %3042 = vmatprep.subr.bf16.mxu0 %v4924_v21  ;;  %v5600_v3 = vld [vmem:[%s6608_s3 + $0xb8] sm:$0xff]   ;;  %v5601_v20 = vld [vmem:[%s6608_s3 + $0x140] sm:$0xff]  }
 0xe29   : > { %v5602_v21 = vld [vmem:[%s6608_s3 + $0x1c0] sm:$0xff]  }
 0xe2b   : > { %3002 = vmatpush1.bf16.msra.mxu1 %v4921_v27  ;;  %3043 = vmatpush1.bf16.msra.mxu0 %v4923_v28  ;;  %v2034_v27 = vrot.slane %v6959_v24, %v6662_v33  ;;  %v2042_v28 = vrot.slane %v6959_v24, %v2041_v23 }
 0xe2c   : > { %3003 = vmatprep.subr.bf16.mxu1 %v4938_v29  ;;  %3044 = vmatprep.subr.bf16.mxu0 %v4940_v32 }
 0xe2f   : > { %3004 = vmatpush1.bf16.msra.mxu1 %v4937_v38  ;;  %3045 = vmatpush1.bf16.msra.mxu0 %v4939_v39 }
 0xe30   : > { %3005 = vmatprep.subr.bf16.mxu1 %v4954_v40  ;;  %3046 = vmatprep.subr.bf16.mxu0 %v4956_v41 }
 0xe33   : > { %3006 = vmatpush1.bf16.msra.mxu1 %v4953_v48  ;;  %3047 = vmatpush1.bf16.msra.mxu0 %v4955_v50 }
 0xe34   : > { %3007 = vmatprep.subr.bf16.mxu1 %v4970_v46  ;;  %3048 = vmatprep.subr.bf16.mxu0 %v4972_v51 }
 0xe37   : > { %3008 = vmatpush1.bf16.msra.mxu1 %v4969_v52  ;;  %3049 = vmatpush1.bf16.msra.mxu0 %v4971_v22  ;;  %v5603_v52 = vld [vmem:[%s6608_s3 + $0x100] sm:$0xff]  }
 0xe38   : > { %5148 = vmatprep.subr.bf16.mxu1 %v5569_v53  ;;  %5170 = vmatprep.subr.bf16.mxu0 %v5570_v54  ;;  %v5604_v22 = vld [vmem:[%s6608_s3 + $0x180] sm:$0xff]  }
 0xe3a   : > { %3026 = vmatmul.mubr.bf16.vlgmr.msra.gmra.mrb[32].mxu1 %v6820_v49  ;;  %3067 = vmatmul.mubr.bf16.vlgmr.msra.gmra.mrb[20].mxu0 %v6820_v49  ;;  %v5581_v49 = vld [vmem:[%s6608_s3 + $0x58] sm:$0xff]  }
 0xe3b   : > { %5149 = vmatpush3.bf16.msra.mxu1 %v5571_v55  ;;  %5171 = vmatpush3.bf16.msra.mxu0 %v5572_v56  ;;  %v5605_v55 = vld [vmem:[%s6608_s3 + $0x148] sm:$0xff]  }
 0xe3c   : > { %5150 = vmatprep.subr.bf16.mxu1 %v5573_v57  ;;  %5172 = vmatprep.subr.bf16.mxu0 %v5574_v58  ;;  %v5606_v56 = vld [vmem:[%s6608_s3 + $0x1c8] sm:$0xff]  }
 0xe3d   : > { %v5607_v57 = vld [vmem:[%s6608_s3 + $0x108] sm:$0xff]  }
 0xe3e   : > { %v5608_v58 = vld [vmem:[%s6608_s3 + $0x188] sm:$0xff]  }
 0xe3f   : > { %5151 = vmatpush3.bf16.msra.mxu1 %v5575_v59  ;;  %5173 = vmatpush3.bf16.msra.mxu0 %v5576_v60  ;;  %v5609_v59 = vld [vmem:[%s6608_s3 + $0x150] sm:$0xff]  }
 0xe40   : > { %5152 = vmatprep.subr.bf16.mxu1 %v5577_v61  ;;  %5174 = vmatprep.subr.bf16.mxu0 %v5578_v62  ;;  %v5610_v60 = vld [vmem:[%s6608_s3 + $0x1d0] sm:$0xff]  }
 0xe41   : > { %v5611_v61 = vld [vmem:[%s6608_s3 + $0x110] sm:$0xff]  }
 0xe42   : > { %v5612_v62 = vld [vmem:[%s6608_s3 + $0x190] sm:$0xff]  }
 0xe43   : > { %5153 = vmatpush3.bf16.msra.mxu1 %v5579_v0  ;;  %5175 = vmatpush3.bf16.msra.mxu0 %v5580_v1  ;;  %v5613_v0 = vld [vmem:[%s6608_s3 + $0x158] sm:$0xff]  }
 0xe44   : > { %5154 = vmatprep.subr.bf16.mxu1 %v5581_v49  ;;  %5176 = vmatprep.subr.bf16.mxu0 %v5582_v2  ;;  %v5614_v1 = vld [vmem:[%s6608_s3 + $0x1d8] sm:$0xff]  }
 0xe45   : > { %v5615_v49 = vld [vmem:[%s6608_s3 + $0x118] sm:$0xff]  }
 0xe46   : > { %v5616_v2 = vld [vmem:[%s6608_s3 + $0x198] sm:$0xff]  }
 0xe47   : > { %5155 = vmatpush3.bf16.msra.mxu1 %v5583_v5  ;;  %5177 = vmatpush3.bf16.msra.mxu0 %v5584_v4  ;;  %v5617_v5 = vld [vmem:[%s6608_s3 + $0x160] sm:$0xff]  }
 0xe48   : > { %5156 = vmatprep.subr.bf16.mxu1 %v5585_v6  ;;  %5178 = vmatprep.subr.bf16.mxu0 %v5586_v7  ;;  %v5618_v4 = vld [vmem:[%s6608_s3 + $0x1e0] sm:$0xff]  }
 0xe49   : > { %v5619_v6 = vld [vmem:[%s6608_s3 + $0x120] sm:$0xff]  }
 0xe4a   : > { %v5620_v7 = vld [vmem:[%s6608_s3 + $0x1a0] sm:$0xff]  }
 0xe4b   : > { %5157 = vmatpush3.bf16.msra.mxu1 %v5587_v8  ;;  %5179 = vmatpush3.bf16.msra.mxu0 %v5588_v9  ;;  %v5621_v8 = vld [vmem:[%s6608_s3 + $0x168] sm:$0xff]  }
 0xe4c   : > { %5158 = vmatprep.subr.bf16.mxu1 %v5589_v10  ;;  %5180 = vmatprep.subr.bf16.mxu0 %v5590_v11  ;;  %v5622_v9 = vld [vmem:[%s6608_s3 + $0x1e8] sm:$0xff]   ;;  %v2045_v10 = vsub.s32 4, %v6655_v30  ;;  %v2053_v11 = vsub.s32 6, %v6655_v30 }
 0xe4f   : > { %5159 = vmatpush3.bf16.msra.mxu1 %v5591_v63  ;;  %5181 = vmatpush3.bf16.msra.mxu0 %v5592_v12  ;;  %v5623_v63 = vld [vmem:[%s6608_s3 + $0x128] sm:$0xff]  }
 0xe50   : > { %5160 = vmatprep.subr.bf16.mxu1 %v5593_v13  ;;  %5182 = vmatprep.subr.bf16.mxu0 %v5594_v14  ;;  %v5624_v12 = vld [vmem:[%s6608_s3 + $0x1a8] sm:$0xff]   ;;  %v2049_v13 = vsub.s32 5, %v6655_v30  ;;  %v2057_v14 = vsub.s32 7, %v6655_v30 }
 0xe53   : > { %5161 = vmatpush3.bf16.msra.mxu1 %v5595_v15  ;;  %5183 = vmatpush3.bf16.msra.mxu0 %v5596_v16  ;;  %v5625_v15 = vld [vmem:[%s6608_s3 + $0x170] sm:$0xff]  }
 0xe54   : > { %5162 = vmatprep.subr.bf16.mxu1 %v5597_v17  ;;  %5184 = vmatprep.subr.bf16.mxu0 %v5598_v18  ;;  %v5626_v16 = vld [vmem:[%s6608_s3 + $0x1f0] sm:$0xff]   ;;  %v2046_v17 = vrot.slane %v6959_v24, %v2045_v10  ;;  %v2054_v18 = vrot.slane %v6959_v24, %v2053_v11 }
 0xe57   : > { %5163 = vmatpush3.bf16.msra.mxu1 %v5599_v19  ;;  %5185 = vmatpush3.bf16.msra.mxu0 %v5600_v3  ;;  %v2050_v19 = vrot.slane %v6959_v24, %v2049_v13  ;;  %v2058_v3 = vrot.slane %v6959_v24, %v2057_v14 }
 0xe58   : > { %5192 = vmatprep.subr.bf16.mxu1 %v5601_v20  ;;  %5214 = vmatprep.subr.bf16.mxu0 %v5602_v21  ;;  %v5627_v20 = vld [vmem:[%s6608_s3 + $0x130] sm:$0xff]  }
 0xe59   : > { %v5628_v21 = vld [vmem:[%s6608_s3 + $0x1b0] sm:$0xff]  }
 0xead   : > { %v2781_v29 = vpop.f32.mrb[20].mxu1  ;;  %v2822_v32 = vpop.f32.mrb[8].mxu0 }
 0xeae   : > { %v2782_v34 = vadd.f32 %v2781_v29, %v2030_v25  ;;  %v2823_v35 = vadd.f32 %v2822_v32, %v2038_v26  ;;  %v2783_v36 = vpop.f32.mrb[21].mxu1  ;;  %v2824_v37 = vpop.f32.mrb[9].mxu0  ;;  %v5629_v25 = vld [vmem:[%s6608_s3 + $0x178] sm:$0xff]  }
 0xeaf   : > { %v2784_v38 = vadd.f32 %v2783_v36, %v2034_v27  ;;  %v2825_v39 = vadd.f32 %v2824_v37, %v2042_v28  ;;  %v2785_v40 = vpop.f32.mrb[22].mxu1  ;;  %v2826_v41 = vpop.f32.mrb[10].mxu0  ;;  %v5630_v26 = vld [vmem:[%s6608_s3 + $0x1f8] sm:$0xff]  }
 0xeb0   : > { %v3075_v43 = vmax.f32 %v2782_v34, 0.0  ;;  %v3077_v44 = vmax.f32 %v2823_v35, 0.0  ;;  %v2786_v45 = vpop.f32.mrb[23].mxu1  ;;  %v2827_v47 = vpop.f32.mrb[11].mxu0  ;;  %v5632_v40 = vld [vmem:[%s6608_s3 + $0x1b8] sm:$0xff]  }
 0xeb1   : > { %v3076_v48 = vmax.f32 %v2784_v38, 0.0  ;;  %v3078_v50 = vmax.f32 %v2825_v39, 0.0  ;;  %v5631_v39 = vld [vmem:[%s6608_s3 + $0x138] sm:$0xff]   ;;  %v5633_v47 = vld [vmem:[%s6608_s3 + $0x240] sm:$0xff]  }
 0xeb2   : > { %v3092_v53 = vpack.c.bf16 %v3075_v43, %v3075_v43  ;;  %v3094_v54 = vpack.c.bf16 %v3077_v44, %v3077_v44 }
 0xeb3   : > { %v3093_v46 = vpack.c.bf16 %v3076_v48, %v3076_v48  ;;  %v3095_v51 = vpack.c.bf16 %v3078_v50, %v3078_v50  ;;  %v5634_v48 = vld [vmem:[%s6608_s3 + $0x2c0] sm:$0xff]  }
 0xeb5   : > { %4164 = vmatprep.mubr.bf16.mxu1 %v3093_v46  ;;  %4204 = vmatprep.mubr.bf16.mxu0 %v3095_v51 }
 0xeb6   : > { %4165 = vmatmul.mubr.bf16.vlgmr.msra.gmra.mrb[36].mxu1 %v3092_v53  ;;  %4205 = vmatmul.mubr.bf16.vlgmr.msra.gmra.mrb[24].mxu0 %v3094_v54  ;;  %v5636_v53 = vld [vmem:[%s6608_s3 + $0x280] sm:$0xff]  }
 0xeb7   : > { %5193 = vmatpush3.bf16.msra.mxu1 %v5603_v52  ;;  %5215 = vmatpush3.bf16.msra.mxu0 %v5604_v22  ;;  %v5635_v22 = vld [vmem:[%s6608_s3 + $0x200] sm:$0xff]  }
 0xeb8   : > { %5194 = vmatprep.subr.bf16.mxu1 %v5605_v55  ;;  %5216 = vmatprep.subr.bf16.mxu0 %v5606_v56  ;;  %v5637_v56 = vld [vmem:[%s6608_s3 + $0x248] sm:$0xff]  }
 0xebb   : > { %5195 = vmatpush3.bf16.msra.mxu1 %v5607_v57  ;;  %5217 = vmatpush3.bf16.msra.mxu0 %v5608_v58  ;;  %v5638_v57 = vld [vmem:[%s6608_s3 + $0x2c8] sm:$0xff]  }
 0xebc   : > { %5196 = vmatprep.subr.bf16.mxu1 %v5609_v59  ;;  %5218 = vmatprep.subr.bf16.mxu0 %v5610_v60  ;;  %v5639_v58 = vld [vmem:[%s6608_s3 + $0x208] sm:$0xff]   ;;  %v5641_v60 = vld [vmem:[%s6608_s3 + $0x250] sm:$0xff]  }
 0xebd   : > { %v5640_v59 = vld [vmem:[%s6608_s3 + $0x288] sm:$0xff]  }
 0xebf   : > { %5197 = vmatpush3.bf16.msra.mxu1 %v5611_v61  ;;  %5219 = vmatpush3.bf16.msra.mxu0 %v5612_v62  ;;  %v5642_v61 = vld [vmem:[%s6608_s3 + $0x2d0] sm:$0xff]  }
 0xec0   : > { %5198 = vmatprep.subr.bf16.mxu1 %v5613_v0  ;;  %5220 = vmatprep.subr.bf16.mxu0 %v5614_v1  ;;  %v5643_v62 = vld [vmem:[%s6608_s3 + $0x210] sm:$0xff]   ;;  %v5645_v1 = vld [vmem:[%s6608_s3 + $0x258] sm:$0xff]  }
 0xec1   : > { %v5644_v0 = vld [vmem:[%s6608_s3 + $0x290] sm:$0xff]  }
 0xec3   : > { %5199 = vmatpush3.bf16.msra.mxu1 %v5615_v49  ;;  %5221 = vmatpush3.bf16.msra.mxu0 %v5616_v2  ;;  %v5646_v49 = vld [vmem:[%s6608_s3 + $0x2d8] sm:$0xff]  }
 0xec4   : > { %5200 = vmatprep.subr.bf16.mxu1 %v5617_v5  ;;  %5222 = vmatprep.subr.bf16.mxu0 %v5618_v4  ;;  %v5647_v2 = vld [vmem:[%s6608_s3 + $0x218] sm:$0xff]   ;;  %v5649_v4 = vld [vmem:[%s6608_s3 + $0x260] sm:$0xff]  }
 0xec5   : > { %v5648_v5 = vld [vmem:[%s6608_s3 + $0x298] sm:$0xff]  }
 0xec7   : > { %5201 = vmatpush3.bf16.msra.mxu1 %v5619_v6  ;;  %5223 = vmatpush3.bf16.msra.mxu0 %v5620_v7  ;;  %v5650_v6 = vld [vmem:[%s6608_s3 + $0x2e0] sm:$0xff]  }
 0xec8   : > { %5202 = vmatprep.subr.bf16.mxu1 %v5621_v8  ;;  %5224 = vmatprep.subr.bf16.mxu0 %v5622_v9  ;;  %v5651_v7 = vld [vmem:[%s6608_s3 + $0x220] sm:$0xff]   ;;  %v5653_v9 = vld [vmem:[%s6608_s3 + $0x268] sm:$0xff]  }
 0xec9   : > { %v5652_v8 = vld [vmem:[%s6608_s3 + $0x2a0] sm:$0xff]  }
 0xecb   : > { %5203 = vmatpush3.bf16.msra.mxu1 %v5623_v63  ;;  %5225 = vmatpush3.bf16.msra.mxu0 %v5624_v12  ;;  %v5654_v63 = vld [vmem:[%s6608_s3 + $0x2e8] sm:$0xff]  }
 0xecc   : > { %5204 = vmatprep.subr.bf16.mxu1 %v5625_v15  ;;  %5226 = vmatprep.subr.bf16.mxu0 %v5626_v16  ;;  %v5655_v12 = vld [vmem:[%s6608_s3 + $0x228] sm:$0xff]  }
 0xecd   : > { %v2863_v27 = vpop.f32.mrb[24].mxu1  ;;  %v2904_v28 = vpop.f32.mrb[12].mxu0  ;;  %v5656_v15 = vld [vmem:[%s6608_s3 + $0x2a8] sm:$0xff]  }
 0xece   : > { %v2864_v29 = vadd.f32 %v2863_v27, %v2046_v17  ;;  %v2905_v32 = vadd.f32 %v2904_v28, %v2054_v18  ;;  %v2865_v34 = vpop.f32.mrb[25].mxu1  ;;  %v2906_v35 = vpop.f32.mrb[13].mxu0  ;;  %v7042_v16 = vld [vmem:[%s6606_s13 + $0x8] sm:$0xff]  ;;  %v5661_v27 = vld [vmem:[%s6608_s3 + $0x278] sm:$0xff]  }
 0xecf   : > { %v2866_v36 = vadd.f32 %v2865_v34, %v2050_v19  ;;  %v2907_v37 = vadd.f32 %v2906_v35, %v2058_v3  ;;  %v2867_v38 = vpop.f32.mrb[26].mxu1  ;;  %v2908_v24 = vpop.f32.mrb[14].mxu0  ;;  %5205 = vmatpush3.bf16.msra.mxu1 %v5627_v20  ;;  %5227 = vmatpush3.bf16.msra.mxu0 %v5628_v21  ;;  %v5657_v17 = vld [vmem:[%s6608_s3 + $0x270] sm:$0xff]   ;;  %v2062_v19 = vrot.slane %v7042_v16, %v6658_v31  ;;  %v5662_v31 = vld [vmem:[%s6608_s3 + $0x2f8] sm:$0xff]  }
 0xed0   : > { %v3079_v41 = vmax.f32 %v2864_v29, 0.0  ;;  %v3081_v43 = vmax.f32 %v2905_v32, 0.0  ;;  %v2868_v44 = vpop.f32.mrb[27].mxu1  ;;  %v2909_v45 = vpop.f32.mrb[15].mxu0  ;;  %5206 = vmatprep.subr.bf16.mxu1 %v5629_v25  ;;  %5228 = vmatprep.subr.bf16.mxu0 %v5630_v26  ;;  %v5658_v18 = vld [vmem:[%s6608_s3 + $0x2f0] sm:$0xff]   ;;  %v2070_v3 = vrot.slane %v7042_v16, %v6669_v42  ;;  %v2066_v20 = vrot.slane %v7042_v16, %v6662_v33  ;;  %v5663_v38 = vld [vmem:[%s6608_s3 + $0x238] sm:$0xff]  }
 0xed1   : > { %v3080_v50 = vmax.f32 %v2866_v36, 0.0  ;;  %v3082_v46 = vmax.f32 %v2907_v37, 0.0  ;;  %v2074_v21 = vrot.slane %v7042_v16, %v2041_v23  ;;  %v5659_v25 = vld [vmem:[%s6608_s3 + $0x230] sm:$0xff]   ;;  %v5664_v24 = vld [vmem:[%s6608_s3 + $0x2b8] sm:$0xff]   ;;  %v5665_v44 = vld [vmem:[%s6608_s3 + $0x340] sm:$0xff]  }
 0xed2   : > { %v3096_v54 = vpack.c.bf16 %v3079_v41, %v3079_v41  ;;  %v3098_v55 = vpack.c.bf16 %v3081_v43, %v3081_v43  ;;  %v5660_v26 = vld [vmem:[%s6608_s3 + $0x2b0] sm:$0xff]   ;;  %v5666_v45 = vld [vmem:[%s6608_s3 + $0x3c0] sm:$0xff]  }
 0xed3   : > { %v3097_v51 = vpack.c.bf16 %v3080_v50, %v3080_v50  ;;  %v3099_v52 = vpack.c.bf16 %v3082_v46, %v3082_v46  ;;  %5207 = vmatpush3.bf16.msra.mxu1 %v5631_v39  ;;  %5229 = vmatpush3.bf16.msra.mxu0 %v5632_v40 }
 0xed4   : > { %5236 = vmatprep.subr.bf16.mxu1 %v5633_v47  ;;  %5258 = vmatprep.subr.bf16.mxu0 %v5634_v48 }
 0xed5   : > { %4244 = vmatprep.mubr.bf16.mxu1 %v3097_v51  ;;  %4284 = vmatprep.mubr.bf16.mxu0 %v3099_v52  ;;  %v5667_v51 = vld [vmem:[%s6608_s3 + $0x300] sm:$0xff]  }
 0xed6   : > { %4245 = vmatmul.mubr.bf16.vlgmr.msra.gmra.mrb[40].mxu1 %v3096_v54  ;;  %4285 = vmatmul.mubr.bf16.vlgmr.msra.gmra.mrb[28].mxu0 %v3098_v55  ;;  %v5668_v52 = vld [vmem:[%s6608_s3 + $0x380] sm:$0xff]   ;;  %v5669_v54 = vld [vmem:[%s6608_s3 + $0x348] sm:$0xff]  }
 0xed7   : > { %5237 = vmatpush3.bf16.msra.mxu1 %v5635_v22  ;;  %5259 = vmatpush3.bf16.msra.mxu0 %v5636_v53  ;;  %v5670_v55 = vld [vmem:[%s6608_s3 + $0x3c8] sm:$0xff]  }
 0xed8   : > { %5238 = vmatprep.subr.bf16.mxu1 %v5637_v56  ;;  %5260 = vmatprep.subr.bf16.mxu0 %v5638_v57  ;;  %v5671_v56 = vld [vmem:[%s6608_s3 + $0x308] sm:$0xff]  }
 0xed9   : > { %v5672_v57 = vld [vmem:[%s6608_s3 + $0x388] sm:$0xff]  }
 0xedb   : > { %5239 = vmatpush3.bf16.msra.mxu1 %v5639_v58  ;;  %5261 = vmatpush3.bf16.msra.mxu0 %v5640_v59  ;;  %v5673_v58 = vld [vmem:[%s6608_s3 + $0x350] sm:$0xff]  }
 0xedc   : > { %5240 = vmatprep.subr.bf16.mxu1 %v5641_v60  ;;  %5262 = vmatprep.subr.bf16.mxu0 %v5642_v61  ;;  %v5674_v59 = vld [vmem:[%s6608_s3 + $0x3d0] sm:$0xff]  }
 0xedd   : > { %v5675_v60 = vld [vmem:[%s6608_s3 + $0x310] sm:$0xff]  }
 0xede   : > { %v5676_v61 = vld [vmem:[%s6608_s3 + $0x390] sm:$0xff]  }
 0xedf   : > { %5241 = vmatpush3.bf16.msra.mxu1 %v5643_v62  ;;  %5263 = vmatpush3.bf16.msra.mxu0 %v5644_v0  ;;  %v5677_v62 = vld [vmem:[%s6608_s3 + $0x358] sm:$0xff]  }
 0xee0   : > { %5242 = vmatprep.subr.bf16.mxu1 %v5645_v1  ;;  %5264 = vmatprep.subr.bf16.mxu0 %v5646_v49  ;;  %v5678_v0 = vld [vmem:[%s6608_s3 + $0x3d8] sm:$0xff]  }
 0xee1   : > { %v5679_v1 = vld [vmem:[%s6608_s3 + $0x318] sm:$0xff]  }
 0xee2   : > { %v5680_v49 = vld [vmem:[%s6608_s3 + $0x398] sm:$0xff]  }
 0xee3   : > { %5243 = vmatpush3.bf16.msra.mxu1 %v5647_v2  ;;  %5265 = vmatpush3.bf16.msra.mxu0 %v5648_v5  ;;  %v5681_v2 = vld [vmem:[%s6608_s3 + $0x360] sm:$0xff]  }
 0xee4   : > { %5244 = vmatprep.subr.bf16.mxu1 %v5649_v4  ;;  %5266 = vmatprep.subr.bf16.mxu0 %v5650_v6  ;;  %v5682_v5 = vld [vmem:[%s6608_s3 + $0x3e0] sm:$0xff]  }
 0xee5   : > { %v5683_v4 = vld [vmem:[%s6608_s3 + $0x320] sm:$0xff]  }
 0xee6   : > { %v5684_v6 = vld [vmem:[%s6608_s3 + $0x3a0] sm:$0xff]  }
 0xee7   : > { %5245 = vmatpush3.bf16.msra.mxu1 %v5651_v7  ;;  %5267 = vmatpush3.bf16.msra.mxu0 %v5652_v8  ;;  %v5685_v7 = vld [vmem:[%s6608_s3 + $0x368] sm:$0xff]  }
 0xee8   : > { %5246 = vmatprep.subr.bf16.mxu1 %v5653_v9  ;;  %5268 = vmatprep.subr.bf16.mxu0 %v5654_v63  ;;  %v5686_v8 = vld [vmem:[%s6608_s3 + $0x3e8] sm:$0xff]  }
 0xee9   : > { %v5687_v9 = vld [vmem:[%s6608_s3 + $0x328] sm:$0xff]  }
 0xeea   : > { %v5688_v63 = vld [vmem:[%s6608_s3 + $0x3a8] sm:$0xff]  }
 0xeeb   : > { %5247 = vmatpush3.bf16.msra.mxu1 %v5655_v12  ;;  %5269 = vmatpush3.bf16.msra.mxu0 %v5656_v15  ;;  %v5689_v12 = vld [vmem:[%s6608_s3 + $0x370] sm:$0xff]  }
 0xeec   : > { %5248 = vmatprep.subr.bf16.mxu1 %v5657_v17  ;;  %5270 = vmatprep.subr.bf16.mxu0 %v5658_v18  ;;  %v5690_v15 = vld [vmem:[%s6608_s3 + $0x3f0] sm:$0xff]   ;;  %v2078_v17 = vrot.slane %v7042_v16, %v2045_v10  ;;  %v2086_v18 = vrot.slane %v7042_v16, %v2053_v11  ;;  %v5693_v10 = vld [vmem:[%s6608_s3 + $0x378] sm:$0xff]  }
 0xeed   : > { %v2945_v28 = vpop.f32.mrb[28].mxu1  ;;  %v2986_v29 = vpop.f32.mrb[16].mxu0 }
 0xeee   : > { %v2946_v42 = vadd.f32 %v2945_v28, %v2062_v19  ;;  %v2987_v32 = vadd.f32 %v2986_v29, %v2070_v3  ;;  %v2947_v34 = vpop.f32.mrb[29].mxu1  ;;  %v2988_v35 = vpop.f32.mrb[17].mxu0  ;;  %v2082_v19 = vrot.slane %v7042_v16, %v2049_v13  ;;  %v2090_v3 = vrot.slane %v7042_v16, %v2057_v14  ;;  %v5695_v14 = vld [vmem:[%s6608_s3 + $0x338] sm:$0xff]  }
 0xeef   : > { %v2948_v33 = vadd.f32 %v2947_v34, %v2066_v20  ;;  %v2989_v36 = vadd.f32 %v2988_v35, %v2074_v21  ;;  %v2949_v37 = vpop.f32.mrb[30].mxu1  ;;  %v2990_v23 = vpop.f32.mrb[18].mxu0  ;;  %5249 = vmatpush3.bf16.msra.mxu1 %v5659_v25  ;;  %5271 = vmatpush3.bf16.msra.mxu0 %v5660_v26  ;;  %v5691_v20 = vld [vmem:[%s6608_s3 + $0x330] sm:$0xff]   ;;  %v5694_v25 = vld [vmem:[%s6608_s3 + $0x3f8] sm:$0xff]  }
 0xef0   : > { %v3083_v39 = vmax.f32 %v2946_v42, 0.0  ;;  %v3085_v40 = vmax.f32 %v2987_v32, 0.0  ;;  %v2950_v41 = vpop.f32.mrb[31].mxu1  ;;  %v2991_v43 = vpop.f32.mrb[19].mxu0  ;;  %5250 = vmatprep.subr.bf16.mxu1 %v5661_v27  ;;  %5272 = vmatprep.subr.bf16.mxu0 %v5662_v31  ;;  %v5692_v21 = vld [vmem:[%s6608_s3 + $0x3b0] sm:$0xff]   ;;  %v5696_v16 = vld [vmem:[%s6608_s3 + $0x3b8] sm:$0xff]  }
 0xef1   : > { %v3084_v47 = vmax.f32 %v2948_v33, 0.0  ;;  %v3086_v48 = vmax.f32 %v2989_v36, 0.0  ;;  %s7243_s3 = sld [smem:[#allocation28_spill]] }
 0xef2   : > { %v3100_v22 = vpack.c.bf16 %v3083_v39, %v3083_v39  ;;  %v3102_v53 = vpack.c.bf16 %v3085_v40, %v3085_v40 }
 0xef3   : > { %v3101_v50 = vpack.c.bf16 %v3084_v47, %v3084_v47  ;;  %v3103_v46 = vpack.c.bf16 %v3086_v48, %v3086_v48  ;;  %5251 = vmatpush3.bf16.msra.mxu1 %v5663_v38  ;;  %5273 = vmatpush3.bf16.msra.mxu0 %v5664_v24 }
 0xef4   : > { %5280 = vmatprep.subr.bf16.mxu1 %v5665_v44  ;;  %5302 = vmatprep.subr.bf16.mxu0 %v5666_v45 }
 0xef5   : > { %4324 = vmatprep.mubr.bf16.mxu1 %v3101_v50  ;;  %4364 = vmatprep.mubr.bf16.mxu0 %v3103_v46 }
 0xef6   : > { %4325 = vmatmul.mubr.bf16.vlgmr.msra.gmra.mrb[44].mxu1 %v3100_v22  ;;  %4365 = vmatmul.mubr.bf16.vlgmr.msra.gmra.mrb[32].mxu0 %v3102_v53 }
 0xef7   : > { %5281 = vmatpush3.bf16.msra.mxu1 %v5667_v51  ;;  %5303 = vmatpush3.bf16.msra.mxu0 %v5668_v52  ;;  %p4497_p3 = scmp.eq.s32.totalorder %s7243_s3, 1 }
 0xef8   : > { %5282 = vmatprep.subr.bf16.mxu1 %v5669_v54  ;;  %5304 = vmatprep.subr.bf16.mxu0 %v5670_v55 }
 0xefb   : > { %5283 = vmatpush3.bf16.msra.mxu1 %v5671_v56  ;;  %5305 = vmatpush3.bf16.msra.mxu0 %v5672_v57 }
 0xefc   : > { %5284 = vmatprep.subr.bf16.mxu1 %v5673_v58  ;;  %5306 = vmatprep.subr.bf16.mxu0 %v5674_v59 }
 0xeff   : > { %5285 = vmatpush3.bf16.msra.mxu1 %v5675_v60  ;;  %5307 = vmatpush3.bf16.msra.mxu0 %v5676_v61 }
 0xf00   : > { %5286 = vmatprep.subr.bf16.mxu1 %v5677_v62  ;;  %5308 = vmatprep.subr.bf16.mxu0 %v5678_v0 }
 0xf03   : > { %5287 = vmatpush3.bf16.msra.mxu1 %v5679_v1  ;;  %5309 = vmatpush3.bf16.msra.mxu0 %v5680_v49 }
 0xf04   : > { %5288 = vmatprep.subr.bf16.mxu1 %v5681_v2  ;;  %5310 = vmatprep.subr.bf16.mxu0 %v5682_v5 }
 0xf07   : > { %5289 = vmatpush3.bf16.msra.mxu1 %v5683_v4  ;;  %5311 = vmatpush3.bf16.msra.mxu0 %v5684_v6 }
 0xf08   : > { %5290 = vmatprep.subr.bf16.mxu1 %v5685_v7  ;;  %5312 = vmatprep.subr.bf16.mxu0 %v5686_v8 }
 0xf0b   : > { %5291 = vmatpush3.bf16.msra.mxu1 %v5687_v9  ;;  %5313 = vmatpush3.bf16.msra.mxu0 %v5688_v63 }
 0xf0c   : > { %5292 = vmatprep.subr.bf16.mxu1 %v5689_v12  ;;  %5314 = vmatprep.subr.bf16.mxu0 %v5690_v15 }
 0xf0d   : > { %v3027_v26 = vpop.f32.mrb[32].mxu1  ;;  %v3068_v11 = vpop.f32.mrb[20].mxu0 }
 0xf0e   : > { %v3028_v27 = vadd.f32 %v3027_v26, %v2078_v17  ;;  %v3069_v31 = vadd.f32 %v3068_v11, %v2086_v18  ;;  %v3029_v28 = vpop.f32.mrb[33].mxu1  ;;  %v3070_v29 = vpop.f32.mrb[21].mxu0 }
 0xf0f   : > { %v3030_v42 = vadd.f32 %v3029_v28, %v2082_v19  ;;  %v3071_v13 = vadd.f32 %v3070_v29, %v2090_v3  ;;  %v3031_v32 = vpop.f32.mrb[34].mxu1  ;;  %v3072_v30 = vpop.f32.mrb[22].mxu0  ;;  %5293 = vmatpush3.bf16.msra.mxu1 %v5691_v20  ;;  %5315 = vmatpush3.bf16.msra.mxu0 %v5692_v21  ;;  %v4457_v29 = vld [vmem:[#allocation2] sm:$0xff] }
 0xf10   : > { %v3087_v34 = vmax.f32 %v3028_v27, 0.0  ;;  %v3089_v35 = vmax.f32 %v3069_v31, 0.0  ;;  %v3032_v33 = vpop.f32.mrb[35].mxu1  ;;  %v3073_v36 = vpop.f32.mrb[23].mxu0  ;;  %5294 = vmatprep.subr.bf16.mxu1 %v5693_v10  ;;  %5316 = vmatprep.subr.bf16.mxu0 %v5694_v25 }
 0xf11   : > { %v3088_v37 = vmax.f32 %v3030_v42, 0.0  ;;  %v3090_v23 = vmax.f32 %v3071_v13, 0.0  ;;  %v5101_v42 = vld [vmem:[%s801_s26] ss:$0 sm:$0xff] }
 0xf12   : > { %v3104_v39 = vpack.c.bf16 %v3087_v34, %v3087_v34  ;;  %v3106_v40 = vpack.c.bf16 %v3089_v35, %v3089_v35 }
 0xf13   : > { %v3105_v38 = vpack.c.bf16 %v3088_v37, %v3088_v37  ;;  %v3107_v24 = vpack.c.bf16 %v3090_v23, %v3090_v23  ;;  %5295 = vmatpush3.bf16.msra.mxu1 %v5695_v14  ;;  %5317 = vmatpush3.bf16.msra.mxu0 %v5696_v16  ;;  %v5102_v23 = vld [vmem:[%s7245_s21] ss:$0 sm:$0xff] }
 0xf15   : > { %4404 = vmatprep.mubr.bf16.mxu1 %v3105_v38  ;;  %4444 = vmatprep.mubr.bf16.mxu0 %v3107_v24  ;;  %v5103_v24 = vld [vmem:[%s7246_s29] ss:$0 sm:$0xff] }
 0xf16   : > { %4405 = vmatmul.mubr.bf16.vlgmr.msra.gmra.mrb[48].mxu1 %v3104_v39  ;;  %4445 = vmatmul.mubr.bf16.vlgmr.msra.gmra.mrb[36].mxu0 %v3106_v40 }
 0xf89   : > { %v5164_v41 = vpop.f32.mrb[36].mxu1  ;;  %v5186_v43 = vpop.f32.mrb[24].mxu0 }
 0xf8a   : > { %v5165_v44 = vpop.f32.mrb[37].mxu1  ;;  %v5187_v45 = vpop.f32.mrb[25].mxu0 }
 0xf8b   : > { %v5166_v47 = vadd.f32 %v5165_v44, %v5164_v41  ;;  %v5188_v48 = vadd.f32 %v5187_v45, %v5186_v43  ;;  %v5167_v50 = vpop.f32.mrb[38].mxu1  ;;  %v5189_v46 = vpop.f32.mrb[26].mxu0 }
 0xf8c   : > { %v5168_v51 = vpop.f32.mrb[39].mxu1  ;;  %v5190_v52 = vpop.f32.mrb[27].mxu0 }
 0xf8d   : > { %v4207_v22 = vadd.f32 %v5188_v48, %v5166_v47 }
 0xfa9   : > { %v5208_v53 = vpop.f32.mrb[40].mxu1  ;;  %v5230_v54 = vpop.f32.mrb[28].mxu0 }
 0xfaa   : > { %v5209_v55 = vpop.f32.mrb[41].mxu1  ;;  %v5231_v56 = vpop.f32.mrb[29].mxu0 }
 0xfab   : > { %v5210_v57 = vadd.f32 %v5209_v55, %v5208_v53  ;;  %v5232_v58 = vadd.f32 %v5231_v56, %v5230_v54  ;;  %v5211_v59 = vpop.f32.mrb[42].mxu1  ;;  %v5233_v60 = vpop.f32.mrb[30].mxu0 }
 0xfac   : > { %v5212_v61 = vpop.f32.mrb[43].mxu1  ;;  %v5234_v62 = vpop.f32.mrb[31].mxu0 }
 0xfad   : > { %v4247_v0 = vadd.f32 %v5210_v57, %v4207_v22 }
 0xfaf   : > { %v4287_v1 = vadd.f32 %v5232_v58, %v4247_v0 }
 0xfc9   : > { %v5252_v49 = vpop.f32.mrb[44].mxu1  ;;  %v5274_v2 = vpop.f32.mrb[32].mxu0 }
 0xfca   : > { %v5253_v5 = vpop.f32.mrb[45].mxu1  ;;  %v5275_v4 = vpop.f32.mrb[33].mxu0 }
 0xfcb   : > { %v5254_v6 = vadd.f32 %v5253_v5, %v5252_v49  ;;  %v5276_v7 = vadd.f32 %v5275_v4, %v5274_v2  ;;  %v5255_v8 = vpop.f32.mrb[46].mxu1  ;;  %v5277_v9 = vpop.f32.mrb[34].mxu0 }
 0xfcc   : > { %v5256_v63 = vpop.f32.mrb[47].mxu1  ;;  %v5278_v12 = vpop.f32.mrb[35].mxu0 }
 0xfcd   : > { %v4327_v15 = vadd.f32 %v5254_v6, %v4287_v1 }
 0xfcf   : > { %v4367_v17 = vadd.f32 %v5276_v7, %v4327_v15 }
 0xfe9   : > { %v5296_v18 = vpop.f32.mrb[48].mxu1  ;;  %v5318_v19 = vpop.f32.mrb[36].mxu0 }
 0xfea   : > { %v5297_v3 = vpop.f32.mrb[49].mxu1  ;;  %v5319_v20 = vpop.f32.mrb[37].mxu0 }
 0xfeb   : > { %v5298_v21 = vadd.f32 %v5297_v3, %v5296_v18  ;;  %v5320_v10 = vadd.f32 %v5319_v20, %v5318_v19  ;;  %v5299_v25 = vpop.f32.mrb[50].mxu1  ;;  %v5321_v26 = vpop.f32.mrb[38].mxu0 }
 0xfec   : > { %v5300_v11 = vpop.f32.mrb[51].mxu1  ;;  %v5322_v27 = vpop.f32.mrb[39].mxu0 }
 0xfed   : > { %v4407_v31 = vadd.f32 %v5298_v21, %v4367_v17 }
 0xfef   : > { %v4447_v28 = vadd.f32 %v5320_v10, %v4407_v31 }
 0xff1   : > { %v4459_v13 = vadd.f32 %v4457_v29, %v4447_v28 }
 0xff3   : > { %v4467_v32 = vadd.f32 %v5101_v42, %v4459_v13 }
 0xff5   : > { %4470 = vadd.xlane.f32.xlu1 %v4467_v32 }
0x1082   : > { %v4471_v30 = vpop.xlane.xlu1 %4470 }
0x1083   : > { %v4473_v14 = vmul.f32 0.0078125, %v4471_v30 }
0x1085   : > { %v4474_v16 = vsub.f32 %v4467_v32, %v4473_v14 }
0x1087   : > { %v4475_v34 = vmul.f32 %v4474_v16, %v4474_v16 }
0x1089   : > { %4476 = vadd.xlane.f32.xlu1 %v4475_v34 }
0x1116   : > { %v4477_v35 = vpop.xlane.xlu1 %4476 }
0x1117   : > { %v4478_v33 = vmul.f32 0.0078125, %v4477_v35 }
0x1119   : > { %v4479_v36 = vadd.f32 1e-05, %v4478_v33 }
0x111b   : > { %5715 = vrsqrt.f32 %v4479_v36 }
0x1125   : > { %v5716_v37 = vpop.eup %5715 }
0x1126   : > { %v4481_v38 = vmul.f32 %v5716_v37, %v4474_v16  ;;  %4501 = sbr.rel (!%p4497_p3) target bundleno = 4405 (0x1135), region = 124 }
0x1128   : > { %v4488_v39 = vmul.f32 %v5102_v23, %v4481_v38 }
0x112a   : > { %v4495_v40 = vadd.f32 %v5103_v24, %v4488_v39 }
0x112c   : > { %4496 = vst [vmem:[#allocation2] sm:$0xff] %v4495_v40 }
0x1133   : > { %v4502_v41 = vld [vmem:[#allocation2] sm:$0xff] }
0x1134   : > { %4503 = vst [vmem:[#allocation19] sm:$0xff] %v4502_v41 }
0x1135 PF: > { %p5466_p10 = scmp.eq.s32.totalorder %s6389_s22, 1  ;;  %s6103_s14 = smov [#allocation19]  }
0x1136   : > { %s4511_s17 = sshll.u32 %s6103_s14, 4  ;;  %s4512_s17 = int_to_ptr.vmem [resolvable:$true] %s4511_s17 }
0x1137   : > { %s5985_s18 = scalar_lea.vmem %s4512_s17, 128  ;;  %p5992_p5 = scmp.lt.s32.totalorder %s4512_s17, %s4512_s17 }
0x1138   : > { %p5986_p0 = scmp.ne.s32.totalorder %s4512_s17, %s5985_s18  ;;  %p5993_p11 = scmp.lt.s32.totalorder %s5985_s18, %s5985_s18 }
0x113a   : > { %p5987_p1 = pnand %p5986_p0, %p5466_p10  ;;  %p5994_p12 = por %p5993_p11, %p5992_p5 }
0x113c   : > { %p5988_p7 = pneg %p5987_p1 }
0x113e   : > { %p5995_p9 = pnand %p5994_p12, %p5988_p7 }
0x1140   : > { %5998 = shalt.err (!%p5995_p9)
}
0x1141   : > { %s7247_s16 = sld [smem:[#allocation42_spill]] }
0x1147   : > { %s5999_s26 = scalar_lea.hbm %s7247_s16, 128 }
0x1148   : > { %p6000_p4 = scmp.ne.s32.totalorder %s7247_s16, %s5999_s26  ;;  %p6005_p8 = scmp.lt.u32.totalorder %s5999_s26, %s7247_s16 }
0x114a   : > { %p6001_p6 = pnand %p6000_p4, %p5466_p10 }
0x114c   : > { %p6002_p2 = pneg %p6001_p6 }
0x114e   : > { %p6007_p13 = pnand %p6005_p8, %p6002_p2 }
0x1150   : > { %6010 = shalt.err (!%p6007_p13)
}
0x1151   : > { %5431 = dma.vmem_to_hbm [thread:$0]  (%p5466_p10), %s4512_s17, 128, %s7247_s16, [#allocation6]  }
0x1152   : > { %6056 = dma.done.wait (%p5466_p10), [#allocation6], 128  }
0x1153   : > { %6058 = vsyncadd (%p5466_p10), [#allocation6], 4294967168 }
0x1154 PF: > { %s7248_s15 = sld [smem:[#allocation30_spill]]  ;;  %s7249_s25 = sld [smem:[#allocation26_spill]] }
0x1155   : > { %s7250_s26 = sld [smem:[#allocation27_spill]]  ;;  %s7251_s27 = sld [smem:[#allocation32_spill]] }
0x1156   : > { %s7252_s28 = sld [smem:[#allocation29_spill]]  ;;  %s7253_s29 = sld [smem:[#allocation31_spill]] }
0x115a   : > { %s37_s30 = sadd.s32 1, %s7248_s15  }
0x115b   : > { %p34_p3 = scmp.ge.s32.totalorder %s37_s30, 4  }
0x115d   :  { %36 = sbr.rel (!%p34_p3) target bundleno = 22 (0x16), region = 225 }
0x1164   :  { %4524 = vsyncpa [#allocation5], 1 }
0x1165   :  { %4526 = vsyncpa [#allocation5 + $0x1], 1 }
0x1166   :  { %4527 = vsyncpa [#allocation8], 1 }
0x1167   :  { %4529 = vsyncpa [#allocation8 + $0x1], 1 }
0x1168   :  { %4530 = vsyncpa [#allocation11], 1 }
0x1169   :  { %4532 = vsyncpa [#allocation11 + $0x1], 1 }
0x116a   :  { %4533 = vsyncpa [#allocation14], 1 }
0x116b   :  { %4535 = vsyncpa [#allocation14 + $0x1], 1 }
0x116c   :  { %4536 = vsyncpa [#allocation17], 1 }
0x116d   :  { %4538 = vsyncpa [#allocation17 + $0x1], 1 }
0x116e   :  { %4539 = vsyncpa [#allocation6], 1 }
0x116f   :  { %4541 = vsyncpa [#allocation6 + $0x1], 1 }

</bundles_post_ra>
